<compile_context>
chip_gen: v7x
topology: tpu7x:2x2x1
jax: 0.10.0
libtpu: 0.0.40
codegen_flags: <defaults>
</compile_context>

<pallas_src>
import functools

import jax
import jax.numpy as jnp
from jax import lax
from jax.experimental import pallas as pl
from jax.experimental.pallas import tpu as pltpu

_EPS = 1e-5


# ---------------------------------------------------------------------------
# Fused Pallas kernel: conv1(1x1)+BN1+ReLU -> conv2(3x3)+BN2+ReLU
#                      -> conv3(1x1)+BN3 -> (+shortcut) -> ReLU
# ---------------------------------------------------------------------------
def _bottleneck_kernel(*refs, stride, has_shortcut, H, W, Cin, P, Cout):
    if has_shortcut:
        (x_ref, w1_ref, b1_ref, w2_ref, b2_ref, w3_ref, b3_ref,
         ws_ref, bs_ref, o_ref, pad_ref) = refs
    else:
        (x_ref, w1_ref, b1_ref, w2_ref, b2_ref, w3_ref, b3_ref,
         o_ref, pad_ref) = refs
        ws_ref = bs_ref = None

    Ho = (H - 1) // stride + 1
    Wo = (W - 1) // stride + 1

    x = x_ref[0]                                     # (H, W, Cin) bf16
    xm = x.reshape(H * W, Cin)

    # --- stage 1: 1x1 conv (BN1 scale folded into w1) + bias + ReLU ---------
    y1 = jnp.dot(xm, w1_ref[...], preferred_element_type=jnp.float32)
    y1 = jnp.maximum(y1 + b1_ref[...], 0.0)          # (H*W, P) f32

    # --- zero-padded copy of out1 in VMEM (pad=1 for the 3x3 conv) ----------
    pad_ref[...] = jnp.zeros_like(pad_ref)
    pad_ref[1:H + 1, 1:W + 1, :] = y1.reshape(H, W, P).astype(pad_ref.dtype)

    # --- stage 2: 3x3 conv (stride) as 9 shifted matmuls (BN2 folded) -------
    acc = jnp.zeros((Ho * Wo, P), jnp.float32)
    for dh in range(3):
        for dw in range(3):
            if stride == 1:
                win = pad_ref[dh:dh + Ho, dw:dw + Wo, :]
            else:
                win = pad_ref[pl.ds(dh, Ho, stride=stride),
                              pl.ds(dw, Wo, stride=stride), :]
            acc = acc + jnp.dot(win.reshape(Ho * Wo, P), w2_ref[dh * 3 + dw],
                                preferred_element_type=jnp.float32)
    y2 = jnp.maximum(acc + b2_ref[...], 0.0)         # (Ho*Wo, P) f32

    # --- stage 3: 1x1 conv (BN3 folded) + shortcut + ReLU --------------------
    y3 = jnp.dot(y2.astype(jnp.bfloat16), w3_ref[...],
                 preferred_element_type=jnp.float32) + b3_ref[...]
    if has_shortcut:
        if stride == 1:
            xs = xm
        else:
            xs = x_ref[0, pl.ds(0, Ho, stride=stride),
                       pl.ds(0, Wo, stride=stride), :].reshape(Ho * Wo, Cin)
        y3 = y3 + (jnp.dot(xs, ws_ref[...], preferred_element_type=jnp.float32)
                   + bs_ref[...])
    else:
        # identity shortcut (stride == 1 and Cin == Cout): plain add, no matmul
        y3 = y3 + xm.astype(jnp.float32)

    o_ref[0] = jnp.maximum(y3, 0.0).reshape(Ho, Wo, Cout)


# ---------------------------------------------------------------------------
# Host-side glue: layout, BN folding, pallas_call wiring
# ---------------------------------------------------------------------------
def fold_bn(gamma, beta, mean, var, eps=_EPS):
    scale = gamma / jnp.sqrt(var + eps)
    bias = beta - mean * scale
    return scale[None, :].astype(jnp.float32), bias[None, :].astype(jnp.float32)


def bottleneck_forward(x_nchw, params):
    stride = int(params["stride"])
    has_shortcut = bool(params["has_shortcut"])

    x = jnp.transpose(x_nchw, (0, 2, 3, 1)).astype(jnp.bfloat16)   # NHWC, bf16
    N, H, W, Cin = x.shape
    P = params["conv1_w"].shape[0]
    Cout = params["conv3_w"].shape[0]
    Ho = (H - 1) // stride + 1
    Wo = (W - 1) // stride + 1

    s1, b1 = fold_bn(**params["bn1"])
    s2, b2 = fold_bn(**params["bn2"])
    s3, b3 = fold_bn(**params["bn3"])

    # fold BN scale into conv weight output-columns; cast weights to bf16
    w1 = (jnp.transpose(params["conv1_w"][:, :, 0, 0]) * s1).astype(jnp.bfloat16)      # (Cin, P)
    w2 = (jnp.transpose(params["conv2_w"], (2, 3, 1, 0)) * s2).reshape(9, P, P)        # (9, P, P)
    w2 = w2.astype(jnp.bfloat16)
    w3 = (jnp.transpose(params["conv3_w"][:, :, 0, 0]) * s3).astype(jnp.bfloat16)      # (P, Cout)

    const2 = lambda n: (0, 0)
    const3 = lambda n: (0, 0, 0)
    args = [x, w1, b1, w2, b2, w3, b3]
    in_specs = [
        pl.BlockSpec((1, H, W, Cin), lambda n: (n, 0, 0, 0)),   # per-image tile
        pl.BlockSpec((Cin, P), const2),                          # resident weights
        pl.BlockSpec((1, P), const2),
        pl.BlockSpec((9, P, P), const3),
        pl.BlockSpec((1, P), const2),
        pl.BlockSpec((P, Cout), const2),
        pl.BlockSpec((1, Cout), const2),
    ]
    if has_shortcut:
        ss, bs = fold_bn(**params["sc_bn"])
        ws = (jnp.transpose(params["sc_w"][:, :, 0, 0]) * ss).astype(jnp.bfloat16)     # (Cin, Cout)
        args += [ws, bs]
        in_specs += [pl.BlockSpec((Cin, Cout), const2),
                     pl.BlockSpec((1, Cout), const2)]

    kernel = functools.partial(
        _bottleneck_kernel, stride=stride, has_shortcut=has_shortcut,
        H=H, W=W, Cin=Cin, P=P, Cout=Cout)

    # cost hint for the surrounding XLA schedule
    M = N * Ho * Wo
    flops = 2 * (N * H * W * Cin * P + M * 9 * P * P + M * P * Cout)
    if has_shortcut:
        flops += 2 * M * Cin * Cout
    bytes_accessed = sum(int(a.size) * a.dtype.itemsize for a in args) + M * Cout * 4
    cost = pl.CostEstimate(flops=int(flops), transcendentals=0,
                           bytes_accessed=int(bytes_accessed))

    out = pl.pallas_call(
        kernel,
        out_shape=jax.ShapeDtypeStruct((N, Ho, Wo, Cout), jnp.float32),
        grid_spec=pltpu.PrefetchScalarGridSpec(
            num_scalar_prefetch=0,
            grid=(N,),
            in_specs=in_specs,
            out_specs=pl.BlockSpec((1, Ho, Wo, Cout), lambda n: (n, 0, 0, 0)),
            scratch_shapes=[pltpu.VMEM((H + 2, W + 2, P), jnp.bfloat16)],
        ),
        compiler_params=pltpu.CompilerParams(
            dimension_semantics=("parallel",),          # batch split across cores
            vmem_limit_bytes=48 * 1024 * 1024,          # safe on v5e/v6e/v7x
        ),
        cost_estimate=cost,
    )(*args)

    return jnp.transpose(out, (0, 3, 1, 2))             # back to NCHW (f32)


# ---------------------------------------------------------------------------
# Parameter init (deterministic) and pure-JAX reference (eval-mode BN)
# ---------------------------------------------------------------------------
def init_bn(key, c):
    k1, k2, k3, k4 = jax.random.split(key, 4)
    return dict(
        gamma=jax.random.uniform(k1, (c,), jnp.float32, 0.5, 1.5),
        beta=jax.random.normal(k2, (c,), jnp.float32) * 0.1,
        mean=jax.random.normal(k3, (c,), jnp.float32) * 0.1,
        var=jax.random.uniform(k4, (c,), jnp.float32, 0.5, 1.5),
    )


def init_bottleneck_params(key, in_planes, planes, stride, expansion=2):
    out_planes = expansion * planes
    ks = jax.random.split(key, 8)
    p = dict(
        conv1_w=jax.random.normal(ks[0], (planes, in_planes, 1, 1), jnp.float32) * 0.1,
        bn1=init_bn(ks[1], planes),
        conv2_w=jax.random.normal(ks[2], (planes, planes, 3, 3), jnp.float32) * 0.1,
        bn2=init_bn(ks[3], planes),
        conv3_w=jax.random.normal(ks[4], (out_planes, planes, 1, 1), jnp.float32) * 0.1,
        bn3=init_bn(ks[5], out_planes),
        stride=stride,
        has_shortcut=(stride != 1 or in_planes != out_planes),
    )
    if p["has_shortcut"]:
        p["sc_w"] = jax.random.normal(ks[6], (out_planes, in_planes, 1, 1), jnp.float32) * 0.1
        p["sc_bn"] = init_bn(ks[7], out_planes)
    return p


def _conv(x, w, stride=1, padding=0):
    return lax.conv_general_dilated(
        x, w, (stride, stride), [(padding, padding)] * 2,
        dimension_numbers=("NCHW", "OIHW", "NCHW"))


def _bn(x, bn):
    g, b, m, v = bn["gamma"], bn["beta"], bn["mean"], bn["var"]
    inv = g / jnp.sqrt(v + _EPS)
    return (x - m[None, :, None, None]) * inv[None, :, None, None] + b[None, :, None, None]


def bottleneck_reference(x, p):
    s = p["stride"]
    out = jax.nn.relu(_bn(_conv(x, p["conv1_w"]), p["bn1"]))
    out = jax.nn.relu(_bn(_conv(out, p["conv2_w"], stride=s, padding=1), p["bn2"]))
    out = _bn(_conv(out, p["conv3_w"]), p["bn3"])
    if p["has_shortcut"]:
        sc = _bn(_conv(x, p["sc_w"], stride=s), p["sc_bn"])
    else:
        sc = x
    return jax.nn.relu(out + sc)


# ---------------------------------------------------------------------------
if __name__ == "__main__":
    key = jax.random.PRNGKey(0)
    k1, k2, k3, k4 = jax.random.split(key, 4)
    N, H, W = 2, 16, 16

    # config 1: conv shortcut (in_planes != expansion*planes), stride=1
    x1 = jax.random.normal(k1, (N, 4, H, W), jnp.float32)
    p1 = init_bottleneck_params(k2, in_planes=4, planes=8, stride=1)
    out1 = jax.block_until_ready(bottleneck_forward(x1, p1))
    ref1 = jax.block_until_ready(bottleneck_reference(x1, p1))
    assert out1.shape == ref1.shape, (out1.shape, ref1.shape)
    assert jnp.allclose(out1, ref1, atol=3e-2, rtol=3e-2), \
        float(jnp.max(jnp.abs(out1 - ref1)))

    # config 2: identity shortcut (in_planes == expansion*planes), stride=1
    x2 = jax.random.normal(k3, (N, 16, H, W), jnp.float32)
    p2 = init_bottleneck_params(k4, in_planes=16, planes=8, stride=1)
    out2 = jax.block_until_ready(bottleneck_forward(x2, p2))
    ref2 = jax.block_until_ready(bottleneck_reference(x2, p2))
    assert out2.shape == ref2.shape, (out2.shape, ref2.shape)
    assert jnp.allclose(out2, ref2, atol=3e-2, rtol=3e-2), \
        float(jnp.max(jnp.abs(out2 - ref2)))

    print("KERNEL_OK")
</pallas_src>

<mosaic_0001>
module attributes {stable_mosaic.version = 11 : i64} {
  func.func @_bottleneck_kernel(%arg0: i32, %arg1: memref<1x16x16x4xbf16, #tpu.memory_space<vmem>>, %arg2: memref<4x8xbf16, #tpu.memory_space<vmem>>, %arg3: memref<1x8xf32, #tpu.memory_space<vmem>>, %arg4: memref<9x8x8xbf16, #tpu.memory_space<vmem>>, %arg5: memref<1x8xf32, #tpu.memory_space<vmem>>, %arg6: memref<8x16xbf16, #tpu.memory_space<vmem>>, %arg7: memref<1x16xf32, #tpu.memory_space<vmem>>, %arg8: memref<4x16xbf16, #tpu.memory_space<vmem>>, %arg9: memref<1x16xf32, #tpu.memory_space<vmem>>, %arg10: memref<1x16x16x16xf32, #tpu.memory_space<vmem>>, %arg11: memref<18x18x8xbf16, #tpu.memory_space<vmem>>) attributes {dimension_semantics = [#tpu.dimension_semantics<parallel>], iteration_bounds = array<i64: 2>, scalar_prefetch = 0 : i64, scratch_operands = 1 : i64, tpu.core_type = #tpu.core_type<tc>, window_params = [{transform_indices = @transform_0, window_bounds = array<i64: 1, 16, 16, 4>}, {pipeline_mode = #tpu.pipeline_mode<synchronous>, transform_indices = @transform_1, window_bounds = array<i64: 4, 8>}, {pipeline_mode = #tpu.pipeline_mode<synchronous>, transform_indices = @transform_2, window_bounds = array<i64: 1, 8>}, {pipeline_mode = #tpu.pipeline_mode<synchronous>, transform_indices = @transform_3, window_bounds = array<i64: 9, 8, 8>}, {pipeline_mode = #tpu.pipeline_mode<synchronous>, transform_indices = @transform_4, window_bounds = array<i64: 1, 8>}, {pipeline_mode = #tpu.pipeline_mode<synchronous>, transform_indices = @transform_5, window_bounds = array<i64: 8, 16>}, {pipeline_mode = #tpu.pipeline_mode<synchronous>, transform_indices = @transform_6, window_bounds = array<i64: 1, 16>}, {pipeline_mode = #tpu.pipeline_mode<synchronous>, transform_indices = @transform_7, window_bounds = array<i64: 4, 16>}, {pipeline_mode = #tpu.pipeline_mode<synchronous>, transform_indices = @transform_8, window_bounds = array<i64: 1, 16>}, {transform_indices = @transform_9, window_bounds = array<i64: 1, 16, 16, 16>}]} {
    %c0 = arith.constant 0 : index
    %c0_0 = arith.constant 0 : index
    %c0_1 = arith.constant 0 : index
    %c0_2 = arith.constant 0 : index
    %0 = vector.load %arg1[%c0, %c0_0, %c0_1, %c0_2] : memref<1x16x16x4xbf16, #tpu.memory_space<vmem>>, vector<1x16x16x4xbf16>
    %1 = vector.shape_cast %0 : vector<1x16x16x4xbf16> to vector<16x16x4xbf16>
    %2 = vector.shape_cast %1 : vector<16x16x4xbf16> to vector<256x4xbf16>
    %c0_3 = arith.constant 0 : index
    %c0_4 = arith.constant 0 : index
    %3 = vector.load %arg2[%c0_3, %c0_4] : memref<4x8xbf16, #tpu.memory_space<vmem>>, vector<4x8xbf16>
    %cst = arith.constant dense<0.000000e+00> : vector<256x8xf32>
    %4 = tpu.matmul %2, %3, %cst {dimension_numbers = #tpu.dot_dimension_numbers<[1], [0], [0], [1], [0, 0, 1, 1], [], []>} : vector<256x4xbf16>, vector<4x8xbf16>, vector<256x8xf32> -> vector<256x8xf32>
    %c0_5 = arith.constant 0 : index
    %c0_6 = arith.constant 0 : index
    %5 = vector.load %arg3[%c0_5, %c0_6] : memref<1x8xf32, #tpu.memory_space<vmem>>, vector<1x8xf32>
    %6 = vector.broadcast %5 : vector<1x8xf32> to vector<256x8xf32>
    %7 = arith.addf %4, %6 : vector<256x8xf32>
    %cst_7 = arith.constant 0.000000e+00 : f32
    %8 = vector.broadcast %cst_7 : f32 to vector<256x8xf32>
    %9 = arith.maximumf %7, %8 : vector<256x8xf32>
    %cst_8 = arith.constant 0.000000e+00 : bf16
    %10 = vector.broadcast %cst_8 : bf16 to vector<18x18x8xbf16>
    %c0_9 = arith.constant 0 : index
    %c0_10 = arith.constant 0 : index
    %c0_11 = arith.constant 0 : index
    %11 = vector.load %arg11[%c0_9, %c0_10, %c0_11] : memref<18x18x8xbf16, #tpu.memory_space<vmem>>, vector<18x18x8xbf16>
    tpu.vector_store %arg11[%c0_9, %c0_10, %c0_11], %10 {strides = array<i32>} : memref<18x18x8xbf16, #tpu.memory_space<vmem>>, vector<18x18x8xbf16>,
    %12 = vector.shape_cast %9 : vector<256x8xf32> to vector<16x16x8xf32>
    %13 = arith.truncf %12 : vector<16x16x8xf32> to vector<16x16x8xbf16>
    %c1 = arith.constant 1 : index
    %c1_12 = arith.constant 1 : index
    %c0_13 = arith.constant 0 : index
    %14 = vector.load %arg11[%c1, %c1_12, %c0_13] : memref<18x18x8xbf16, #tpu.memory_space<vmem>>, vector<16x16x8xbf16>
    tpu.vector_store %arg11[%c1, %c1_12, %c0_13], %13 {strides = array<i32>} : memref<18x18x8xbf16, #tpu.memory_space<vmem>>, vector<16x16x8xbf16>,
    %cst_14 = arith.constant 0.000000e+00 : f32
    %15 = vector.broadcast %cst_14 : f32 to vector<256x8xf32>
    %c0_15 = arith.constant 0 : index
    %c0_16 = arith.constant 0 : index
    %c0_17 = arith.constant 0 : index
    %16 = vector.load %arg11[%c0_15, %c0_16, %c0_17] : memref<18x18x8xbf16, #tpu.memory_space<vmem>>, vector<16x16x8xbf16>
    %17 = vector.shape_cast %16 : vector<16x16x8xbf16> to vector<256x8xbf16>
    %c0_18 = arith.constant 0 : index
    %c0_19 = arith.constant 0 : index
    %c0_20 = arith.constant 0 : index
    %18 = vector.load %arg4[%c0_18, %c0_19, %c0_20] : memref<9x8x8xbf16, #tpu.memory_space<vmem>>, vector<1x8x8xbf16>
    %19 = vector.shape_cast %18 : vector<1x8x8xbf16> to vector<8x8xbf16>
    %cst_21 = arith.constant dense<0.000000e+00> : vector<256x8xf32>
    %20 = tpu.matmul %17, %19, %cst_21 {dimension_numbers = #tpu.dot_dimension_numbers<[1], [0], [0], [1], [0, 0, 1, 1], [], []>} : vector<256x8xbf16>, vector<8x8xbf16>, vector<256x8xf32> -> vector<256x8xf32>
    %21 = arith.addf %15, %20 : vector<256x8xf32>
    %c0_22 = arith.constant 0 : index
    %c1_23 = arith.constant 1 : index
    %c0_24 = arith.constant 0 : index
    %22 = vector.load %arg11[%c0_22, %c1_23, %c0_24] : memref<18x18x8xbf16, #tpu.memory_space<vmem>>, vector<16x16x8xbf16>
    %23 = vector.shape_cast %22 : vector<16x16x8xbf16> to vector<256x8xbf16>
    %c1_25 = arith.constant 1 : index
    %c0_26 = arith.constant 0 : index
    %c0_27 = arith.constant 0 : index
    %24 = vector.load %arg4[%c1_25, %c0_26, %c0_27] : memref<9x8x8xbf16, #tpu.memory_space<vmem>>, vector<1x8x8xbf16>
    %25 = vector.shape_cast %24 : vector<1x8x8xbf16> to vector<8x8xbf16>
    %cst_28 = arith.constant dense<0.000000e+00> : vector<256x8xf32>
    %26 = tpu.matmul %23, %25, %cst_28 {dimension_numbers = #tpu.dot_dimension_numbers<[1], [0], [0], [1], [0, 0, 1, 1], [], []>} : vector<256x8xbf16>, vector<8x8xbf16>, vector<256x8xf32> -> vector<256x8xf32>
    %27 = arith.addf %21, %26 : vector<256x8xf32>
    %c0_29 = arith.constant 0 : index
    %c2 = arith.constant 2 : index
    %c0_30 = arith.constant 0 : index
    %28 = vector.load %arg11[%c0_29, %c2, %c0_30] : memref<18x18x8xbf16, #tpu.memory_space<vmem>>, vector<16x16x8xbf16>
    %29 = vector.shape_cast %28 : vector<16x16x8xbf16> to vector<256x8xbf16>
    %c2_31 = arith.constant 2 : index
    %c0_32 = arith.constant 0 : index
    %c0_33 = arith.constant 0 : index
    %30 = vector.load %arg4[%c2_31, %c0_32, %c0_33] : memref<9x8x8xbf16, #tpu.memory_space<vmem>>, vector<1x8x8xbf16>
    %31 = vector.shape_cast %30 : vector<1x8x8xbf16> to vector<8x8xbf16>
    %cst_34 = arith.constant dense<0.000000e+00> : vector<256x8xf32>
    %32 = tpu.matmul %29, %31, %cst_34 {dimension_numbers = #tpu.dot_dimension_numbers<[1], [0], [0], [1], [0, 0, 1, 1], [], []>} : vector<256x8xbf16>, vector<8x8xbf16>, vector<256x8xf32> -> vector<256x8xf32>
    %33 = arith.addf %27, %32 : vector<256x8xf32>
    %c1_35 = arith.constant 1 : index
    %c0_36 = arith.constant 0 : index
    %c0_37 = arith.constant 0 : index
    %34 = vector.load %arg11[%c1_35, %c0_36, %c0_37] : memref<18x18x8xbf16, #tpu.memory_space<vmem>>, vector<16x16x8xbf16>
    %35 = vector.shape_cast %34 : vector<16x16x8xbf16> to vector<256x8xbf16>
    %c3 = arith.constant 3 : index
    %c0_38 = arith.constant 0 : index
    %c0_39 = arith.constant 0 : index
    %36 = vector.load %arg4[%c3, %c0_38, %c0_39] : memref<9x8x8xbf16, #tpu.memory_space<vmem>>, vector<1x8x8xbf16>
    %37 = vector.shape_cast %36 : vector<1x8x8xbf16> to vector<8x8xbf16>
    %cst_40 = arith.constant dense<0.000000e+00> : vector<256x8xf32>
    %38 = tpu.matmul %35, %37, %cst_40 {dimension_numbers = #tpu.dot_dimension_numbers<[1], [0], [0], [1], [0, 0, 1, 1], [], []>} : vector<256x8xbf16>, vector<8x8xbf16>, vector<256x8xf32> -> vector<256x8xf32>
    %39 = arith.addf %33, %38 : vector<256x8xf32>
    %c1_41 = arith.constant 1 : index
    %c1_42 = arith.constant 1 : index
    %c0_43 = arith.constant 0 : index
    %40 = vector.load %arg11[%c1_41, %c1_42, %c0_43] : memref<18x18x8xbf16, #tpu.memory_space<vmem>>, vector<16x16x8xbf16>
    %41 = vector.shape_cast %40 : vector<16x16x8xbf16> to vector<256x8xbf16>
    %c4 = arith.constant 4 : index
    %c0_44 = arith.constant 0 : index
    %c0_45 = arith.constant 0 : index
    %42 = vector.load %arg4[%c4, %c0_44, %c0_45] : memref<9x8x8xbf16, #tpu.memory_space<vmem>>, vector<1x8x8xbf16>
    %43 = vector.shape_cast %42 : vector<1x8x8xbf16> to vector<8x8xbf16>
    %cst_46 = arith.constant dense<0.000000e+00> : vector<256x8xf32>
    %44 = tpu.matmul %41, %43, %cst_46 {dimension_numbers = #tpu.dot_dimension_numbers<[1], [0], [0], [1], [0, 0, 1, 1], [], []>} : vector<256x8xbf16>, vector<8x8xbf16>, vector<256x8xf32> -> vector<256x8xf32>
    %45 = arith.addf %39, %44 : vector<256x8xf32>
    %c1_47 = arith.constant 1 : index
    %c2_48 = arith.constant 2 : index
    %c0_49 = arith.constant 0 : index
    %46 = vector.load %arg11[%c1_47, %c2_48, %c0_49] : memref<18x18x8xbf16, #tpu.memory_space<vmem>>, vector<16x16x8xbf16>
    %47 = vector.shape_cast %46 : vector<16x16x8xbf16> to vector<256x8xbf16>
    %c5 = arith.constant 5 : index
    %c0_50 = arith.constant 0 : index
    %c0_51 = arith.constant 0 : index
    %48 = vector.load %arg4[%c5, %c0_50, %c0_51] : memref<9x8x8xbf16, #tpu.memory_space<vmem>>, vector<1x8x8xbf16>
    %49 = vector.shape_cast %48 : vector<1x8x8xbf16> to vector<8x8xbf16>
    %cst_52 = arith.constant dense<0.000000e+00> : vector<256x8xf32>
    %50 = tpu.matmul %47, %49, %cst_52 {dimension_numbers = #tpu.dot_dimension_numbers<[1], [0], [0], [1], [0, 0, 1, 1], [], []>} : vector<256x8xbf16>, vector<8x8xbf16>, vector<256x8xf32> -> vector<256x8xf32>
    %51 = arith.addf %45, %50 : vector<256x8xf32>
    %c2_53 = arith.constant 2 : index
    %c0_54 = arith.constant 0 : index
    %c0_55 = arith.constant 0 : index
    %52 = vector.load %arg11[%c2_53, %c0_54, %c0_55] : memref<18x18x8xbf16, #tpu.memory_space<vmem>>, vector<16x16x8xbf16>
    %53 = vector.shape_cast %52 : vector<16x16x8xbf16> to vector<256x8xbf16>
    %c6 = arith.constant 6 : index
    %c0_56 = arith.constant 0 : index
    %c0_57 = arith.constant 0 : index
    %54 = vector.load %arg4[%c6, %c0_56, %c0_57] : memref<9x8x8xbf16, #tpu.memory_space<vmem>>, vector<1x8x8xbf16>
    %55 = vector.shape_cast %54 : vector<1x8x8xbf16> to vector<8x8xbf16>
    %cst_58 = arith.constant dense<0.000000e+00> : vector<256x8xf32>
    %56 = tpu.matmul %53, %55, %cst_58 {dimension_numbers = #tpu.dot_dimension_numbers<[1], [0], [0], [1], [0, 0, 1, 1], [], []>} : vector<256x8xbf16>, vector<8x8xbf16>, vector<256x8xf32> -> vector<256x8xf32>
    %57 = arith.addf %51, %56 : vector<256x8xf32>
    %c2_59 = arith.constant 2 : index
    %c1_60 = arith.constant 1 : index
    %c0_61 = arith.constant 0 : index
    %58 = vector.load %arg11[%c2_59, %c1_60, %c0_61] : memref<18x18x8xbf16, #tpu.memory_space<vmem>>, vector<16x16x8xbf16>
    %59 = vector.shape_cast %58 : vector<16x16x8xbf16> to vector<256x8xbf16>
    %c7 = arith.constant 7 : index
    %c0_62 = arith.constant 0 : index
    %c0_63 = arith.constant 0 : index
    %60 = vector.load %arg4[%c7, %c0_62, %c0_63] : memref<9x8x8xbf16, #tpu.memory_space<vmem>>, vector<1x8x8xbf16>
    %61 = vector.shape_cast %60 : vector<1x8x8xbf16> to vector<8x8xbf16>
    %cst_64 = arith.constant dense<0.000000e+00> : vector<256x8xf32>
    %62 = tpu.matmul %59, %61, %cst_64 {dimension_numbers = #tpu.dot_dimension_numbers<[1], [0], [0], [1], [0, 0, 1, 1], [], []>} : vector<256x8xbf16>, vector<8x8xbf16>, vector<256x8xf32> -> vector<256x8xf32>
    %63 = arith.addf %57, %62 : vector<256x8xf32>
    %c2_65 = arith.constant 2 : index
    %c2_66 = arith.constant 2 : index
    %c0_67 = arith.constant 0 : index
    %64 = vector.load %arg11[%c2_65, %c2_66, %c0_67] : memref<18x18x8xbf16, #tpu.memory_space<vmem>>, vector<16x16x8xbf16>
    %65 = vector.shape_cast %64 : vector<16x16x8xbf16> to vector<256x8xbf16>
    %c8 = arith.constant 8 : index
    %c0_68 = arith.constant 0 : index
    %c0_69 = arith.constant 0 : index
    %66 = vector.load %arg4[%c8, %c0_68, %c0_69] : memref<9x8x8xbf16, #tpu.memory_space<vmem>>, vector<1x8x8xbf16>
    %67 = vector.shape_cast %66 : vector<1x8x8xbf16> to vector<8x8xbf16>
    %cst_70 = arith.constant dense<0.000000e+00> : vector<256x8xf32>
    %68 = tpu.matmul %65, %67, %cst_70 {dimension_numbers = #tpu.dot_dimension_numbers<[1], [0], [0], [1], [0, 0, 1, 1], [], []>} : vector<256x8xbf16>, vector<8x8xbf16>, vector<256x8xf32> -> vector<256x8xf32>
    %69 = arith.addf %63, %68 : vector<256x8xf32>
    %c0_71 = arith.constant 0 : index
    %c0_72 = arith.constant 0 : index
    %70 = vector.load %arg5[%c0_71, %c0_72] : memref<1x8xf32, #tpu.memory_space<vmem>>, vector<1x8xf32>
    %71 = vector.broadcast %70 : vector<1x8xf32> to vector<256x8xf32>
    %72 = arith.addf %69, %71 : vector<256x8xf32>
    %cst_73 = arith.constant 0.000000e+00 : f32
    %73 = vector.broadcast %cst_73 : f32 to vector<256x8xf32>
    %74 = arith.maximumf %72, %73 : vector<256x8xf32>
    %75 = arith.truncf %74 : vector<256x8xf32> to vector<256x8xbf16>
    %c0_74 = arith.constant 0 : index
    %c0_75 = arith.constant 0 : index
    %76 = vector.load %arg6[%c0_74, %c0_75] : memref<8x16xbf16, #tpu.memory_space<vmem>>, vector<8x16xbf16>
    %cst_76 = arith.constant dense<0.000000e+00> : vector<256x16xf32>
    %77 = tpu.matmul %75, %76, %cst_76 {dimension_numbers = #tpu.dot_dimension_numbers<[1], [0], [0], [1], [0, 0, 1, 1], [], []>} : vector<256x8xbf16>, vector<8x16xbf16>, vector<256x16xf32> -> vector<256x16xf32>
    %c0_77 = arith.constant 0 : index
    %c0_78 = arith.constant 0 : index
    %78 = vector.load %arg7[%c0_77, %c0_78] : memref<1x16xf32, #tpu.memory_space<vmem>>, vector<1x16xf32>
    %79 = vector.broadcast %78 : vector<1x16xf32> to vector<256x16xf32>
    %80 = arith.addf %77, %79 : vector<256x16xf32>
    %c0_79 = arith.constant 0 : index
    %c0_80 = arith.constant 0 : index
    %81 = vector.load %arg8[%c0_79, %c0_80] : memref<4x16xbf16, #tpu.memory_space<vmem>>, vector<4x16xbf16>
    %cst_81 = arith.constant dense<0.000000e+00> : vector<256x16xf32>
    %82 = tpu.matmul %2, %81, %cst_81 {dimension_numbers = #tpu.dot_dimension_numbers<[1], [0], [0], [1], [0, 0, 1, 1], [], []>} : vector<256x4xbf16>, vector<4x16xbf16>, vector<256x16xf32> -> vector<256x16xf32>
    %c0_82 = arith.constant 0 : index
    %c0_83 = arith.constant 0 : index
    %83 = vector.load %arg9[%c0_82, %c0_83] : memref<1x16xf32, #tpu.memory_space<vmem>>, vector<1x16xf32>
    %84 = vector.broadcast %83 : vector<1x16xf32> to vector<256x16xf32>
    %85 = arith.addf %82, %84 : vector<256x16xf32>
    %86 = arith.addf %80, %85 : vector<256x16xf32>
    %cst_84 = arith.constant 0.000000e+00 : f32
    %87 = vector.broadcast %cst_84 : f32 to vector<256x16xf32>
    %88 = arith.maximumf %86, %87 : vector<256x16xf32>
    %89 = vector.shape_cast %88 : vector<256x16xf32> to vector<16x16x16xf32>
    %c0_85 = arith.constant 0 : index
    %c0_86 = arith.constant 0 : index
    %c0_87 = arith.constant 0 : index
    %c0_88 = arith.constant 0 : index
    %90 = vector.load %arg10[%c0_85, %c0_86, %c0_87, %c0_88] : memref<1x16x16x16xf32, #tpu.memory_space<vmem>>, vector<1x16x16x16xf32>
    %91 = vector.shape_cast %90 : vector<1x16x16x16xf32> to vector<16x16x16xf32>
    %92 = vector.shape_cast %89 : vector<16x16x16xf32> to vector<1x16x16x16xf32>
    tpu.vector_store %arg10[%c0_85, %c0_86, %c0_87, %c0_88], %92 {strides = array<i32>} : memref<1x16x16x16xf32, #tpu.memory_space<vmem>>, vector<1x16x16x16xf32>,
    return
  }
  func.func @transform_0(%arg0: i32) -> (i32, i32, i32, i32) {
    %c0_i32 = arith.constant 0 : i32
    %c0_i32_0 = arith.constant 0 : i32
    %c0_i32_1 = arith.constant 0 : i32
    %c0_i32_2 = arith.constant 0 : i32
    return %arg0, %c0_i32, %c0_i32_0, %c0_i32_1 : i32, i32, i32, i32
  }
  func.func @transform_1(%arg0: i32) -> (i32, i32) {
    %c0_i32 = arith.constant 0 : i32
    %c0_i32_0 = arith.constant 0 : i32
    %c0_i32_1 = arith.constant 0 : i32
    return %c0_i32, %c0_i32_0 : i32, i32
  }
  func.func @transform_2(%arg0: i32) -> (i32, i32) {
    %c0_i32 = arith.constant 0 : i32
    %c0_i32_0 = arith.constant 0 : i32
    %c0_i32_1 = arith.constant 0 : i32
    return %c0_i32, %c0_i32_0 : i32, i32
  }
  func.func @transform_3(%arg0: i32) -> (i32, i32, i32) {
    %c0_i32 = arith.constant 0 : i32
    %c0_i32_0 = arith.constant 0 : i32
    %c0_i32_1 = arith.constant 0 : i32
    %c0_i32_2 = arith.constant 0 : i32
    return %c0_i32, %c0_i32_0, %c0_i32_1 : i32, i32, i32
  }
  func.func @transform_4(%arg0: i32) -> (i32, i32) {
    %c0_i32 = arith.constant 0 : i32
    %c0_i32_0 = arith.constant 0 : i32
    %c0_i32_1 = arith.constant 0 : i32
    return %c0_i32, %c0_i32_0 : i32, i32
  }
  func.func @transform_5(%arg0: i32) -> (i32, i32) {
    %c0_i32 = arith.constant 0 : i32
    %c0_i32_0 = arith.constant 0 : i32
    %c0_i32_1 = arith.constant 0 : i32
    return %c0_i32, %c0_i32_0 : i32, i32
  }
  func.func @transform_6(%arg0: i32) -> (i32, i32) {
    %c0_i32 = arith.constant 0 : i32
    %c0_i32_0 = arith.constant 0 : i32
    %c0_i32_1 = arith.constant 0 : i32
    return %c0_i32, %c0_i32_0 : i32, i32
  }
  func.func @transform_7(%arg0: i32) -> (i32, i32) {
    %c0_i32 = arith.constant 0 : i32
    %c0_i32_0 = arith.constant 0 : i32
    %c0_i32_1 = arith.constant 0 : i32
    return %c0_i32, %c0_i32_0 : i32, i32
  }
  func.func @transform_8(%arg0: i32) -> (i32, i32) {
    %c0_i32 = arith.constant 0 : i32
    %c0_i32_0 = arith.constant 0 : i32
    %c0_i32_1 = arith.constant 0 : i32
    return %c0_i32, %c0_i32_0 : i32, i32
  }
  func.func @transform_9(%arg0: i32) -> (i32, i32, i32, i32) {
    %c0_i32 = arith.constant 0 : i32
    %c0_i32_0 = arith.constant 0 : i32
    %c0_i32_1 = arith.constant 0 : i32
    %c0_i32_2 = arith.constant 0 : i32
    return %arg0, %c0_i32, %c0_i32_0, %c0_i32_1 : i32, i32, i32, i32
  }
}

</mosaic_0001>

<bundles_post_ra>
// kernel: tpu_custom_call.1
= control target key start
LH: loop header
LB: loop body
LE: loop exit
PB: predicated region body
PF: predicated region fallthrough
CT: control target
= control target key end

     0   :  { %14 = vsyncpa [#allocation4], 0  ;;  %s10237_s0 = inlined_call_operand.vmem [shape: bf16[2,16,16,4], index: 0, kind: input, shape index: {}]   ;;  %s10238_s1 = inlined_call_operand.vmem [shape: bf16[4,8], index: 1, kind: input, shape index: {}]   ;;  %s10239_s2 = inlined_call_operand.vmem [shape: f32[1,8], index: 2, kind: input, shape index: {}]   ;;  %s10240_s3 = inlined_call_operand.vmem [shape: bf16[9,8,8], index: 3, kind: input, shape index: {}]   ;;  %s10241_s4 = inlined_call_operand.vmem [shape: f32[1,8], index: 4, kind: input, shape index: {}]   ;;  %s10242_s5 = inlined_call_operand.vmem [shape: bf16[8,16], index: 5, kind: input, shape index: {}]   ;;  %s10243_s6 = inlined_call_operand.vmem [shape: f32[1,16], index: 6, kind: input, shape index: {}]   ;;  %s10244_s7 = inlined_call_operand.vmem [shape: bf16[4,16], index: 7, kind: input, shape index: {}]   ;;  %s10245_s8 = inlined_call_operand.vmem [shape: f32[1,16], index: 8, kind: input, shape index: {}]   ;;  %s10246_s9 = inlined_call_operand.hbm [shape: f32[2,16,16,16], index: 9, kind: output, shape index: {}]  }
   0x1   :  { %16 = vsyncpa [#allocation4 + $0x1], 0  ;;  %s8241_s30 = smov 0   ;;  %s8243_s10 = smov 0  }
   0x2   :  { %s8245_s11 = smov 0   ;;  %s8247_s12 = smov 0  }
   0x3 LB: > { %s8262_s13 = sadd.s32 4294967295, %s8185_s12   ;;  %s6501_s14 = sadd.s32 4294967294, %s8185_s12   ;;  %s8185_s12 = sphi %s8247_s12, %s10342_s12   ;;  %s8181_s11 = sphi %s8245_s11, %s10341_s11   ;;  %s8177_s10 = sphi %s8243_s10, %s10340_s10   ;;  %s8173_s30 = sphi %s8241_s30, %s10339_s30  }
   0x4   : > { %s8266_s15 = sadd.s32 1, %s8185_s12   ;;  %s223_s16 = sadd.s32 1, %s8181_s11 }
   0x5   : > { %s220_s17 = ssub.s32 %s8185_s12, %s8266_s15  ;;  %p233_p0 = scmp.ne.s32.totalorder %s8181_s11, %s8177_s10 }
   0x6   : > { %p221_p1 = scmp.eq.s32.totalorder %s220_s17, 0  ;;  %p234_p2 = scmp.eq.s32.totalorder %s8262_s13, 1 }
   0x7   : > { %p239_p3 = scmp.ne.s32.totalorder %s8177_s10, %s8173_s30  ;;  %p240_p4 = scmp.eq.s32.totalorder %s6501_s14, 1 }
   0x8   : > { %s8277_s18 = scalar_select %p221_p1, %s8181_s11, %s223_s16  }
   0x9   : > { %p8279_p5 = por %p234_p2, %p233_p0  ;;  %p8283_p6 = por %p240_p4, %p239_p3 }
   0xa   : > { %p6504_p7 = scmp.ge.s32.totalorder %s8185_s12, 1  ;;  %p290_p8 = scmp.lt.s32.totalorder %s8185_s12, 3 }
   0xc   : > { %p291_p9 = pnand %p6504_p7, %p290_p8 }
   0xe   : > { %294 = sbr.rel (%p291_p9) target bundleno = 1242 (0x4da), region = 56 }
  0x15   : > { %v364_v0 = vld [vmem:[%s10238_s1] sm:$0x3]  ;;  %vm501_vm0 = vcmask 1041408   ;;  %p326_p10 = scmp.lt.s32.totalorder %s8262_s13, 1  ;;  %vm452_vm1 = vcmask 31744   ;;  %vm698_vm2 = vcmask 60416  }
  0x16   : > { %7955 = vmatprep.subr.msk.bf16.mxu0 %vm501_vm0, %v364_v0  ;;  %v503_v1 = vsel %vm501_vm0, %v364_v0, 0  ;;  %v8187_v18 = vmov 0   ;;  %vm701_vm3 = vcmask 57344   ;;  %vm1826_vm4 = vcmask 1043456   ;;  %v6687_v19 = vld [vmem:[%s10240_s3 + $0xc] sm:$0xf] }
  0x17   : > { %7196 = vmatpush3.bf16.msra.mxu0 %v503_v1  ;;  %s327_s23 = scalar_select %p326_p10, %s8262_s13, 1  ;;  %706 = vst.msk [vmem:[#allocation2 + $0x18] sm:$0xf] %vm698_vm2, %v8187_v18  ;;  %699 = vst.msk [vmem:[#allocation2] sm:$0xf] %vm698_vm2, %v8187_v18  ;;  %7959 = vmatprep.subr.msk.bf16.mxu1 %vm1826_vm4, %v6687_v19  ;;  %v2903_v20 = vsel %vm1826_vm4, %v6687_v19, 0 }
  0x18   : > { %700 = vst.msk [vmem:[#allocation2 + $0x4] sm:$0xf] %vm698_vm2, %v8187_v18  ;;  %703 = vst.msk [vmem:[#allocation2 + $0xc] sm:$0xf] %vm698_vm2, %v8187_v18  ;;  %7332 = vmatpush3.bf16.msra.mxu1 %v2903_v20  ;;  %v6573_v31 = vld [vmem:[%s10240_s3 + $0x4] sm:$0xf] }
  0x19   : > { %s6957_s24 = sshll.u32 %s327_s23, 7  ;;  %704 = vst.msk [vmem:[#allocation2 + $0x10] sm:$0xf] %vm698_vm2, %v8187_v18  ;;  %707 = vst.msk [vmem:[#allocation2 + $0x1c] sm:$0xf] %vm698_vm2, %v8187_v18  ;;  %7956 = vmatprep.subr.msk.bf16.mxu0 %vm1826_vm4, %v6573_v31  ;;  %v1828_v33 = vsel %vm1826_vm4, %v6573_v31, 0 }
  0x1a   : > { %s8299_s27 = scalar_lea.vmem %s10237_s0, %s6957_s24  ;;  %709 = vst.msk [vmem:[#allocation2 + $0x24] sm:$0xf] %vm698_vm2, %v8187_v18  ;;  %710 = vst.msk [vmem:[#allocation2 + $0x28] sm:$0xf] %vm698_vm2, %v8187_v18  ;;  %vm1340_vm5 = vsmask.f32 3328 }
  0x1b   : > { %v8009_v2 = vld [vmem:[%s8299_s27] sm:$0xff]   ;;  %v8010_v3 = vld [vmem:[%s8299_s27 + $0x8] sm:$0xff]   ;;  %v8011_v4 = vld [vmem:[%s8299_s27 + $0x10] sm:$0xff]   ;;  %712 = vst.msk [vmem:[#allocation2 + $0x30] sm:$0xf] %vm698_vm2, %v8187_v18  ;;  %vm1777_vm8 = vcmask 64512  }
  0x1c   : > { %7197 = vmatprep.mubr.msk.bf16.mxu0 %vm452_vm1, %v8009_v2  ;;  %v8012_v5 = vld [vmem:[%s8299_s27 + $0x18] sm:$0xff]   ;;  %v8013_v6 = vld [vmem:[%s8299_s27 + $0x20] sm:$0xff]   ;;  %v8014_v7 = vld [vmem:[%s8299_s27 + $0x28] sm:$0xff]   ;;  %713 = vst.msk [vmem:[#allocation2 + $0x34] sm:$0xf] %vm698_vm2, %v8187_v18  ;;  %vm2331_vm15 = vcmask 1042432  }
  0x1d   : > { %7198 = vmatmul.mubr.msk.bf16.vlgmr.msra.gmra.mrb[0].mxu0 %vm452_vm1, %v8010_v3  ;;  %v8015_v8 = vld [vmem:[%s8299_s27 + $0x30] sm:$0xff]   ;;  %v8016_v9 = vld [vmem:[%s8299_s27 + $0x38] sm:$0xff]   ;;  %v8017_v10 = vld [vmem:[%s8299_s27 + $0x40] sm:$0xff]   ;;  %715 = vst.msk [vmem:[#allocation2 + $0x3c] sm:$0xf] %vm698_vm2, %v8187_v18  ;;  %s323_s16 = sand.u32 1, %s8177_s10  }
  0x1e   : > { %7201 = vmatprep.mubr.msk.bf16.mxu0 %vm452_vm1, %v8011_v4  ;;  %v8018_v11 = vld [vmem:[%s8299_s27 + $0x48] sm:$0xff]   ;;  %v8019_v12 = vld [vmem:[%s8299_s27 + $0x50] sm:$0xff]   ;;  %v8020_v13 = vld [vmem:[%s8299_s27 + $0x58] sm:$0xff]   ;;  %716 = vst.msk [vmem:[#allocation2 + $0x40] sm:$0xf] %vm698_vm2, %v8187_v18  ;;  %7230 = vmatpush3.bf16.msra.mxu0 %v1828_v33  ;;  %s6505_s17 = sshll.u32 %s323_s16, 8 }
  0x1f   : > { %v8021_v14 = vld [vmem:[%s8299_s27 + $0x60] sm:$0xff]   ;;  %v8022_v15 = vld [vmem:[%s8299_s27 + $0x68] sm:$0xff]   ;;  %v8023_v16 = vld [vmem:[%s8299_s27 + $0x70] sm:$0xff]   ;;  %718 = vst.msk [vmem:[#allocation2 + $0x48] sm:$0xf] %vm698_vm2, %v8187_v18  ;;  %s6990_s21 = sshll.u32 %s8262_s13, 12 }
  0x20   : > { %v8024_v17 = vld [vmem:[%s8299_s27 + $0x78] sm:$0xff]   ;;  %719 = vst.msk [vmem:[#allocation2 + $0x4c] sm:$0xf] %vm698_vm2, %v8187_v18  ;;  %721 = vst.msk [vmem:[#allocation2 + $0x54] sm:$0xf] %vm698_vm2, %v8187_v18  ;;  %s10184_s25 = scalar_lea.hbm %s10246_s9, %s6990_s21  ;;  %s10196_s13 = scalar_lea.sflag [#allocation4], %s323_s16 }
  0x21   : > { %722 = vst.msk [vmem:[#allocation2 + $0x58] sm:$0xf] %vm698_vm2, %v8187_v18  ;;  %724 = vst.msk [vmem:[#allocation2 + $0x60] sm:$0xf] %vm698_vm2, %v8187_v18  ;;  %v1291_v21 = vld [vmem:[#allocation2] sm:$0xf] }
  0x22   : > { %725 = vst.msk [vmem:[#allocation2 + $0x64] sm:$0xf] %vm698_vm2, %v8187_v18  ;;  %727 = vst.msk [vmem:[#allocation2 + $0x6c] sm:$0xf] %vm698_vm2, %v8187_v18  ;;  %v1292_v22 = vld [vmem:[#allocation2 + $0x4] sm:$0xf] }
  0x23   : > { %728 = vst.msk [vmem:[#allocation2 + $0x70] sm:$0xf] %vm698_vm2, %v8187_v18  ;;  %730 = vst.msk [vmem:[#allocation2 + $0x78] sm:$0xf] %vm698_vm2, %v8187_v18  ;;  %v1344_v23 = vshrl.u32 %v1291_v21, 16  ;;  %v1347_v24 = vshll.u32 %v1291_v21, 16 }
  0x24   : > { %731 = vst.msk [vmem:[#allocation2 + $0x7c] sm:$0xf] %vm698_vm2, %v8187_v18  ;;  %733 = vst.msk [vmem:[#allocation2 + $0x84] sm:$0xf] %vm698_vm2, %v8187_v18  ;;  %v1353_v25 = vshll.u32 %v1292_v22, 16  ;;  %v1357_v26 = vshrl.u32 %v1292_v22, 16 }
  0x25   : > { %7202 = vmatmul.mubr.msk.bf16.gmra.mrb[4].mxu0 %vm452_vm1, %v8012_v5  ;;  %734 = vst.msk [vmem:[#allocation2 + $0x88] sm:$0xf] %vm698_vm2, %v8187_v18  ;;  %736 = vst.msk [vmem:[#allocation2 + $0x90] sm:$0xf] %vm698_vm2, %v8187_v18  ;;  %v1346_v27 = vrot.slane %v1344_v23, 4  ;;  %v1349_v28 = vrot.slane %v1347_v24, 5 }
  0x26   : > { %7205 = vmatprep.mubr.msk.bf16.mxu0 %vm452_vm1, %v8013_v6  ;;  %737 = vst.msk [vmem:[#allocation2 + $0x94] sm:$0xf] %vm698_vm2, %v8187_v18  ;;  %739 = vst.msk [vmem:[#allocation2 + $0x9c] sm:$0xf] %vm698_vm2, %v8187_v18  ;;  %v1355_v29 = vrot.slane %v1353_v25, 5  ;;  %v1359_v30 = vrot.slane %v1357_v26, 4 }
  0x27   : > { %740 = vst.msk [vmem:[#allocation2 + $0xa0] sm:$0xf] %vm698_vm2, %v8187_v18  ;;  %742 = vst.msk [vmem:[#allocation2 + $0xa8] sm:$0xf] %vm698_vm2, %v8187_v18  ;;  %v1350_v34 = vor.u32 %v1349_v28, %v1346_v27  ;;  %vm1341_vm6 = vsmask.f32 7440 }
  0x28   : > { %743 = vst.msk [vmem:[#allocation2 + $0xac] sm:$0xf] %vm698_vm2, %v8187_v18  ;;  %745 = vst.msk [vmem:[#allocation2 + $0xb4] sm:$0xf] %vm698_vm2, %v8187_v18  ;;  %v1360_v35 = vor.u32 %v1359_v30, %v1355_v29  ;;  %v8408_v44 = vld [vmem:[%s10240_s3 + $0x10] sm:$0xf] }
  0x29   : > { %746 = vst.msk [vmem:[#allocation2 + $0xb8] sm:$0xf] %vm698_vm2, %v8187_v18  ;;  %748 = vst.msk [vmem:[#allocation2 + $0xc0] sm:$0xf] %vm698_vm2, %v8187_v18  ;;  %v1351_v37 = vrot.slane %v1350_v34, 4  ;;  %7960 = vmatprep.subr.msk.bf16.mxu1 %vm1826_vm4, %v8408_v44  ;;  %s8188_s28 = smov [#allocation3]  }
  0x2a   : > { %749 = vst.msk [vmem:[#allocation2 + $0xc4] sm:$0xf] %vm698_vm2, %v8187_v18  ;;  %751 = vst.msk [vmem:[#allocation2 + $0xcc] sm:$0xf] %vm698_vm2, %v8187_v18  ;;  %v1361_v38 = vrot.slane %v1360_v35, 4  ;;  %s8127_s29 = sshll.u32 %s8188_s28, 4  ;;  %s8128_s29 = int_to_ptr.vmem [resolvable:$false] %s8127_s29 }
  0x2b   : > { %752 = vst.msk [vmem:[#allocation2 + $0xd0] sm:$0xf] %vm698_vm2, %v8187_v18  ;;  %vm8397_vm7 = vmor %vm1340_vm5, %vm1341_vm6  ;;  %v8416_v45 = vld [vmem:[%s10239_s2] ss:$0 sm:$0xff]  ;;  %vm1175_vm9 = vsmask.f32 7938 }
  0x2c   : > { %708 = vst.msk [vmem:[#allocation2 + $0x20] sm:$0x1] %vm701_vm3, %v8187_v18  ;;  %702 = vst.msk [vmem:[#allocation2 + $0x8] sm:$0x1] %vm701_vm3, %v8187_v18  ;;  %v1356_v41 = vsel %vm8397_vm7, %v1351_v37, %v1355_v29  ;;  %vm850_vm10 = vsmask.f32 256 }
  0x2d   : > { %7206 = vmatmul.mubr.msk.bf16.gmra.mrb[8].mxu0 %vm452_vm1, %v8014_v7  ;;  %705 = vst.msk [vmem:[#allocation2 + $0x14] sm:$0x1] %vm701_vm3, %v8187_v18  ;;  %711 = vst.msk [vmem:[#allocation2 + $0x2c] sm:$0x1] %vm701_vm3, %v8187_v18  ;;  %vm851_vm11 = vsmask.f32 4368 }
  0x2e   : > { %7209 = vmatprep.mubr.msk.bf16.mxu0 %vm452_vm1, %v8015_v8  ;;  %714 = vst.msk [vmem:[#allocation2 + $0x38] sm:$0x1] %vm701_vm3, %v8187_v18  ;;  %717 = vst.msk [vmem:[#allocation2 + $0x44] sm:$0x1] %vm701_vm3, %v8187_v18  ;;  %s8129_s14 = scalar_lea.vmem %s8128_s29, 8192 }
  0x2f   : > { %720 = vst.msk [vmem:[#allocation2 + $0x50] sm:$0x1] %vm701_vm3, %v8187_v18  ;;  %723 = vst.msk [vmem:[#allocation2 + $0x5c] sm:$0x1] %vm701_vm3, %v8187_v18 }
  0x30   : > { %726 = vst.msk [vmem:[#allocation2 + $0x68] sm:$0x1] %vm701_vm3, %v8187_v18  ;;  %729 = vst.msk [vmem:[#allocation2 + $0x74] sm:$0x1] %vm701_vm3, %v8187_v18 }
  0x31   : > { %732 = vst.msk [vmem:[#allocation2 + $0x80] sm:$0x1] %vm701_vm3, %v8187_v18  ;;  %735 = vst.msk [vmem:[#allocation2 + $0x8c] sm:$0x1] %vm701_vm3, %v8187_v18 }
  0x32   : > { %738 = vst.msk [vmem:[#allocation2 + $0x98] sm:$0x1] %vm701_vm3, %v8187_v18  ;;  %741 = vst.msk [vmem:[#allocation2 + $0xa4] sm:$0x1] %vm701_vm3, %v8187_v18 }
  0x33   : > { %744 = vst.msk [vmem:[#allocation2 + $0xb0] sm:$0x1] %vm701_vm3, %v8187_v18  ;;  %747 = vst.msk [vmem:[#allocation2 + $0xbc] sm:$0x1] %vm701_vm3, %v8187_v18  ;;  %v1324_v32 = vld [vmem:[#allocation2 + $0x8] sm:$0x1] }
  0x34   : > { %750 = vst.msk [vmem:[#allocation2 + $0xc8] sm:$0x1] %vm701_vm3, %v8187_v18  ;;  %753 = vst.msk [vmem:[#allocation2 + $0xd4] sm:$0x1] %vm701_vm3, %v8187_v18  ;;  %v1363_v36 = vshll.u32 %v1324_v32, 16 }
  0x35   : > { %7210 = vmatmul.mubr.msk.bf16.gmra.mrb[12].mxu0 %vm452_vm1, %v8016_v9  ;;  %vm8425_vm12 = vmand %vm698_vm2, %vm1175_vm9  ;;  %v1186_v9 = vld [vmem:[#allocation2 + $0x18] sm:$0xf]  ;;  %v1190_v25 = vld [vmem:[#allocation2 + $0x20] sm:$0x1] }
  0x36   : > { %7213 = vmatprep.mubr.msk.bf16.mxu0 %vm452_vm1, %v8017_v10  ;;  %v1365_v40 = vrot.slane %v1363_v36, 5  ;;  %vm8432_vm13 = vmor %vm850_vm10, %vm851_vm11  ;;  %v1183_v31 = vld [vmem:[#allocation2 + $0x14] sm:$0x1] }
  0x37   : > { %vm8438_vm14 = vmand %vm701_vm3, %vm850_vm10 }
  0x38   : > { %v1366_v42 = vsel %vm8397_vm7, %v1361_v38, %v1365_v40 }
  0x39   : > { %v6574_v43 = vcombine.low %v1356_v41, %v1366_v42 }
  0x3d   : > { %7214 = vmatmul.mubr.msk.bf16.gmra.mrb[16].mxu0 %vm452_vm1, %v8018_v11 }
  0x3e   : > { %7217 = vmatprep.mubr.msk.bf16.mxu0 %vm452_vm1, %v8019_v12 }
  0x45   : > { %7218 = vmatmul.mubr.msk.bf16.gmra.mrb[20].mxu0 %vm452_vm1, %v8020_v13 }
  0x46   : > { %7221 = vmatprep.mubr.msk.bf16.mxu0 %vm452_vm1, %v8021_v14 }
  0x4d   : > { %7222 = vmatmul.mubr.msk.bf16.gmra.mrb[24].mxu0 %vm452_vm1, %v8022_v15 }
  0x4e   : > { %7225 = vmatprep.mubr.msk.bf16.mxu0 %vm452_vm1, %v8023_v16 }
  0x55   : > { %7226 = vmatmul.mubr.msk.bf16.gmra.mrb[28].mxu0 %vm452_vm1, %v8024_v17  ;;  %v1177_v17 = vld [vmem:[#allocation2 + $0xc] sm:$0xf] }
  0x56   : > { %7231 = vmatprep.mubr.msk.bf16.mxu0 %vm1777_vm8, %v6574_v43 }
  0xf0   : > { %v7199_v46 = vpop.f32.mrb[0].mxu0 }
  0xf1   : > { %v548_v47 = vadd.f32 %v7199_v46, %v8416_v45  ;;  %v539_v48 = vpop.f32.mrb[1].mxu0 }
  0xf2   : > { %v540_v49 = vadd.f32 %v8416_v45, %v539_v48  ;;  %v7200_v50 = vpop.f32.mrb[2].mxu0 }
  0xf3   : > { %v668_v51 = vmax.f32 %v548_v47, 0.0  ;;  %v551_v52 = vadd.f32 %v7200_v50, %v8416_v45  ;;  %v542_v53 = vpop.f32.mrb[3].mxu0 }
  0xf4   : > { %v666_v54 = vmax.f32 %v540_v49, 0.0  ;;  %v543_v55 = vadd.f32 %v8416_v45, %v542_v53  ;;  %v1200_v53 = vld [vmem:[#allocation2 + $0x30] sm:$0xf] }
  0xf5   : > { %v6960_v56 = vpack.c.bf16 %v668_v51, %v668_v51  ;;  %v669_v57 = vmax.f32 %v551_v52, 0.0 }
  0xf6   : > { %v6958_v58 = vpack.c.bf16 %v666_v54, %v666_v54  ;;  %v667_v59 = vmax.f32 %v543_v55, 0.0 }
  0xf7   : > { %v871_v60 = vshrl.u32 %v6960_v56, 16  ;;  %v6961_v61 = vpack.c.bf16 %v669_v57, %v669_v57  ;;  %v874_v62 = vshll.u32 %v6960_v56, 16 }
  0xf8   : > { %v854_v63 = vshrl.u32 %v6958_v58, 16  ;;  %v857_v0 = vshll.u32 %v6958_v58, 16  ;;  %v6959_v1 = vpack.c.bf16 %v667_v59, %v667_v59  ;;  %v7203_v2 = vpop.f32.mrb[4].mxu0  ;;  %v3629_v58 = vsel %vm1826_vm4, %v8408_v44, 0 }
  0xf9   : > { %v873_v3 = vrot.slane %v871_v60, 7  ;;  %v879_v4 = vshrl.u32 %v6961_v61, 16  ;;  %v882_v5 = vshll.u32 %v6961_v61, 16  ;;  %v564_v6 = vadd.f32 %v7203_v2, %v8416_v45  ;;  %v555_v7 = vpop.f32.mrb[5].mxu0  ;;  %v1193_v61 = vld [vmem:[#allocation2 + $0x24] sm:$0xf] }
  0xfa   : > { %v856_v10 = vrot.slane %v854_v63, 7  ;;  %v862_v11 = vshrl.u32 %v6959_v1, 16  ;;  %v865_v12 = vshll.u32 %v6959_v1, 16  ;;  %v556_v13 = vadd.f32 %v8416_v45, %v555_v7  ;;  %v7204_v14 = vpop.f32.mrb[6].mxu0 }
  0xfb   : > { %v876_v15 = vor.u32 %v874_v62, %v873_v3  ;;  %v877_v16 = vrot.slane %v873_v3, 4  ;;  %v881_v19 = vrot.slane %v879_v4, 7  ;;  %v672_v20 = vmax.f32 %v564_v6, 0.0  ;;  %v558_v21 = vpop.f32.mrb[7].mxu0 }
  0xfc   : > { %v859_v22 = vor.u32 %v857_v0, %v856_v10  ;;  %v860_v23 = vrot.slane %v856_v10, 4  ;;  %v864_v26 = vrot.slane %v862_v11, 7  ;;  %v670_v27 = vmax.f32 %v556_v13, 0.0 }
  0xfd   : > { %v1187_v28 = vsel %vm8425_vm12, %v876_v15, %v1186_v9  ;;  %v884_v29 = vor.u32 %v882_v5, %v881_v19  ;;  %v886_v30 = vrot.slane %v881_v19, 4  ;;  %v6964_v32 = vpack.c.bf16 %v672_v20, %v672_v20  ;;  %v1197_v19 = vld [vmem:[#allocation2 + $0x2c] sm:$0x1] }
  0xfe   : > { %1188 = vst [vmem:[#allocation2 + $0x18] sm:$0xf] %v1187_v28  ;;  %v1178_v33 = vsel %vm8425_vm12, %v859_v22, %v1177_v17  ;;  %v867_v34 = vor.u32 %v865_v12, %v864_v26  ;;  %v869_v35 = vrot.slane %v864_v26, 4  ;;  %v6962_v36 = vpack.c.bf16 %v670_v27, %v670_v27  ;;  %v1204_v17 = vld [vmem:[#allocation2 + $0x38] sm:$0x1] }
  0xff   : > { %1179 = vst [vmem:[#allocation2 + $0xc] sm:$0xf] %v1178_v33  ;;  %v885_v37 = vsel %vm8432_vm13, %v877_v16, %v884_v29  ;;  %v1191_v38 = vsel %vm8438_vm14, %v886_v30, %v1190_v25  ;;  %v905_v40 = vshrl.u32 %v6964_v32, 16  ;;  %v908_v43 = vshll.u32 %v6964_v32, 16  ;;  %v1214_v29 = vld [vmem:[#allocation2 + $0x48] sm:$0xf] }
 0x100   : > { %1189 = vst.msk [vmem:[#allocation2 + $0x1c] sm:$0xf] %vm698_vm2, %v885_v37  ;;  %1192 = vst [vmem:[#allocation2 + $0x20] sm:$0x1] %v1191_v38  ;;  %v868_v41 = vsel %vm8432_vm13, %v860_v23, %v867_v34  ;;  %v1184_v42 = vsel %vm8438_vm14, %v869_v35, %v1183_v31  ;;  %v888_v46 = vshrl.u32 %v6962_v36, 16  ;;  %v7207_v47 = vpop.f32.mrb[8].mxu0  ;;  %v567_v49 = vadd.f32 %v7204_v14, %v8416_v45 }
 0x101   : > { %1180 = vst.msk [vmem:[#allocation2 + $0x10] sm:$0xf] %vm698_vm2, %v868_v41  ;;  %1185 = vst [vmem:[#allocation2 + $0x14] sm:$0x1] %v1184_v42  ;;  %v8456_v48 = vrot.slane %v905_v40, 7  ;;  %v559_v50 = vadd.f32 %v8416_v45, %v558_v21  ;;  %v580_v51 = vadd.f32 %v7207_v47, %v8416_v45  ;;  %v571_v52 = vpop.f32.mrb[9].mxu0 }
 0x102   : > { %v8461_v54 = vrot.slane %v888_v46, 7  ;;  %v891_v55 = vshll.u32 %v6962_v36, 16  ;;  %v572_v56 = vadd.f32 %v8416_v45, %v571_v52  ;;  %v7208_v57 = vpop.f32.mrb[10].mxu0  ;;  %v673_v62 = vmax.f32 %v567_v49, 0.0  ;;  %v1207_v46 = vld [vmem:[#allocation2 + $0x3c] sm:$0xf] }
 0x103   : > { %v910_v59 = vor.u32 %v908_v43, %v8456_v48  ;;  %v911_v60 = vrot.slane %v8456_v48, 4  ;;  %v671_v63 = vmax.f32 %v559_v50, 0.0  ;;  %v574_v0 = vpop.f32.mrb[11].mxu0  ;;  %v676_v3 = vmax.f32 %v580_v51, 0.0 }
 0x104   : > { %v893_v1 = vor.u32 %v891_v55, %v8461_v54  ;;  %v894_v2 = vrot.slane %v8461_v54, 4  ;;  %v674_v4 = vmax.f32 %v572_v56, 0.0  ;;  %v6965_v6 = vpack.c.bf16 %v673_v62, %v673_v62 }
 0x105   : > { %v1201_v5 = vsel %vm8425_vm12, %v910_v59, %v1200_v53  ;;  %v6963_v7 = vpack.c.bf16 %v671_v63, %v671_v63  ;;  %v583_v44 = vadd.f32 %v7208_v57, %v8416_v45  ;;  %v6968_v10 = vpack.c.bf16 %v676_v3, %v676_v3 }
 0x106   : > { %1202 = vst [vmem:[#allocation2 + $0x30] sm:$0xf] %v1201_v5  ;;  %v1194_v9 = vsel %vm8425_vm12, %v893_v1, %v1193_v61  ;;  %v6966_v11 = vpack.c.bf16 %v674_v4, %v674_v4  ;;  %v575_v12 = vadd.f32 %v8416_v45, %v574_v0  ;;  %v913_v13 = vshrl.u32 %v6965_v6, 16  ;;  %v6769_v0 = vld [vmem:[%s10240_s3 + $0x14] sm:$0xf] }
 0x107   : > { %1195 = vst [vmem:[#allocation2 + $0x24] sm:$0xf] %v1194_v9  ;;  %v916_v14 = vshll.u32 %v6965_v6, 16  ;;  %v896_v15 = vshrl.u32 %v6963_v7, 16  ;;  %v899_v16 = vshll.u32 %v6963_v7, 16  ;;  %v939_v20 = vshrl.u32 %v6968_v10, 16 }
 0x108   : > { %v942_v21 = vshll.u32 %v6968_v10, 16  ;;  %v922_v22 = vshrl.u32 %v6966_v11, 16  ;;  %v925_v23 = vshll.u32 %v6966_v11, 16  ;;  %v7211_v25 = vpop.f32.mrb[12].mxu0  ;;  %v8025_v26 = vld [vmem:[#allocation2 + $0xc] sm:$0xff]   ;;  %v915_v27 = vrot.slane %v913_v13, 7 }
 0x109   : > { %v898_v28 = vrot.slane %v896_v15, 7  ;;  %v677_v30 = vmax.f32 %v583_v44, 0.0  ;;  %v675_v31 = vmax.f32 %v575_v12, 0.0  ;;  %v587_v32 = vpop.f32.mrb[13].mxu0  ;;  %v8026_v33 = vld [vmem:[#allocation2 + $0x18] sm:$0xff]   ;;  %v8476_v34 = vrot.slane %v939_v20, 7  ;;  %7333 = vmatprep.mubr.msk.bf16.mxu1 %vm1777_vm8, %v8025_v26 }
 0x10a   : > { %v8478_v35 = vrot.slane %v922_v22, 7  ;;  %v596_v36 = vadd.f32 %v7211_v25, %v8416_v45  ;;  %v588_v37 = vadd.f32 %v8416_v45, %v587_v32  ;;  %v7212_v38 = vpop.f32.mrb[14].mxu0  ;;  %v918_v40 = vor.u32 %v916_v14, %v915_v27  ;;  %7334 = vmatmul.mubr.msk.bf16.vlgmr.msra.gmra.mrb[0].mxu1 %vm1777_vm8, %v8026_v33  ;;  %v1218_v6 = vld [vmem:[#allocation2 + $0x50] sm:$0x1]  ;;  %v1211_v14 = vld [vmem:[#allocation2 + $0x44] sm:$0x1] }
 0x10b   : > { %v920_v41 = vrot.slane %v915_v27, 4  ;;  %v901_v42 = vor.u32 %v899_v16, %v898_v28  ;;  %v903_v43 = vrot.slane %v898_v28, 4  ;;  %v590_v47 = vpop.f32.mrb[15].mxu0  ;;  %v944_v48 = vor.u32 %v942_v21, %v8476_v34  ;;  %7366 = vmatpush3.bf16.msra.mxu1 %v3629_v58 }
 0x10c   : > { %v945_v49 = vrot.slane %v8476_v34, 4  ;;  %v927_v50 = vor.u32 %v925_v23, %v8478_v35  ;;  %v928_v51 = vrot.slane %v8478_v35, 4  ;;  %v919_v52 = vsel %vm8432_vm13, %v911_v60, %v918_v40  ;;  %7961 = vmatprep.subr.msk.bf16.mxu1 %vm1826_vm4, %v6769_v0 }
 0x10d   : > { %v1205_v53 = vsel %vm8438_vm14, %v920_v41, %v1204_v17  ;;  %v902_v54 = vsel %vm8432_vm13, %v894_v2, %v901_v42  ;;  %v1198_v55 = vsel %vm8438_vm14, %v903_v43, %v1197_v19  ;;  %1203 = vst.msk [vmem:[#allocation2 + $0x34] sm:$0xf] %vm698_vm2, %v919_v52  ;;  %v1215_v56 = vsel %vm8425_vm12, %v944_v48, %v1214_v29  ;;  %v1228_v29 = vld [vmem:[#allocation2 + $0x60] sm:$0xf] }
 0x10e   : > { %1206 = vst [vmem:[#allocation2 + $0x38] sm:$0x1] %v1205_v53  ;;  %1196 = vst.msk [vmem:[#allocation2 + $0x28] sm:$0xf] %vm698_vm2, %v902_v54  ;;  %v1208_v57 = vsel %vm8425_vm12, %v927_v50, %v1207_v46  ;;  %v6969_v58 = vpack.c.bf16 %v677_v30, %v677_v30  ;;  %v6967_v59 = vpack.c.bf16 %v675_v31, %v675_v31  ;;  %v680_v60 = vmax.f32 %v596_v36, 0.0 }
 0x10f   : > { %1199 = vst [vmem:[#allocation2 + $0x2c] sm:$0x1] %v1198_v55  ;;  %1216 = vst [vmem:[#allocation2 + $0x48] sm:$0xf] %v1215_v56  ;;  %v678_v61 = vmax.f32 %v588_v37, 0.0  ;;  %v599_v62 = vadd.f32 %v7212_v38, %v8416_v45  ;;  %v591_v63 = vadd.f32 %v8416_v45, %v590_v47 }
 0x110   : > { %1209 = vst [vmem:[#allocation2 + $0x3c] sm:$0xf] %v1208_v57  ;;  %v947_v1 = vshrl.u32 %v6969_v58, 16  ;;  %v950_v2 = vshll.u32 %v6969_v58, 16  ;;  %v930_v3 = vshrl.u32 %v6967_v59, 16  ;;  %v933_v4 = vshll.u32 %v6967_v59, 16 }
 0x111   : > { %v7215_v5 = vpop.f32.mrb[16].mxu0  ;;  %v6972_v7 = vpack.c.bf16 %v680_v60, %v680_v60  ;;  %v6970_v44 = vpack.c.bf16 %v678_v61, %v678_v61  ;;  %v681_v9 = vmax.f32 %v599_v62, 0.0  ;;  %v679_v10 = vmax.f32 %v591_v63, 0.0  ;;  %v1221_v30 = vld [vmem:[#allocation2 + $0x54] sm:$0xf] }
 0x112   : > { %v603_v11 = vpop.f32.mrb[17].mxu0  ;;  %v949_v12 = vrot.slane %v947_v1, 7  ;;  %v932_v13 = vrot.slane %v930_v3, 7  ;;  %v612_v15 = vadd.f32 %v7215_v5, %v8416_v45  ;;  %v1323_v31 = vld [vmem:[%s10240_s3] sm:$0xf] }
 0x113   : > { %v604_v16 = vadd.f32 %v8416_v45, %v603_v11  ;;  %v7216_v17 = vpop.f32.mrb[18].mxu0  ;;  %v973_v19 = vshrl.u32 %v6972_v7, 16  ;;  %v976_v20 = vshll.u32 %v6972_v7, 16  ;;  %v956_v21 = vshrl.u32 %v6970_v44, 16  ;;  %7957 = vmatprep.subr.msk.bf16.mxu0 %vm1826_vm4, %v1323_v31  ;;  %v1232_v61 = vld [vmem:[#allocation2 + $0x68] sm:$0x1] }
 0x114   : > { %v959_v22 = vshll.u32 %v6970_v44, 16  ;;  %v606_v23 = vpop.f32.mrb[19].mxu0  ;;  %v952_v25 = vor.u32 %v950_v2, %v949_v12  ;;  %v954_v26 = vrot.slane %v949_v12, 4  ;;  %v935_v27 = vor.u32 %v933_v4, %v932_v13  ;;  %v8028_v42 = vld [vmem:[#allocation2 + $0x30] sm:$0xff]   ;;  %v1225_v2 = vld [vmem:[#allocation2 + $0x5c] sm:$0x1] }
 0x115   : > { %v937_v28 = vrot.slane %v932_v13, 4  ;;  %v975_v32 = vrot.slane %v973_v19, 7  ;;  %v958_v33 = vrot.slane %v956_v21, 7  ;;  %v6973_v34 = vpack.c.bf16 %v681_v9, %v681_v9  ;;  %v8027_v36 = vld [vmem:[#allocation2 + $0x24] sm:$0xff]  }
 0x116   : > { %v6971_v35 = vpack.c.bf16 %v679_v10, %v679_v10  ;;  %v953_v37 = vsel %vm8432_vm13, %v945_v49, %v952_v25  ;;  %v1219_v38 = vsel %vm8438_vm14, %v954_v26, %v1218_v6  ;;  %v936_v40 = vsel %vm8432_vm13, %v928_v51, %v935_v27  ;;  %7337 = vmatprep.mubr.msk.bf16.mxu1 %vm1777_vm8, %v8027_v36  ;;  %v1293_v49 = vld [vmem:[#allocation2 + $0xc] sm:$0xf]  ;;  %v1325_v25 = vld [vmem:[#allocation2 + $0x14] sm:$0x1] }
 0x117   : > { %v1212_v41 = vsel %vm8438_vm14, %v937_v28, %v1211_v14  ;;  %1217 = vst.msk [vmem:[#allocation2 + $0x4c] sm:$0xf] %vm698_vm2, %v953_v37  ;;  %1220 = vst [vmem:[#allocation2 + $0x50] sm:$0x1] %v1219_v38  ;;  %v978_v43 = vor.u32 %v976_v20, %v975_v32  ;;  %v979_v46 = vrot.slane %v975_v32, 4  ;;  %v961_v47 = vor.u32 %v959_v22, %v958_v33 }
 0x118   : > { %1210 = vst.msk [vmem:[#allocation2 + $0x40] sm:$0xf] %vm698_vm2, %v936_v40  ;;  %1213 = vst [vmem:[#allocation2 + $0x44] sm:$0x1] %v1212_v41  ;;  %v962_v48 = vrot.slane %v958_v33, 4  ;;  %v981_v50 = vshrl.u32 %v6973_v34, 16  ;;  %7338 = vmatmul.mubr.msk.bf16.gmra.mrb[4].mxu1 %vm1777_vm8, %v8028_v42  ;;  %v615_v63 = vadd.f32 %v7216_v17, %v8416_v45  ;;  %v607_v0 = vadd.f32 %v8416_v45, %v606_v23 }
 0x119   : > { %v984_v52 = vshll.u32 %v6973_v34, 16  ;;  %v964_v51 = vshrl.u32 %v6971_v35, 16  ;;  %v967_v53 = vshll.u32 %v6971_v35, 16  ;;  %v8526_v54 = vpop.f32.mrb[20].mxu0  ;;  %v1229_v55 = vsel %vm8425_vm12, %v978_v43, %v1228_v29  ;;  %v1242_v22 = vld [vmem:[#allocation2 + $0x78] sm:$0xf] }
 0x11a   : > { %v1222_v56 = vsel %vm8425_vm12, %v961_v47, %v1221_v30  ;;  %v684_v57 = vmax.f32 %v612_v15, 0.0  ;;  %v682_v58 = vmax.f32 %v604_v16, 0.0  ;;  %v8532_v59 = vpop.f32.mrb[21].mxu0  ;;  %1230 = vst [vmem:[#allocation2 + $0x60] sm:$0xf] %v1229_v55  ;;  %v983_v60 = vrot.slane %v981_v50, 7 }
 0x11b   : > { %1223 = vst [vmem:[#allocation2 + $0x54] sm:$0xf] %v1222_v56  ;;  %v966_v62 = vrot.slane %v964_v51, 7  ;;  %v8536_v1 = vpop.f32.mrb[22].mxu0  ;;  %v1368_v5 = vshrl.u32 %v1293_v49, 16  ;;  %v1371_v6 = vshll.u32 %v1293_v49, 16 }
 0x11c   : > { %v6976_v3 = vpack.c.bf16 %v684_v57, %v684_v57  ;;  %v6974_v4 = vpack.c.bf16 %v682_v58, %v682_v58  ;;  %v8538_v7 = vpop.f32.mrb[23].mxu0  ;;  %v986_v44 = vor.u32 %v984_v52, %v983_v60  ;;  %v988_v9 = vrot.slane %v983_v60, 4  ;;  %v1294_v16 = vld [vmem:[#allocation2 + $0x10] sm:$0xf]  ;;  %v1235_v23 = vld [vmem:[#allocation2 + $0x6c] sm:$0xf] }
 0x11d   : > { %v969_v10 = vor.u32 %v967_v53, %v966_v62  ;;  %v971_v11 = vrot.slane %v966_v62, 4  ;;  %v685_v29 = vmax.f32 %v615_v63, 0.0  ;;  %v683_v30 = vmax.f32 %v607_v0, 0.0  ;;  %v1295_v49 = vld [vmem:[#allocation2 + $0x18] sm:$0xf] }
 0x11e   : > { %v1007_v12 = vshrl.u32 %v6976_v3, 16  ;;  %v1010_v13 = vshll.u32 %v6976_v3, 16  ;;  %v990_v14 = vshrl.u32 %v6974_v4, 16  ;;  %v993_v15 = vshll.u32 %v6974_v4, 16  ;;  %v8030_v31 = vld [vmem:[#allocation2 + $0x48] sm:$0xff]  }
 0x11f   : > { %v987_v17 = vsel %vm8432_vm13, %v979_v46, %v986_v44  ;;  %v1233_v19 = vsel %vm8438_vm14, %v988_v9, %v1232_v61  ;;  %v970_v20 = vsel %vm8432_vm13, %v962_v48, %v969_v10  ;;  %v1226_v21 = vsel %vm8438_vm14, %v971_v11, %v1225_v2  ;;  %v8029_v26 = vld [vmem:[#allocation2 + $0x3c] sm:$0xff]   ;;  %v1239_v0 = vld [vmem:[#allocation2 + $0x74] sm:$0x1] }
 0x120   : > { %1231 = vst.msk [vmem:[#allocation2 + $0x64] sm:$0xf] %vm698_vm2, %v987_v17  ;;  %1234 = vst [vmem:[#allocation2 + $0x68] sm:$0x1] %v1233_v19  ;;  %v8550_v27 = vrot.slane %v1007_v12, 7  ;;  %v8552_v28 = vrot.slane %v990_v14, 7  ;;  %7341 = vmatprep.mubr.msk.bf16.mxu1 %vm1777_vm8, %v8029_v26  ;;  %v6977_v43 = vpack.c.bf16 %v685_v29, %v685_v29  ;;  %v6975_v46 = vpack.c.bf16 %v683_v30, %v683_v30 }
 0x121   : > { %1224 = vst.msk [vmem:[#allocation2 + $0x58] sm:$0xf] %vm698_vm2, %v970_v20  ;;  %1227 = vst [vmem:[#allocation2 + $0x5c] sm:$0x1] %v1226_v21  ;;  %v1370_v32 = vrot.slane %v1368_v5, 4  ;;  %v1373_v33 = vrot.slane %v1371_v6, 5  ;;  %7342 = vmatmul.mubr.msk.bf16.gmra.mrb[8].mxu1 %vm1777_vm8, %v8030_v31 }
 0x122   : > { %v1377_v34 = vshll.u32 %v1294_v16, 16  ;;  %v1381_v35 = vshrl.u32 %v1294_v16, 16  ;;  %v8555_v36 = vpop.f32.mrb[24].mxu0  ;;  %v1012_v37 = vor.u32 %v1010_v13, %v8550_v27  ;;  %v1013_v38 = vrot.slane %v8550_v27, 4  ;;  %v1296_v50 = vld [vmem:[#allocation2 + $0x1c] sm:$0xf] }
 0x123   : > { %v995_v40 = vor.u32 %v993_v15, %v8552_v28  ;;  %v996_v41 = vrot.slane %v8552_v28, 4  ;;  %v8562_v42 = vpop.f32.mrb[25].mxu0  ;;  %v1374_v47 = vor.u32 %v1373_v33, %v1370_v32  ;;  %v1387_v56 = vshll.u32 %v1325_v25, 16  ;;  %v1246_v63 = vld [vmem:[#allocation2 + $0x80] sm:$0x1] }
 0x124   : > { %v1379_v48 = vrot.slane %v1377_v34, 5  ;;  %v8564_v52 = vpop.f32.mrb[26].mxu0  ;;  %v1243_v51 = vsel %vm8425_vm12, %v1012_v37, %v1242_v22  ;;  %v1383_v55 = vrot.slane %v1381_v35, 4  ;;  %v1015_v58 = vshrl.u32 %v6977_v43, 16  ;;  %v1326_v21 = vld [vmem:[#allocation2 + $0x20] sm:$0x1] }
 0x125   : > { %v1236_v53 = vsel %vm8425_vm12, %v995_v40, %v1235_v23  ;;  %v8570_v57 = vpop.f32.mrb[27].mxu0  ;;  %1244 = vst [vmem:[#allocation2 + $0x78] sm:$0xf] %v1243_v51  ;;  %v1018_v60 = vshll.u32 %v6977_v43, 16  ;;  %v998_v61 = vshrl.u32 %v6975_v46, 16  ;;  %v1001_v62 = vshll.u32 %v6975_v46, 16 }
 0x126   : > { %1237 = vst [vmem:[#allocation2 + $0x6c] sm:$0xf] %v1236_v53  ;;  %v1375_v2 = vrot.slane %v1374_v47, 4  ;;  %v1384_v3 = vor.u32 %v1383_v55, %v1379_v48  ;;  %v1389_v4 = vrot.slane %v1387_v56, 5  ;;  %v1392_v5 = vshrl.u32 %v1295_v49, 16 }
 0x127   : > { %v1017_v6 = vrot.slane %v1015_v58, 7  ;;  %v1000_v44 = vrot.slane %v998_v61, 7  ;;  %v1395_v9 = vshll.u32 %v1295_v49, 16  ;;  %v1401_v10 = vshll.u32 %v1296_v50, 16  ;;  %v8032_v22 = vld [vmem:[#allocation2 + $0x60] sm:$0xff]  }
 0x128   : > { %v1380_v11 = vsel %vm8397_vm7, %v1375_v2, %v1379_v48  ;;  %v1385_v12 = vrot.slane %v1384_v3, 4  ;;  %v1394_v13 = vrot.slane %v1392_v5, 4  ;;  %v1405_v14 = vshrl.u32 %v1296_v50, 16  ;;  %v8031_v15 = vld [vmem:[#allocation2 + $0x54] sm:$0xff]   ;;  %v8574_v23 = vpop.f32.mrb[28].mxu0 }
 0x129   : > { %v1020_v16 = vor.u32 %v1018_v60, %v1017_v6  ;;  %v1022_v17 = vrot.slane %v1017_v6, 4  ;;  %v1003_v19 = vor.u32 %v1001_v62, %v1000_v44  ;;  %v1005_v20 = vrot.slane %v1000_v44, 4  ;;  %7345 = vmatprep.mubr.msk.bf16.mxu1 %vm1777_vm8, %v8031_v15  ;;  %v8579_v29 = vpop.f32.mrb[29].mxu0  ;;  %v1297_v34 = vld [vmem:[#allocation2 + $0x24] sm:$0xf] }
 0x12a   : > { %v1390_v25 = vsel %vm8397_vm7, %v1385_v12, %v1389_v4  ;;  %v1397_v26 = vrot.slane %v1395_v9, 5  ;;  %v1403_v27 = vrot.slane %v1401_v10, 5  ;;  %v1407_v28 = vrot.slane %v1405_v14, 4  ;;  %7346 = vmatmul.mubr.msk.bf16.gmra.mrb[12].mxu1 %vm1777_vm8, %v8032_v22  ;;  %v8590_v35 = vpop.f32.mrb[30].mxu0  ;;  %v1327_v5 = vld [vmem:[#allocation2 + $0x2c] sm:$0x1] }
 0x12b   : > { %v1021_v30 = vsel %vm8432_vm13, %v1013_v38, %v1020_v16  ;;  %v1247_v31 = vsel %vm8438_vm14, %v1022_v17, %v1246_v63  ;;  %v1004_v32 = vsel %vm8432_vm13, %v996_v41, %v1003_v19  ;;  %v1240_v33 = vsel %vm8438_vm14, %v1005_v20, %v1239_v0  ;;  %v8594_v46 = vpop.f32.mrb[31].mxu0  ;;  %v1256_v14 = vld [vmem:[#allocation2 + $0x90] sm:$0xf] }
 0x12c   : > { %1245 = vst.msk [vmem:[#allocation2 + $0x7c] sm:$0xf] %vm698_vm2, %v1021_v30  ;;  %1248 = vst [vmem:[#allocation2 + $0x80] sm:$0x1] %v1247_v31  ;;  %v6575_v37 = vcombine.low %v1380_v11, %v1390_v25  ;;  %v1398_v38 = vor.u32 %v1397_v26, %v1394_v13  ;;  %v1408_v40 = vor.u32 %v1407_v28, %v1403_v27  ;;  %v1411_v43 = vshll.u32 %v1326_v21, 16 }
 0x12d   : > { %1238 = vst.msk [vmem:[#allocation2 + $0x70] sm:$0xf] %vm698_vm2, %v1004_v32  ;;  %1241 = vst [vmem:[#allocation2 + $0x74] sm:$0x1] %v1240_v33  ;;  %v628_v41 = vadd.f32 %v8526_v54, %v8416_v45  ;;  %v620_v47 = vadd.f32 %v8416_v45, %v8532_v59  ;;  %v631_v48 = vadd.f32 %v8536_v1, %v8416_v45  ;;  %v1416_v55 = vshrl.u32 %v1297_v34, 16 }
 0x12e   : > { %v623_v49 = vadd.f32 %v8416_v45, %v8538_v7  ;;  %7232 = vmatmul.mubr.msk.bf16.vlgmr.msra.gmra.mrb[32].mxu0 %vm1777_vm8, %v6575_v37  ;;  %v1399_v50 = vrot.slane %v1398_v38, 4  ;;  %v1409_v51 = vrot.slane %v1408_v40, 4  ;;  %v1413_v53 = vrot.slane %v1411_v43, 5  ;;  %v1298_v54 = vld [vmem:[#allocation2 + $0x28] sm:$0xf] }
 0x12f   : > { %v688_v56 = vmax.f32 %v628_v41, 0.0  ;;  %v686_v58 = vmax.f32 %v620_v47, 0.0  ;;  %v689_v60 = vmax.f32 %v631_v48, 0.0  ;;  %v1418_v62 = vrot.slane %v1416_v55, 4  ;;  %v1249_v28 = vld [vmem:[#allocation2 + $0x84] sm:$0xf] }
 0x130   : > { %v687_v61 = vmax.f32 %v623_v49, 0.0  ;;  %v1404_v59 = vsel %vm8397_vm7, %v1399_v50, %v1403_v27  ;;  %v1414_v1 = vsel %vm8397_vm7, %v1409_v51, %v1413_v53  ;;  %v1419_v63 = vshll.u32 %v1297_v34, 16  ;;  %v1260_v43 = vld [vmem:[#allocation2 + $0x98] sm:$0x1]  ;;  %v1253_v41 = vld [vmem:[#allocation2 + $0x8c] sm:$0x1] }
 0x131   : > { %v6576_v7 = vcombine.low %v1404_v59, %v1414_v1  ;;  %v6980_v0 = vpack.c.bf16 %v688_v56, %v688_v56  ;;  %v6978_v2 = vpack.c.bf16 %v686_v58, %v686_v58  ;;  %v6981_v3 = vpack.c.bf16 %v689_v60, %v689_v60  ;;  %v1299_v51 = vld [vmem:[#allocation2 + $0x30] sm:$0xf]  ;;  %v1300_v60 = vld [vmem:[#allocation2 + $0x34] sm:$0xf] }
 0x132   : > { %v6979_v4 = vpack.c.bf16 %v687_v61, %v687_v61  ;;  %v1421_v6 = vrot.slane %v1419_v63, 5  ;;  %v1425_v44 = vshll.u32 %v1298_v54, 16  ;;  %v1429_v9 = vshrl.u32 %v1298_v54, 16  ;;  %v1328_v61 = vld [vmem:[#allocation2 + $0x38] sm:$0x1] }
 0x133   : > { %7235 = vmatprep.mubr.msk.bf16.mxu0 %vm1777_vm8, %v6576_v7  ;;  %v1041_v10 = vshrl.u32 %v6980_v0, 16  ;;  %v1044_v11 = vshll.u32 %v6980_v0, 16  ;;  %v1024_v12 = vshrl.u32 %v6978_v2, 16  ;;  %v1027_v13 = vshll.u32 %v6978_v2, 16  ;;  %v8034_v27 = vld [vmem:[#allocation2 + $0x78] sm:$0xff]  }
 0x134   : > { %v1049_v15 = vshrl.u32 %v6981_v3, 16  ;;  %v1052_v16 = vshll.u32 %v6981_v3, 16  ;;  %v1032_v17 = vshrl.u32 %v6979_v4, 16  ;;  %v1035_v19 = vshll.u32 %v6979_v4, 16  ;;  %v8033_v20 = vld [vmem:[#allocation2 + $0x6c] sm:$0xff]  }
 0x135   : > { %v1043_v21 = vrot.slane %v1041_v10, 7  ;;  %v1026_v22 = vrot.slane %v1024_v12, 7  ;;  %v1422_v25 = vor.u32 %v1421_v6, %v1418_v62  ;;  %v1427_v26 = vrot.slane %v1425_v44, 5  ;;  %7349 = vmatprep.mubr.msk.bf16.mxu1 %vm1777_vm8, %v8033_v20  ;;  %v1301_v12 = vld [vmem:[#allocation2 + $0x3c] sm:$0xf] }
 0x136   : > { %v1051_v30 = vrot.slane %v1049_v15, 7  ;;  %v1034_v31 = vrot.slane %v1032_v17, 7  ;;  %v1431_v32 = vrot.slane %v1429_v9, 4  ;;  %v1435_v33 = vshll.u32 %v1327_v5, 16  ;;  %7350 = vmatmul.mubr.msk.bf16.gmra.mrb[16].mxu1 %vm1777_vm8, %v8034_v27 }
 0x137   : > { %v1046_v34 = vor.u32 %v1044_v11, %v1043_v21  ;;  %v1047_v37 = vrot.slane %v1043_v21, 4  ;;  %v1029_v38 = vor.u32 %v1027_v13, %v1026_v22  ;;  %v1030_v40 = vrot.slane %v1026_v22, 4 }
 0x138   : > { %v1054_v47 = vor.u32 %v1052_v16, %v1051_v30  ;;  %v1056_v48 = vrot.slane %v1051_v30, 4  ;;  %v1037_v49 = vor.u32 %v1035_v19, %v1034_v31  ;;  %v1039_v50 = vrot.slane %v1034_v31, 4 }
 0x139   : > { %v1257_v53 = vsel %vm8425_vm12, %v1046_v34, %v1256_v14  ;;  %v1250_v55 = vsel %vm8425_vm12, %v1029_v38, %v1249_v28  ;;  %v1423_v56 = vrot.slane %v1422_v25, 4  ;;  %v1432_v58 = vor.u32 %v1431_v32, %v1427_v26 }
 0x13a   : > { %1258 = vst [vmem:[#allocation2 + $0x90] sm:$0xf] %v1257_v53  ;;  %1251 = vst [vmem:[#allocation2 + $0x84] sm:$0xf] %v1250_v55  ;;  %v1055_v54 = vsel %vm8432_vm13, %v1047_v37, %v1054_v47  ;;  %v1261_v59 = vsel %vm8438_vm14, %v1056_v48, %v1260_v43  ;;  %v1038_v1 = vsel %vm8432_vm13, %v1030_v40, %v1037_v49  ;;  %v1437_v0 = vrot.slane %v1435_v33, 5 }
 0x13b   : > { %v1254_v62 = vsel %vm8438_vm14, %v1039_v50, %v1253_v41  ;;  %1259 = vst.msk [vmem:[#allocation2 + $0x94] sm:$0xf] %vm698_vm2, %v1055_v54  ;;  %1262 = vst [vmem:[#allocation2 + $0x98] sm:$0x1] %v1261_v59  ;;  %v1428_v63 = vsel %vm8397_vm7, %v1423_v56, %v1427_v26  ;;  %v1433_v7 = vrot.slane %v1432_v58, 4  ;;  %v1440_v2 = vshrl.u32 %v1299_v51, 16 }
 0x13c   : > { %1252 = vst.msk [vmem:[#allocation2 + $0x88] sm:$0xf] %vm698_vm2, %v1038_v1  ;;  %1255 = vst [vmem:[#allocation2 + $0x8c] sm:$0x1] %v1254_v62  ;;  %v1443_v3 = vshll.u32 %v1299_v51, 16  ;;  %v1449_v4 = vshll.u32 %v1300_v60, 16  ;;  %v644_v10 = vadd.f32 %v8555_v36, %v8416_v45  ;;  %v636_v11 = vadd.f32 %v8416_v45, %v8562_v42 }
 0x13d   : > { %v1453_v5 = vshrl.u32 %v1300_v60, 16  ;;  %v1459_v6 = vshll.u32 %v1328_v61, 16  ;;  %v1438_v44 = vsel %vm8397_vm7, %v1433_v7, %v1437_v0  ;;  %v1442_v9 = vrot.slane %v1440_v2, 4  ;;  %v1263_v47 = vld [vmem:[#allocation2 + $0x9c] sm:$0xf] }
 0x13e   : > { %v6577_v13 = vcombine.low %v1428_v63, %v1438_v44  ;;  %v1445_v14 = vrot.slane %v1443_v3, 5  ;;  %v1451_v15 = vrot.slane %v1449_v4, 5  ;;  %v692_v19 = vmax.f32 %v644_v10, 0.0  ;;  %v8643_v56 = vld [vmem:[#allocation2 + $0x40] sm:$0xf] }
 0x13f   : > { %v1455_v16 = vrot.slane %v1453_v5, 4  ;;  %v1461_v17 = vrot.slane %v1459_v6, 5  ;;  %v690_v20 = vmax.f32 %v636_v11, 0.0  ;;  %v647_v21 = vadd.f32 %v8564_v52, %v8416_v45  ;;  %v1329_v1 = vld [vmem:[#allocation2 + $0x44] sm:$0x1] }
 0x140   : > { %7236 = vmatmul.mubr.msk.bf16.gmra.mrb[36].mxu0 %vm1777_vm8, %v6577_v13  ;;  %v1446_v22 = vor.u32 %v1445_v14, %v1442_v9  ;;  %v639_v36 = vadd.f32 %v8416_v45, %v8570_v57  ;;  %v1464_v26 = vshrl.u32 %v1301_v12, 16  ;;  %v6984_v42 = vpack.c.bf16 %v692_v19, %v692_v19  ;;  %v1270_v57 = vld [vmem:[#allocation2 + $0xa8] sm:$0xf]  ;;  %v1274_v9 = vld [vmem:[#allocation2 + $0xb0] sm:$0x1] }
 0x141   : > { %v1456_v25 = vor.u32 %v1455_v16, %v1451_v15  ;;  %v6982_v27 = vpack.c.bf16 %v690_v20, %v690_v20  ;;  %v693_v28 = vmax.f32 %v647_v21, 0.0  ;;  %v1467_v30 = vshll.u32 %v1301_v12, 16  ;;  %v1267_v10 = vld [vmem:[#allocation2 + $0xa4] sm:$0x1]  ;;  %v8656_v19 = vld [vmem:[#allocation2 + $0x4c] sm:$0xf] }
 0x142   : > { %v1447_v31 = vrot.slane %v1446_v22, 4  ;;  %v691_v33 = vmax.f32 %v639_v36, 0.0  ;;  %v1466_v34 = vrot.slane %v1464_v26, 4  ;;  %v1075_v37 = vshrl.u32 %v6984_v42, 16  ;;  %v8036_v50 = vld [vmem:[#allocation2 + $0x90] sm:$0xff]  }
 0x143   : > { %v1457_v32 = vrot.slane %v1456_v25, 4  ;;  %v1078_v38 = vshll.u32 %v6984_v42, 16  ;;  %v1058_v40 = vshrl.u32 %v6982_v27, 16  ;;  %v1061_v52 = vshll.u32 %v6982_v27, 16  ;;  %v8035_v43 = vld [vmem:[#allocation2 + $0x84] sm:$0xff]  }
 0x144   : > { %v1452_v41 = vsel %vm8397_vm7, %v1447_v31, %v1451_v15  ;;  %v6985_v48 = vpack.c.bf16 %v693_v28, %v693_v28  ;;  %v6983_v49 = vpack.c.bf16 %v691_v33, %v691_v33  ;;  %v1077_v53 = vrot.slane %v1075_v37, 7  ;;  %7353 = vmatprep.mubr.msk.bf16.mxu1 %vm1777_vm8, %v8035_v43  ;;  %v1330_v36 = vld [vmem:[#allocation2 + $0x50] sm:$0x1] }
 0x145   : > { %v1462_v45 = vsel %vm8397_vm7, %v1457_v32, %v1461_v17  ;;  %v1060_v55 = vrot.slane %v1058_v40, 7  ;;  %v1469_v58 = vrot.slane %v1467_v30, 5  ;;  %7354 = vmatmul.mubr.msk.bf16.gmra.mrb[20].mxu1 %vm1777_vm8, %v8036_v50  ;;  %v1473_v5 = vshll.u32 %v8643_v56, 16  ;;  %v8654_v17 = vld [vmem:[#allocation2 + $0x48] sm:$0xf] }
 0x146   : > { %v6578_v51 = vcombine.low %v1452_v41, %v1462_v45  ;;  %v1083_v60 = vshrl.u32 %v6985_v48, 16  ;;  %v1086_v61 = vshll.u32 %v6985_v48, 16  ;;  %v1066_v54 = vshrl.u32 %v6983_v49, 16  ;;  %v8066_v40 = vld [vmem:[%s10239_s2] ss:$0 sm:$0xff] }
 0x147   : > { %v1069_v59 = vshll.u32 %v6983_v49, 16  ;;  %v1080_v62 = vor.u32 %v1078_v38, %v1077_v53  ;;  %v1081_v63 = vrot.slane %v1077_v53, 4  ;;  %v1063_v7 = vor.u32 %v1061_v52, %v1060_v55 }
 0x148   : > { %7239 = vmatprep.mubr.msk.bf16.mxu0 %vm1777_vm8, %v6578_v51  ;;  %v1064_v0 = vrot.slane %v1060_v55, 4  ;;  %v1085_v2 = vrot.slane %v1083_v60, 7  ;;  %v1068_v3 = vrot.slane %v1066_v54, 7  ;;  %v1470_v4 = vor.u32 %v1469_v58, %v1466_v34 }
 0x149   : > { %v1271_v6 = vsel %vm8425_vm12, %v1080_v62, %v1270_v57  ;;  %v1264_v44 = vsel %vm8425_vm12, %v1063_v7, %v1263_v47  ;;  %v1477_v11 = vshrl.u32 %v8643_v56, 16  ;;  %v1483_v12 = vshll.u32 %v1329_v1, 16  ;;  %v8679_v47 = vld [vmem:[#allocation2 + $0x54] sm:$0xf] }
 0x14a   : > { %1272 = vst [vmem:[#allocation2 + $0xa8] sm:$0xf] %v1271_v6  ;;  %1265 = vst [vmem:[#allocation2 + $0x9c] sm:$0xf] %v1264_v44  ;;  %v1088_v13 = vor.u32 %v1086_v61, %v1085_v2  ;;  %v1090_v14 = vrot.slane %v1085_v2, 4  ;;  %v1071_v15 = vor.u32 %v1069_v59, %v1068_v3  ;;  %v1073_v16 = vrot.slane %v1068_v3, 4 }
 0x14b   : > { %v1471_v20 = vrot.slane %v1470_v4, 4  ;;  %v1475_v21 = vrot.slane %v1473_v5, 5  ;;  %v1479_v22 = vrot.slane %v1477_v11, 4  ;;  %v1485_v25 = vrot.slane %v1483_v12, 5 }
 0x14c   : > { %v1089_v26 = vsel %vm8432_vm13, %v1081_v63, %v1088_v13  ;;  %v1275_v42 = vsel %vm8438_vm14, %v1090_v14, %v1274_v9  ;;  %v1072_v27 = vsel %vm8432_vm13, %v1064_v0, %v1071_v15  ;;  %v1268_v28 = vsel %vm8438_vm14, %v1073_v16, %v1267_v10  ;;  %v1284_v10 = vld [vmem:[#allocation2 + $0xc0] sm:$0xf] }
 0x14d   : > { %1273 = vst.msk [vmem:[#allocation2 + $0xac] sm:$0xf] %vm698_vm2, %v1089_v26  ;;  %1276 = vst [vmem:[#allocation2 + $0xb0] sm:$0x1] %v1275_v42  ;;  %v1476_v30 = vsel %vm8397_vm7, %v1471_v20, %v1475_v21  ;;  %v1480_v31 = vor.u32 %v1479_v22, %v1475_v21  ;;  %v1488_v32 = vshrl.u32 %v8654_v17, 16  ;;  %v1491_v33 = vshll.u32 %v8654_v17, 16 }
 0x14e   : > { %1266 = vst.msk [vmem:[#allocation2 + $0xa0] sm:$0xf] %vm698_vm2, %v1072_v27  ;;  %1269 = vst [vmem:[#allocation2 + $0xa4] sm:$0x1] %v1268_v28  ;;  %v1497_v34 = vshll.u32 %v8656_v19, 16  ;;  %v1501_v37 = vshrl.u32 %v8656_v19, 16  ;;  %v660_v52 = vadd.f32 %v8066_v40, %v8574_v23  ;;  %v652_v57 = vadd.f32 %v8066_v40, %v8579_v29 }
 0x14f   : > { %v1507_v38 = vshll.u32 %v1330_v36, 16  ;;  %v1481_v43 = vrot.slane %v1480_v31, 4  ;;  %v1490_v41 = vrot.slane %v1488_v32, 4  ;;  %v1493_v45 = vrot.slane %v1491_v33, 5  ;;  %v8691_v21 = vld [vmem:[#allocation2 + $0x58] sm:$0xf] }
 0x150   : > { %v1499_v48 = vrot.slane %v1497_v34, 5  ;;  %v1503_v49 = vrot.slane %v1501_v37, 4  ;;  %v696_v51 = vmax.f32 %v660_v52, 0.0  ;;  %v694_v58 = vmax.f32 %v652_v57, 0.0  ;;  %v1277_v36 = vld [vmem:[#allocation2 + $0xb4] sm:$0xf] }
 0x151   : > { %v1509_v50 = vrot.slane %v1507_v38, 5  ;;  %v1486_v53 = vsel %vm8397_vm7, %v1481_v43, %v1485_v25  ;;  %v1494_v55 = vor.u32 %v1493_v45, %v1490_v41  ;;  %v663_v60 = vadd.f32 %v8066_v40, %v8590_v35  ;;  %v1288_v31 = vld [vmem:[#allocation2 + $0xc8] sm:$0x1]  ;;  %v1331_v37 = vld [vmem:[#allocation2 + $0x5c] sm:$0x1] }
 0x152   : > { %v6579_v61 = vcombine.low %v1476_v30, %v1486_v53  ;;  %v1504_v23 = vor.u32 %v1503_v49, %v1499_v48  ;;  %v6988_v54 = vpack.c.bf16 %v696_v51, %v696_v51  ;;  %v655_v59 = vadd.f32 %v8066_v40, %v8594_v46  ;;  %v1281_v45 = vld [vmem:[#allocation2 + $0xbc] sm:$0x1] }
 0x153   : > { %v1495_v1 = vrot.slane %v1494_v55, 4  ;;  %v6986_v29 = vpack.c.bf16 %v694_v58, %v694_v58  ;;  %v697_v62 = vmax.f32 %v663_v60, 0.0  ;;  %v1512_v63 = vshrl.u32 %v8679_v47, 16  ;;  %v8705_v55 = vld [vmem:[#allocation2 + $0x64] sm:$0xf] }
 0x154   : > { %7240 = vmatmul.mubr.msk.bf16.gmra.mrb[40].mxu0 %vm1777_vm8, %v6579_v61  ;;  %v1505_v7 = vrot.slane %v1504_v23, 4  ;;  %v1109_v0 = vshrl.u32 %v6988_v54, 16  ;;  %v1112_v2 = vshll.u32 %v6988_v54, 16  ;;  %v695_v3 = vmax.f32 %v655_v59, 0.0  ;;  %v8038_v13 = vld [vmem:[#allocation2 + $0xa8] sm:$0xff]  }
 0x155   : > { %v1500_v4 = vsel %vm8397_vm7, %v1495_v1, %v1499_v48  ;;  %v1092_v35 = vshrl.u32 %v6986_v29, 16  ;;  %v1095_v5 = vshll.u32 %v6986_v29, 16  ;;  %v6989_v6 = vpack.c.bf16 %v697_v62, %v697_v62  ;;  %v8037_v44 = vld [vmem:[#allocation2 + $0x9c] sm:$0xff]   ;;  %v1332_v23 = vld [vmem:[#allocation2 + $0x68] sm:$0x1] }
 0x156   : > { %v1510_v46 = vsel %vm8397_vm7, %v1505_v7, %v1509_v50  ;;  %v1111_v9 = vrot.slane %v1109_v0, 7  ;;  %v6987_v11 = vpack.c.bf16 %v695_v3, %v695_v3  ;;  %v1514_v12 = vrot.slane %v1512_v63, 4  ;;  %7357 = vmatprep.mubr.msk.bf16.mxu1 %vm1777_vm8, %v8037_v44  ;;  %v8703_v48 = vld [vmem:[#allocation2 + $0x60] sm:$0xf]  ;;  %v8717_v62 = vld [vmem:[#allocation2 + $0x6c] sm:$0xf] }
 0x157   : > { %v6580_v14 = vcombine.low %v1500_v4, %v1510_v46  ;;  %v1094_v15 = vrot.slane %v1092_v35, 7  ;;  %v1117_v16 = vshrl.u32 %v6989_v6, 16  ;;  %v1120_v20 = vshll.u32 %v6989_v6, 16  ;;  %7358 = vmatmul.mubr.msk.bf16.gmra.mrb[24].mxu1 %vm1777_vm8, %v8038_v13  ;;  %v8723_v35 = vld [vmem:[#allocation2 + $0x70] sm:$0xf] }
 0x158   : > { %v1114_v22 = vor.u32 %v1112_v2, %v1111_v9  ;;  %v1115_v25 = vrot.slane %v1111_v9, 4  ;;  %v1100_v26 = vshrl.u32 %v6987_v11, 16  ;;  %v1103_v42 = vshll.u32 %v6987_v11, 16  ;;  %v1333_v9 = vld [vmem:[#allocation2 + $0x74] sm:$0x1] }
 0x159   : > { %7243 = vmatprep.mubr.msk.bf16.mxu0 %vm1777_vm8, %v6580_v14  ;;  %v1097_v27 = vor.u32 %v1095_v5, %v1094_v15  ;;  %v1098_v28 = vrot.slane %v1094_v15, 4  ;;  %v1119_v30 = vrot.slane %v1117_v16, 7  ;;  %v1515_v32 = vshll.u32 %v8679_v47, 16  ;;  %v8725_v5 = vld [vmem:[#allocation2 + $0x78] sm:$0xf] }
 0x15a   : > { %v1285_v33 = vsel %vm8425_vm12, %v1114_v22, %v1284_v10  ;;  %v1102_v34 = vrot.slane %v1100_v26, 7  ;;  %v1521_v38 = vshll.u32 %v8691_v21, 16  ;;  %v1525_v40 = vshrl.u32 %v8691_v21, 16 }
 0x15b   : > { %1286 = vst [vmem:[#allocation2 + $0xc0] sm:$0xf] %v1285_v33  ;;  %v1278_v52 = vsel %vm8425_vm12, %v1097_v27, %v1277_v36  ;;  %v1122_v43 = vor.u32 %v1120_v20, %v1119_v30  ;;  %v1124_v41 = vrot.slane %v1119_v30, 4  ;;  %v1517_v57 = vrot.slane %v1515_v32, 5 }
 0x15c   : > { %1279 = vst [vmem:[#allocation2 + $0xb4] sm:$0xf] %v1278_v52  ;;  %v1105_v49 = vor.u32 %v1103_v42, %v1102_v34  ;;  %v1107_v50 = vrot.slane %v1102_v34, 4  ;;  %v1523_v51 = vrot.slane %v1521_v38, 5  ;;  %v1527_v53 = vrot.slane %v1525_v40, 4 }
 0x15d   : > { %v1123_v58 = vsel %vm8432_vm13, %v1115_v25, %v1122_v43  ;;  %v1289_v8 = vsel %vm8438_vm14, %v1124_v41, %v1288_v31  ;;  %v1518_v60 = vor.u32 %v1517_v57, %v1514_v12  ;;  %v1531_v61 = vshll.u32 %v1331_v37, 16  ;;  %v8734_v25 = vld [vmem:[#allocation2 + $0x7c] sm:$0xf] }
 0x15e   : > { %1287 = vst.msk [vmem:[#allocation2 + $0xc4] sm:$0xf] %vm698_vm2, %v1123_v58  ;;  %1290 = vst [vmem:[#allocation2 + $0xc8] sm:$0x1] %v1289_v8  ;;  %v1106_v54 = vsel %vm8432_vm13, %v1098_v28, %v1105_v49  ;;  %v1282_v59 = vsel %vm8438_vm14, %v1107_v50, %v1281_v45  ;;  %v1528_v1 = vor.u32 %v1527_v53, %v1523_v51  ;;  %v1536_v29 = vshrl.u32 %v8703_v48, 16 }
 0x15f   : > { %1280 = vst.msk [vmem:[#allocation2 + $0xb8] sm:$0xf] %vm698_vm2, %v1106_v54  ;;  %1283 = vst [vmem:[#allocation2 + $0xbc] sm:$0x1] %v1282_v59  ;;  %v1519_v63 = vrot.slane %v1518_v60, 4  ;;  %v1533_v7 = vrot.slane %v1531_v61, 5 }
 0x160   : > { %v1539_v0 = vshll.u32 %v8703_v48, 16  ;;  %v1545_v2 = vshll.u32 %v8705_v55, 16  ;;  %v1529_v3 = vrot.slane %v1528_v1, 4  ;;  %v1538_v18 = vrot.slane %v1536_v29, 4  ;;  %v1334_v28 = vld [vmem:[#allocation2 + $0x80] sm:$0x1] }
 0x161   : > { %v1549_v4 = vshrl.u32 %v8705_v55, 16  ;;  %v1555_v24 = vshll.u32 %v1332_v23, 16  ;;  %v1524_v6 = vsel %vm8397_vm7, %v1519_v63, %v1523_v51  ;;  %v1560_v10 = vshrl.u32 %v8717_v62, 16  ;;  %v8743_v49 = vld [vmem:[#allocation2 + $0x84] sm:$0xf] }
 0x162   : > { %v1541_v44 = vrot.slane %v1539_v0, 5  ;;  %v1547_v46 = vrot.slane %v1545_v2, 5  ;;  %v1534_v11 = vsel %vm8397_vm7, %v1529_v3, %v1533_v7  ;;  %v1563_v14 = vshll.u32 %v8717_v62, 16  ;;  %v8748_v60 = vld [vmem:[#allocation2 + $0x88] sm:$0xf] }
 0x163   : > { %v1551_v12 = vrot.slane %v1549_v4, 4  ;;  %v1557_v13 = vrot.slane %v1555_v24, 5  ;;  %v6581_v15 = vcombine.low %v1524_v6, %v1534_v11  ;;  %v1562_v20 = vrot.slane %v1560_v10, 4  ;;  %v1335_v7 = vld [vmem:[#allocation2 + $0x8c] sm:$0x1] }
 0x164   : > { %v1542_v16 = vor.u32 %v1541_v44, %v1538_v18  ;;  %v1569_v22 = vshll.u32 %v8723_v35, 16  ;;  %v1565_v26 = vrot.slane %v1563_v14, 5  ;;  %v1573_v42 = vshrl.u32 %v8723_v35, 16  ;;  %v8758_v24 = vld [vmem:[#allocation2 + $0x90] sm:$0xf] }
 0x165   : > { %v1552_v36 = vor.u32 %v1551_v12, %v1547_v46  ;;  %v1579_v27 = vshll.u32 %v1333_v9, 16  ;;  %7244 = vmatmul.mubr.msk.bf16.gmra.mrb[44].mxu0 %vm1777_vm8, %v6581_v15  ;;  %v1584_v32 = vshrl.u32 %v8725_v5, 16  ;;  %v1587_v33 = vshll.u32 %v8725_v5, 16  ;;  %v8040_v50 = vld [vmem:[#allocation2 + $0xc0] sm:$0xff]   ;;  %v8763_v10 = vld [vmem:[#allocation2 + $0x94] sm:$0xf] }
 0x166   : > { %v1543_v30 = vrot.slane %v1542_v16, 4  ;;  %v1571_v31 = vrot.slane %v1569_v22, 5  ;;  %v1566_v37 = vor.u32 %v1565_v26, %v1562_v20  ;;  %v1575_v38 = vrot.slane %v1573_v42, 4  ;;  %v8039_v52 = vld [vmem:[#allocation2 + $0xb4] sm:$0xff]  }
 0x167   : > { %v1553_v34 = vrot.slane %v1552_v36, 4  ;;  %v1581_v40 = vrot.slane %v1579_v27, 5  ;;  %v1586_v41 = vrot.slane %v1584_v32, 4  ;;  %v1589_v45 = vrot.slane %v1587_v33, 5  ;;  %7361 = vmatprep.mubr.msk.bf16.mxu1 %vm1777_vm8, %v8039_v52  ;;  %v1336_v22 = vld [vmem:[#allocation2 + $0x98] sm:$0x1] }
 0x168   : > { %v1548_v43 = vsel %vm8397_vm7, %v1543_v30, %v1547_v46  ;;  %v1593_v57 = vshll.u32 %v8734_v25, 16  ;;  %v1567_v53 = vrot.slane %v1566_v37, 4  ;;  %v1576_v58 = vor.u32 %v1575_v38, %v1571_v31  ;;  %7362 = vmatmul.mubr.msk.bf16.gmra.mrb[28].mxu1 %vm1777_vm8, %v8040_v50  ;;  %v8772_v30 = vld [vmem:[#allocation2 + $0x9c] sm:$0xf]  ;;  %v8776_v37 = vld [vmem:[#allocation2 + $0xa0] sm:$0xf] }
 0x169   : > { %v1558_v51 = vsel %vm8397_vm7, %v1553_v34, %v1557_v13  ;;  %v1597_v8 = vshrl.u32 %v8734_v25, 16  ;;  %v1590_v23 = vor.u32 %v1589_v45, %v1586_v41  ;;  %v1603_v59 = vshll.u32 %v1334_v28, 16  ;;  %v8778_v41 = vld [vmem:[#allocation2 + $0xa8] sm:$0xf] }
 0x16a   : > { %v6582_v61 = vcombine.low %v1548_v43, %v1558_v51  ;;  %v1595_v54 = vrot.slane %v1593_v57, 5  ;;  %v1572_v1 = vsel %vm8397_vm7, %v1567_v53, %v1571_v31  ;;  %v1577_v29 = vrot.slane %v1576_v58, 4 }
 0x16b   : > { %v1599_v63 = vrot.slane %v1597_v8, 4  ;;  %v1608_v0 = vshrl.u32 %v8743_v49, 16  ;;  %v1591_v2 = vrot.slane %v1590_v23, 4  ;;  %v1605_v3 = vrot.slane %v1603_v59, 5  ;;  %v1337_v8 = vld [vmem:[#allocation2 + $0xa4] sm:$0x1] }
 0x16c   : > { %7247 = vmatprep.mubr.msk.bf16.mxu0 %vm1777_vm8, %v6582_v61  ;;  %v1611_v18 = vshll.u32 %v8743_v49, 16  ;;  %v1617_v4 = vshll.u32 %v8748_v60, 16  ;;  %v1582_v6 = vsel %vm8397_vm7, %v1577_v29, %v1581_v40  ;;  %v1621_v9 = vshrl.u32 %v8748_v60, 16 }
 0x16d   : > { %v1600_v44 = vor.u32 %v1599_v63, %v1595_v54  ;;  %v1610_v46 = vrot.slane %v1608_v0, 4  ;;  %v6583_v11 = vcombine.low %v1572_v1, %v1582_v6  ;;  %v1596_v12 = vsel %vm8397_vm7, %v1591_v2, %v1595_v54  ;;  %v8788_v63 = vld [vmem:[#allocation2 + $0xac] sm:$0xf] }
 0x16e   : > { %v1613_v13 = vrot.slane %v1611_v18, 5  ;;  %v1619_v14 = vrot.slane %v1617_v4, 5  ;;  %v1623_v16 = vrot.slane %v1621_v9, 4  ;;  %v1627_v20 = vshll.u32 %v1335_v7, 16  ;;  %v1338_v18 = vld [vmem:[#allocation2 + $0xb0] sm:$0x1] }
 0x16f   : > { %v1601_v15 = vrot.slane %v1600_v44, 4  ;;  %v1632_v36 = vshrl.u32 %v8758_v24, 16  ;;  %7248 = vmatmul.mubr.msk.bf16.gmra.mrb[48].mxu0 %vm1777_vm8, %v6583_v11  ;;  %v1635_v42 = vshll.u32 %v8758_v24, 16  ;;  %v1641_v27 = vshll.u32 %v8763_v10, 16  ;;  %v3098_v4 = vld [vmem:[#allocation2 + $0xc] sm:$0xf] }
 0x170   : > { %v1614_v26 = vor.u32 %v1613_v13, %v1610_v46  ;;  %v1645_v28 = vshrl.u32 %v8763_v10, 16  ;;  %v1624_v32 = vor.u32 %v1623_v16, %v1619_v14  ;;  %v1629_v33 = vrot.slane %v1627_v20, 5 }
 0x171   : > { %v1606_v31 = vsel %vm8397_vm7, %v1601_v15, %v1605_v3  ;;  %v1634_v34 = vrot.slane %v1632_v36, 4  ;;  %v1637_v52 = vrot.slane %v1635_v42, 5  ;;  %v1643_v43 = vrot.slane %v1641_v27, 5  ;;  %v8799_v36 = vld [vmem:[#allocation2 + $0x10] sm:$0xf] }
 0x172   : > { %v6584_v38 = vcombine.low %v1596_v12, %v1606_v31  ;;  %v1615_v40 = vrot.slane %v1614_v26, 4  ;;  %v1625_v45 = vrot.slane %v1624_v32, 4  ;;  %v1647_v57 = vrot.slane %v1645_v28, 4  ;;  %v8801_v31 = vld [vmem:[#allocation2 + $0x14] sm:$0x1] }
 0x173   : > { %v1651_v50 = vshll.u32 %v1336_v22, 16  ;;  %v1656_v51 = vshrl.u32 %v8772_v30, 16  ;;  %v1638_v58 = vor.u32 %v1637_v52, %v1634_v34  ;;  %v1659_v61 = vshll.u32 %v8772_v30, 16 }
 0x174   : > { %7251 = vmatprep.mubr.msk.bf16.mxu0 %vm1777_vm8, %v6584_v38  ;;  %v1620_v53 = vsel %vm8397_vm7, %v1615_v40, %v1619_v14  ;;  %v1665_v23 = vshll.u32 %v8776_v37, 16  ;;  %v1630_v54 = vsel %vm8397_vm7, %v1625_v45, %v1629_v33  ;;  %v1648_v59 = vor.u32 %v1647_v57, %v1643_v43  ;;  %v8808_v57 = vld [vmem:[#allocation2 + $0xb4] sm:$0xf] }
 0x175   : > { %v1653_v1 = vrot.slane %v1651_v50, 5  ;;  %v1658_v29 = vrot.slane %v1656_v51, 4  ;;  %v6585_v7 = vcombine.low %v1620_v53, %v1630_v54  ;;  %v1639_v0 = vrot.slane %v1638_v58, 4 }
 0x176   : > { %v1661_v2 = vrot.slane %v1659_v61, 5  ;;  %v1667_v3 = vrot.slane %v1665_v23, 5  ;;  %v1649_v6 = vrot.slane %v1648_v59, 4  ;;  %v1669_v44 = vshrl.u32 %v8776_v37, 16 }
 0x177   : > { %v1675_v46 = vshll.u32 %v1337_v8, 16  ;;  %v1680_v9 = vshrl.u32 %v8778_v41, 16  ;;  %7252 = vmatmul.mubr.msk.bf16.gmra.mrb[52].mxu0 %vm1777_vm8, %v6585_v7  ;;  %v1644_v11 = vsel %vm8397_vm7, %v1639_v0, %v1643_v43  ;;  %v1683_v13 = vshll.u32 %v8778_v41, 16  ;;  %v8810_v8 = vld [vmem:[#allocation2 + $0xb8] sm:$0xf] }
 0x178   : > { %v1662_v12 = vor.u32 %v1661_v2, %v1658_v29  ;;  %v1689_v14 = vshll.u32 %v8788_v63, 16  ;;  %v1654_v15 = vsel %vm8397_vm7, %v1649_v6, %v1653_v1  ;;  %v1671_v16 = vrot.slane %v1669_v44, 4  ;;  %v1339_v1 = vld [vmem:[#allocation2 + $0xbc] sm:$0x1]  ;;  %v3101_v29 = vld [vmem:[#allocation2 + $0x18] sm:$0xf] }
 0x179   : > { %v1677_v20 = vrot.slane %v1675_v46, 5  ;;  %v1682_v22 = vrot.slane %v1680_v9, 4  ;;  %v6586_v26 = vcombine.low %v1644_v11, %v1654_v15  ;;  %v1685_v27 = vrot.slane %v1683_v13, 5  ;;  %v8820_v13 = vld [vmem:[#allocation2 + $0x1c] sm:$0xf] }
 0x17a   : > { %v1663_v42 = vrot.slane %v1662_v12, 4  ;;  %v1691_v28 = vrot.slane %v1689_v14, 5  ;;  %v1672_v32 = vor.u32 %v1671_v16, %v1667_v3  ;;  %v1693_v33 = vshrl.u32 %v8788_v63, 16 }
 0x17b   : > { %v1699_v34 = vshll.u32 %v1338_v18, 16  ;;  %v3147_v38 = vshrl.u32 %v3098_v4, 16  ;;  %7255 = vmatprep.mubr.msk.bf16.mxu0 %vm1777_vm8, %v6586_v26  ;;  %v1686_v52 = vor.u32 %v1685_v27, %v1682_v22  ;;  %v3150_v43 = vshll.u32 %v3098_v4, 16  ;;  %v8825_v22 = vld [vmem:[#allocation2 + $0x20] sm:$0x1] }
 0x17c   : > { %v1668_v40 = vsel %vm8397_vm7, %v1663_v42, %v1667_v3  ;;  %v3156_v45 = vshll.u32 %v8799_v36, 16  ;;  %v1673_v50 = vrot.slane %v1672_v32, 4  ;;  %v1695_v51 = vrot.slane %v1693_v33, 4 }
 0x17d   : > { %v1701_v53 = vrot.slane %v1699_v34, 5  ;;  %v3149_v58 = vrot.slane %v3147_v38, 4  ;;  %v1687_v61 = vrot.slane %v1686_v52, 4  ;;  %v3152_v23 = vrot.slane %v3150_v43, 5 }
 0x17e   : > { %v3158_v54 = vrot.slane %v3156_v45, 5  ;;  %v3160_v59 = vshrl.u32 %v8799_v36, 16  ;;  %v1678_v7 = vsel %vm8397_vm7, %v1673_v50, %v1677_v20  ;;  %v1696_v0 = vor.u32 %v1695_v51, %v1691_v28  ;;  %v8831_v51 = vld [vmem:[#allocation2 + $0x28] sm:$0xf] }
 0x17f   : > { %v3166_v2 = vshll.u32 %v8801_v31, 16  ;;  %v1704_v3 = vshrl.u32 %v8808_v57, 16  ;;  %v6587_v18 = vcombine.low %v1668_v40, %v1678_v7  ;;  %v1692_v4 = vsel %vm8397_vm7, %v1687_v61, %v1691_v28  ;;  %v3104_v40 = vld [vmem:[#allocation2 + $0x24] sm:$0xf] }
 0x180   : > { %v3153_v6 = vor.u32 %v3152_v23, %v3149_v58  ;;  %v3162_v44 = vrot.slane %v3160_v59, 4  ;;  %v1697_v46 = vrot.slane %v1696_v0, 4  ;;  %v1707_v12 = vshll.u32 %v8808_v57, 16 }
 0x181   : > { %v3168_v9 = vrot.slane %v3166_v2, 5  ;;  %v1706_v11 = vrot.slane %v1704_v3, 4  ;;  %7256 = vmatmul.mubr.msk.bf16.gmra.mrb[56].mxu0 %vm1777_vm8, %v6587_v18  ;;  %v1713_v16 = vshll.u32 %v8810_v8, 16  ;;  %v1717_v20 = vshrl.u32 %v8810_v8, 16 }
 0x182   : > { %v3154_v14 = vrot.slane %v3153_v6, 4  ;;  %v3163_v15 = vor.u32 %v3162_v44, %v3158_v54  ;;  %v1702_v26 = vsel %vm8397_vm7, %v1697_v46, %v1701_v53  ;;  %v1709_v42 = vrot.slane %v1707_v12, 5 }
 0x183   : > { %v1723_v27 = vshll.u32 %v1339_v1, 16  ;;  %v3171_v28 = vshrl.u32 %v3101_v29, 16  ;;  %v6588_v32 = vcombine.low %v1692_v4, %v1702_v26  ;;  %v1715_v38 = vrot.slane %v1713_v16, 5  ;;  %v8067_v4 = vld [vmem:[%s10240_s3 + $0x14] sm:$0xf] }
 0x184   : > { %v3159_v33 = vsel %vm8397_vm7, %v3154_v14, %v3158_v54  ;;  %v3164_v34 = vrot.slane %v3163_v15, 4  ;;  %v1710_v52 = vor.u32 %v1709_v42, %v1706_v11  ;;  %v1719_v43 = vrot.slane %v1717_v20, 4  ;;  %v8838_v54 = vld [vmem:[#allocation2 + $0x2c] sm:$0x1]  ;;  %v3107_v16 = vld [vmem:[#allocation2 + $0x30] sm:$0xf] }
 0x185   : > { %v1725_v45 = vrot.slane %v1723_v27, 5  ;;  %v3173_v50 = vrot.slane %v3171_v28, 4  ;;  %7259 = vmatprep.mubr.msk.bf16.mxu0 %vm1777_vm8, %v6588_v32  ;;  %v3174_v58 = vshll.u32 %v3101_v29, 16  ;;  %v3180_v61 = vshll.u32 %v8820_v13, 16  ;;  %v8853_v28 = vld [vmem:[#allocation2 + $0x34] sm:$0xf] }
 0x186   : > { %v3169_v53 = vsel %vm8397_vm7, %v3164_v34, %v3168_v9  ;;  %v3184_v23 = vshrl.u32 %v8820_v13, 16  ;;  %v1711_v1 = vrot.slane %v1710_v52, 4  ;;  %v1720_v7 = vor.u32 %v1719_v43, %v1715_v38  ;;  %v8855_v52 = vld [vmem:[#allocation2 + $0x38] sm:$0x1] }
 0x187   : > { %v6721_v59 = vcombine.low %v3159_v33, %v3169_v53  ;;  %v3190_v0 = vshll.u32 %v8825_v22, 16  ;;  %v3176_v2 = vrot.slane %v3174_v58, 5  ;;  %v3182_v3 = vrot.slane %v3180_v61, 5  ;;  %v8864_v58 = vld [vmem:[%s10240_s3 + $0x8] sm:$0xf] }
 0x188   : > { %v3186_v18 = vrot.slane %v3184_v23, 4  ;;  %v4099_v29 = vsel %vm1826_vm4, %v8067_v4, 0  ;;  %v1716_v6 = vsel %vm8397_vm7, %v1711_v1, %v1715_v38  ;;  %v1721_v44 = vrot.slane %v1720_v7, 4  ;;  %v8069_v1 = vld [vmem:[#allocation2] sm:$0xf] }
 0x189   : > { %7367 = vmatprep.mubr.msk.bf16.mxu1 %vm1777_vm8, %v6721_v59  ;;  %v3192_v46 = vrot.slane %v3190_v0, 5  ;;  %v3195_v9 = vshrl.u32 %v3104_v40, 16  ;;  %v3177_v11 = vor.u32 %v3176_v2, %v3173_v50  ;;  %v3198_v14 = vshll.u32 %v3104_v40, 16  ;;  %v8871_v7 = vld [vmem:[#allocation2 + $0x4] sm:$0xf] }
 0x18a   : > { %v3187_v12 = vor.u32 %v3186_v18, %v3182_v3  ;;  %v3204_v15 = vshll.u32 %v8831_v51, 16  ;;  %v1726_v20 = vsel %vm8397_vm7, %v1721_v44, %v1725_v45  ;;  %v3208_v42 = vshrl.u32 %v8831_v51, 16  ;;  %v8068_v45 = vld [vmem:[%s10240_s3] sm:$0xf]  ;;  %v8071_v4 = vld [vmem:[#allocation2 + $0xc] sm:$0xf] }
 0x18b   : > { %v3197_v26 = vrot.slane %v3195_v9, 4  ;;  %v3214_v27 = vshll.u32 %v8838_v54, 16  ;;  %v6589_v32 = vcombine.low %v1716_v6, %v1726_v20  ;;  %v3178_v33 = vrot.slane %v3177_v11, 4  ;;  %v8874_v6 = vld [vmem:[#allocation2 + $0x10] sm:$0xf] }
 0x18c   : > { %v3188_v34 = vrot.slane %v3187_v12, 4  ;;  %v3200_v38 = vrot.slane %v3198_v14, 5  ;;  %v3206_v40 = vrot.slane %v3204_v15, 5  ;;  %v3210_v43 = vrot.slane %v3208_v42, 4  ;;  %v3110_v11 = vld [vmem:[#allocation2 + $0x3c] sm:$0xf] }
 0x18d   : > { %v3216_v50 = vrot.slane %v3214_v27, 5  ;;  %v2120_v53 = vsel %vm1826_vm4, %v8068_v45, 0  ;;  %7260 = vmatmul.mubr.msk.bf16.gmra.mrb[60].mxu0 %vm1777_vm8, %v6589_v32  ;;  %v3183_v61 = vsel %vm8397_vm7, %v3178_v33, %v3182_v3  ;;  %v6606_v0 = vcombine.low %v8069_v1, %v8871_v7  ;;  %v8883_v15 = vld [vmem:[%s10240_s3 + $0x18] sm:$0xf]  ;;  %v8892_v33 = vld [vmem:[#allocation2 + $0x40] sm:$0xf] }
 0x18e   : > { %v3193_v23 = vsel %vm8397_vm7, %v3188_v34, %v3192_v46  ;;  %v3201_v59 = vor.u32 %v3200_v38, %v3197_v26  ;;  %v3211_v18 = vor.u32 %v3210_v43, %v3206_v40  ;;  %7264 = vmatpush3.bf16.msra.mxu0 %v2120_v53  ;;  %v6607_v44 = vcombine.low %v8071_v4, %v8874_v6  ;;  %v8073_v27 = vld [vmem:[#allocation2 + $0x18] sm:$0xf]  ;;  %v8896_v53 = vld [vmem:[#allocation2 + $0x44] sm:$0x1] }
 0x18f   : > { %v6722_v2 = vcombine.low %v3183_v61, %v3193_v23  ;;  %v3219_v9 = vshrl.u32 %v3107_v16, 16  ;;  %7265 = vmatprep.mubr.msk.bf16.mxu0 %vm1777_vm8, %v6606_v0  ;;  %v3222_v46 = vshll.u32 %v3107_v16, 16  ;;  %v3228_v12 = vshll.u32 %v8853_v28, 16  ;;  %7958 = vmatprep.subr.msk.bf16.mxu0 %vm1826_vm4, %v8864_v58  ;;  %v8889_v16 = vld [vmem:[#allocation2 + $0x1c] sm:$0xf]  ;;  %10277 = vst [vmem:[#allocation6_spill] sm:$0xff] %v8896_v53 }
 0x190   : > { %v3202_v3 = vrot.slane %v3201_v59, 4  ;;  %v3232_v14 = vshrl.u32 %v8853_v28, 16  ;;  %v3212_v20 = vrot.slane %v3211_v18, 4  ;;  %v3238_v42 = vshll.u32 %v8855_v52, 16 }
 0x191   : > { %7368 = vmatmul.mubr.msk.bf16.vlgmr.msra.gmra.mrb[0].mxu1 %vm1777_vm8, %v6722_v2  ;;  %v3221_v26 = vrot.slane %v3219_v9, 4  ;;  %v6608_v32 = vcombine.low %v8073_v27, %v8889_v16  ;;  %v3224_v38 = vrot.slane %v3222_v46, 5  ;;  %v3230_v43 = vrot.slane %v3228_v12, 5  ;;  %v8905_v12 = vld [vmem:[#allocation2 + $0x4c] sm:$0xf] }
 0x192   : > { %7400 = vmatpush3.bf16.msra.mxu1 %v4099_v29  ;;  %v3207_v34 = vsel %vm8397_vm7, %v3202_v3, %v3206_v40  ;;  %v3234_v45 = vrot.slane %v3232_v14, 4  ;;  %v3217_v61 = vsel %vm8397_vm7, %v3212_v20, %v3216_v50  ;;  %v3240_v23 = vrot.slane %v3238_v42, 5  ;;  %v3113_v40 = vld [vmem:[#allocation2 + $0x48] sm:$0xf]  ;;  %v8075_v20 = vld [vmem:[#allocation2 + $0x24] sm:$0xf] }
 0x193   : > { %v3243_v59 = vshrl.u32 %v3110_v11, 16  ;;  %v3246_v1 = vshll.u32 %v3110_v11, 16  ;;  %7962 = vmatprep.subr.msk.bf16.mxu1 %vm1826_vm4, %v8883_v15  ;;  %v6723_v0 = vcombine.low %v3207_v34, %v3217_v61  ;;  %v3225_v2 = vor.u32 %v3224_v38, %v3221_v26  ;;  %v8909_v26 = vld [vmem:[#allocation2 + $0x28] sm:$0xf] }
 0x194   : > { %v3235_v29 = vor.u32 %v3234_v45, %v3230_v43  ;;  %v3252_v18 = vshll.u32 %v8892_v33, 16  ;;  %v3256_v3 = vshrl.u32 %v8892_v33, 16  ;;  %v3262_v46 = vshll.u32 %v8896_v53, 16  ;;  %v8913_v45 = vld [vmem:[#allocation2 + $0x50] sm:$0x1] }
 0x195   : > { %v3245_v4 = vrot.slane %v3243_v59, 4  ;;  %v3248_v9 = vrot.slane %v3246_v1, 5  ;;  %7371 = vmatprep.mubr.msk.bf16.mxu1 %vm1777_vm8, %v6723_v0  ;;  %7266 = vmatmul.mubr.msk.bf16.vlgmr.msra.gmra.mrb[32].mxu0 %vm1777_vm8, %v6607_v44  ;;  %v3226_v50 = vrot.slane %v3225_v2, 4  ;;  %v6609_v42 = vcombine.low %v8075_v20, %v8909_v26  ;;  %10278 = vst [vmem:[#allocation7_spill] sm:$0xff] %v8913_v45  ;;  %v3116_v2 = vld [vmem:[#allocation2 + $0x54] sm:$0xf] }
 0x196   : > { %v3236_v11 = vrot.slane %v3235_v29, 4  ;;  %v3254_v14 = vrot.slane %v3252_v18, 5  ;;  %7269 = vmatprep.mubr.msk.bf16.mxu0 %vm1777_vm8, %v6608_v32  ;;  %v3258_v34 = vrot.slane %v3256_v3, 4  ;;  %v3264_v38 = vrot.slane %v3262_v46, 5  ;;  %v8922_v53 = vld [vmem:[#allocation2 + $0x58] sm:$0xf] }
 0x197   : > { %v3249_v27 = vor.u32 %v3248_v9, %v3245_v4  ;;  %v3267_v61 = vshrl.u32 %v3113_v40, 16  ;;  %v3231_v59 = vsel %vm8397_vm7, %v3226_v50, %v3230_v43  ;;  %v3270_v1 = vshll.u32 %v3113_v40, 16  ;;  %10279 = vst [vmem:[#allocation8_spill] sm:$0xff] %v8922_v53  ;;  %v8077_v40 = vld [vmem:[#allocation2 + $0x30] sm:$0xf] }
 0x198   : > { %v3241_v44 = vsel %vm8397_vm7, %v3236_v11, %v3240_v23  ;;  %v3276_v0 = vshll.u32 %v8905_v12, 16  ;;  %v3259_v20 = vor.u32 %v3258_v34, %v3254_v14  ;;  %v3280_v3 = vshrl.u32 %v8905_v12, 16  ;;  %v8927_v50 = vld [vmem:[#allocation2 + $0x34] sm:$0xf] }
 0x199   : > { %v6724_v29 = vcombine.low %v3231_v59, %v3241_v44  ;;  %v3250_v18 = vrot.slane %v3249_v27, 4  ;;  %v3269_v32 = vrot.slane %v3267_v61, 4  ;;  %v3272_v4 = vrot.slane %v3270_v1, 5  ;;  %10280 = vst [vmem:[#allocation9_spill] sm:$0xff] %v8927_v50  ;;  %v8930_v44 = vld [vmem:[#allocation2 + $0x5c] sm:$0x1] }
 0x19a   : > { %v3278_v9 = vrot.slane %v3276_v0, 5  ;;  %v3286_v46 = vshll.u32 %v8913_v45, 16  ;;  %v3260_v23 = vrot.slane %v3259_v20, 4  ;;  %v6610_v11 = vcombine.low %v8077_v40, %v8927_v50  ;;  %10281 = vst [vmem:[#allocation10_spill] sm:$0xff] %v8930_v44 }
 0x19b   : > { %7372 = vmatmul.mubr.msk.bf16.gmra.mrb[4].mxu1 %vm1777_vm8, %v6724_v29  ;;  %v3255_v43 = vsel %vm8397_vm7, %v3250_v18, %v3254_v14  ;;  %v3291_v27 = vshrl.u32 %v3116_v2, 16  ;;  %v3273_v34 = vor.u32 %v3272_v4, %v3269_v32  ;;  %v3282_v61 = vrot.slane %v3280_v3, 4  ;;  %v3119_v18 = vld [vmem:[#allocation2 + $0x60] sm:$0xf]  ;;  %v8937_v4 = vld [vmem:[#allocation2 + $0x64] sm:$0xf] }
 0x19c   : > { %v3288_v59 = vrot.slane %v3286_v46, 5  ;;  %v3294_v1 = vshll.u32 %v3116_v2, 16  ;;  %v3265_v0 = vsel %vm8397_vm7, %v3260_v23, %v3264_v38  ;;  %v3300_v45 = vshll.u32 %v8922_v53, 16  ;;  %v8079_v46 = vld [vmem:[#allocation2 + $0x3c] sm:$0xf] }
 0x19d   : > { %v3293_v29 = vrot.slane %v3291_v27, 4  ;;  %v3304_v14 = vshrl.u32 %v8922_v53, 16  ;;  %v6725_v20 = vcombine.low %v3255_v43, %v3265_v0  ;;  %7270 = vmatmul.mubr.msk.bf16.gmra.mrb[36].mxu0 %vm1777_vm8, %v6609_v42  ;;  %v3274_v40 = vrot.slane %v3273_v34, 4  ;;  %v8945_v0 = vld [vmem:[#allocation2 + $0x68] sm:$0x1] }
 0x19e   : > { %v3283_v50 = vor.u32 %v3282_v61, %v3278_v9  ;;  %v3296_v32 = vrot.slane %v3294_v1, 5  ;;  %7273 = vmatprep.mubr.msk.bf16.mxu0 %vm1777_vm8, %v6610_v11  ;;  %v3302_v2 = vrot.slane %v3300_v45, 5  ;;  %v3310_v38 = vshll.u32 %v8930_v44, 16 }
 0x19f   : > { %v3306_v3 = vrot.slane %v3304_v14, 4  ;;  %v6611_v23 = vcombine.low %v8079_v46, %v8643_v56  ;;  %7375 = vmatprep.mubr.msk.bf16.mxu1 %vm1777_vm8, %v6725_v20  ;;  %v3279_v43 = vsel %vm8397_vm7, %v3274_v40, %v3278_v9  ;;  %v3315_v34 = vshrl.u32 %v3119_v18, 16  ;;  %v3122_v46 = vld [vmem:[#allocation2 + $0x6c] sm:$0xf]  ;;  %v8951_v40 = vld [vmem:[#allocation2 + $0x70] sm:$0xf] }
 0x1a0   : > { %v3284_v42 = vrot.slane %v3283_v50, 4  ;;  %v3297_v27 = vor.u32 %v3296_v32, %v3293_v29  ;;  %v3312_v1 = vrot.slane %v3310_v38, 5  ;;  %v3318_v11 = vshll.u32 %v3119_v18, 16 }
 0x1a1   : > { %v3307_v61 = vor.u32 %v3306_v3, %v3302_v2  ;;  %v3324_v45 = vshll.u32 %v8937_v4, 16  ;;  %v3317_v56 = vrot.slane %v3315_v34, 4  ;;  %v3328_v20 = vshrl.u32 %v8937_v4, 16 }
 0x1a2   : > { %v3289_v14 = vsel %vm8397_vm7, %v3284_v42, %v3288_v59  ;;  %v3298_v44 = vrot.slane %v3297_v27, 4  ;;  %v3320_v50 = vrot.slane %v3318_v11, 5  ;;  %v3334_v3 = vshll.u32 %v8945_v0, 16  ;;  %v8961_v42 = vld [vmem:[#allocation2 + $0x74] sm:$0x1] }
 0x1a3   : > { %v6726_v53 = vcombine.low %v3279_v43, %v3289_v14  ;;  %v3308_v9 = vrot.slane %v3307_v61, 4  ;;  %v3326_v29 = vrot.slane %v3324_v45, 5  ;;  %v3330_v18 = vrot.slane %v3328_v20, 4  ;;  %10282 = vst [vmem:[#allocation11_spill] sm:$0xff] %v8961_v42  ;;  %v3125_v45 = vld [vmem:[#allocation2 + $0x78] sm:$0xf] }
 0x1a4   : > { %v3303_v32 = vsel %vm8397_vm7, %v3298_v44, %v3302_v2  ;;  %v6612_v59 = vcombine.low %v8654_v17, %v8656_v19  ;;  %v3321_v43 = vor.u32 %v3320_v50, %v3317_v56  ;;  %v3339_v27 = vshrl.u32 %v3122_v46, 16 }
 0x1a5   : > { %7376 = vmatmul.mubr.msk.bf16.gmra.mrb[8].mxu1 %vm1777_vm8, %v6726_v53  ;;  %v3313_v38 = vsel %vm8397_vm7, %v3308_v9, %v3312_v1  ;;  %v3342_v34 = vshll.u32 %v3122_v46, 16  ;;  %7274 = vmatmul.mubr.msk.bf16.gmra.mrb[40].mxu0 %vm1777_vm8, %v6611_v23  ;;  %v3331_v44 = vor.u32 %v3330_v18, %v3326_v29  ;;  %v3336_v2 = vrot.slane %v3334_v3, 5  ;;  %v8967_v1 = vld [vmem:[#allocation2 + $0x7c] sm:$0xf]  ;;  %v8975_v18 = vld [vmem:[#allocation2 + $0x80] sm:$0x1] }
 0x1a6   : > { %v6727_v61 = vcombine.low %v3303_v32, %v3313_v38  ;;  %v3348_v11 = vshll.u32 %v8951_v40, 16  ;;  %v3322_v14 = vrot.slane %v3321_v43, 4  ;;  %7277 = vmatprep.mubr.msk.bf16.mxu0 %vm1777_vm8, %v6612_v59  ;;  %v3341_v17 = vrot.slane %v3339_v27, 4 }
 0x1a7   : > { %v3344_v19 = vrot.slane %v3342_v34, 5  ;;  %v3352_v53 = vshrl.u32 %v8951_v40, 16  ;;  %v3332_v56 = vrot.slane %v3331_v44, 4  ;;  %v3358_v23 = vshll.u32 %v8961_v42, 16  ;;  %v3128_v34 = vld [vmem:[#allocation2 + $0x84] sm:$0xf] }
 0x1a8   : > { %7379 = vmatprep.mubr.msk.bf16.mxu1 %vm1777_vm8, %v6727_v61  ;;  %v3350_v20 = vrot.slane %v3348_v11, 5  ;;  %v6613_v46 = vcombine.low %v8679_v47, %v8691_v21  ;;  %v3327_v9 = vsel %vm8397_vm7, %v3322_v14, %v3326_v29  ;;  %v3363_v3 = vshrl.u32 %v3125_v45, 16 }
 0x1a9   : > { %v3345_v50 = vor.u32 %v3344_v19, %v3341_v17  ;;  %v3354_v32 = vrot.slane %v3352_v53, 4  ;;  %v3337_v59 = vsel %vm8397_vm7, %v3332_v56, %v3336_v2  ;;  %v3360_v38 = vrot.slane %v3358_v23, 5  ;;  %v8982_v17 = vld [vmem:[#allocation2 + $0x88] sm:$0xf] }
 0x1aa   : > { %v3366_v43 = vshll.u32 %v3125_v45, 16  ;;  %v3372_v27 = vshll.u32 %v8967_v1, 16  ;;  %v6728_v61 = vcombine.low %v3327_v9, %v3337_v59  ;;  %v3365_v47 = vrot.slane %v3363_v3, 4 }
 0x1ab   : > { %v3346_v44 = vrot.slane %v3345_v50, 4  ;;  %v3355_v11 = vor.u32 %v3354_v32, %v3350_v20  ;;  %v3376_v29 = vshrl.u32 %v8967_v1, 16  ;;  %v3382_v14 = vshll.u32 %v8975_v18, 16  ;;  %v8990_v50 = vld [vmem:[#allocation2 + $0x8c] sm:$0x1] }
 0x1ac   : > { %v3368_v21 = vrot.slane %v3366_v43, 5  ;;  %v3374_v42 = vrot.slane %v3372_v27, 5  ;;  %v6614_v19 = vcombine.low %v8703_v48, %v8705_v55  ;;  %v3387_v53 = vshrl.u32 %v3128_v34, 16  ;;  %v3131_v48 = vld [vmem:[#allocation2 + $0x90] sm:$0xf] }
 0x1ad   : > { %7380 = vmatmul.mubr.msk.bf16.gmra.mrb[12].mxu1 %vm1777_vm8, %v6728_v61  ;;  %v3351_v2 = vsel %vm8397_vm7, %v3346_v44, %v3350_v20  ;;  %v3356_v45 = vrot.slane %v3355_v11, 4  ;;  %7278 = vmatmul.mubr.msk.bf16.gmra.mrb[44].mxu0 %vm1777_vm8, %v6613_v46  ;;  %v3378_v23 = vrot.slane %v3376_v29, 4  ;;  %v3384_v9 = vrot.slane %v3382_v14, 5  ;;  %v8997_v44 = vld [vmem:[#allocation2 + $0x94] sm:$0xf] }
 0x1ae   : > { %v3369_v56 = vor.u32 %v3368_v21, %v3365_v47  ;;  %v3390_v32 = vshll.u32 %v3128_v34, 16  ;;  %7281 = vmatprep.mubr.msk.bf16.mxu0 %vm1777_vm8, %v6614_v19  ;;  %v3389_v59 = vrot.slane %v3387_v53, 4  ;;  %v3396_v20 = vshll.u32 %v8982_v17, 16  ;;  %v9005_v53 = vld [vmem:[#allocation2 + $0x98] sm:$0x1] }
 0x1af   : > { %v3361_v3 = vsel %vm8397_vm7, %v3356_v45, %v3360_v38  ;;  %v3400_v43 = vshrl.u32 %v8982_v17, 16  ;;  %v3379_v46 = vor.u32 %v3378_v23, %v3374_v42  ;;  %v3406_v34 = vshll.u32 %v8990_v50, 16 }
 0x1b0   : > { %v6729_v55 = vcombine.low %v3351_v2, %v3361_v3  ;;  %v3370_v27 = vrot.slane %v3369_v56, 4  ;;  %v3392_v61 = vrot.slane %v3390_v32, 5  ;;  %v3398_v11 = vrot.slane %v3396_v20, 5  ;;  %v3134_v20 = vld [vmem:[#allocation2 + $0x9c] sm:$0xf] }
 0x1b1   : > { %v3402_v47 = vrot.slane %v3400_v43, 4  ;;  %v6615_v38 = vcombine.low %v8717_v62, %v8723_v35  ;;  %v3380_v29 = vrot.slane %v3379_v46, 4  ;;  %v3411_v2 = vshrl.u32 %v3131_v48, 16 }
 0x1b2   : > { %7383 = vmatprep.mubr.msk.bf16.mxu1 %vm1777_vm8, %v6729_v55  ;;  %v3375_v21 = vsel %vm8397_vm7, %v3370_v27, %v3374_v42  ;;  %v3393_v14 = vor.u32 %v3392_v61, %v3389_v59  ;;  %v3408_v19 = vrot.slane %v3406_v34, 5  ;;  %v3414_v56 = vshll.u32 %v3131_v48, 16  ;;  %v9011_v27 = vld [vmem:[#allocation2 + $0xa0] sm:$0xf] }
 0x1b3   : > { %v3403_v45 = vor.u32 %v3402_v47, %v3398_v11  ;;  %v3420_v23 = vshll.u32 %v8997_v44, 16  ;;  %v3385_v32 = vsel %vm8397_vm7, %v3380_v29, %v3384_v9  ;;  %v3413_v62 = vrot.slane %v3411_v2, 4 }
 0x1b4   : > { %v3394_v3 = vrot.slane %v3393_v14, 4  ;;  %v3424_v35 = vshrl.u32 %v8997_v44, 16  ;;  %v6730_v43 = vcombine.low %v3375_v21, %v3385_v32  ;;  %v3416_v55 = vrot.slane %v3414_v56, 5  ;;  %v9022_v21 = vld [vmem:[#allocation2 + $0xa4] sm:$0x1] }
 0x1b5   : > { %v3404_v42 = vrot.slane %v3403_v45, 4  ;;  %v3422_v59 = vrot.slane %v3420_v23, 5  ;;  %7282 = vmatmul.mubr.msk.bf16.gmra.mrb[48].mxu0 %vm1777_vm8, %v6615_v38  ;;  %v3430_v61 = vshll.u32 %v9005_v53, 16  ;;  %v6616_v9 = vcombine.low %v8725_v5, %v8734_v25  ;;  %v3137_v56 = vld [vmem:[#allocation2 + $0xa8] sm:$0xf] }
 0x1b6   : > { %v3399_v46 = vsel %vm8397_vm7, %v3394_v3, %v3398_v11  ;;  %v3426_v48 = vrot.slane %v3424_v35, 4  ;;  %7384 = vmatmul.mubr.msk.bf16.gmra.mrb[16].mxu1 %vm1777_vm8, %v6730_v43  ;;  %v3417_v34 = vor.u32 %v3416_v55, %v3413_v62  ;;  %v3435_v29 = vshrl.u32 %v3134_v20, 16  ;;  %v9027_v3 = vld [vmem:[#allocation2 + $0xac] sm:$0xf] }
 0x1b7   : > { %v3409_v47 = vsel %vm8397_vm7, %v3404_v42, %v3408_v19  ;;  %v3438_v14 = vshll.u32 %v3134_v20, 16  ;;  %v3432_v45 = vrot.slane %v3430_v61, 5  ;;  %7285 = vmatprep.mubr.msk.bf16.mxu0 %vm1777_vm8, %v6616_v9  ;;  %v3444_v38 = vshll.u32 %v9011_v27, 16 }
 0x1b8   : > { %v6731_v2 = vcombine.low %v3399_v46, %v3409_v47  ;;  %v3427_v11 = vor.u32 %v3426_v48, %v3422_v59  ;;  %v3418_v23 = vrot.slane %v3417_v34, 4  ;;  %v3437_v5 = vrot.slane %v3435_v29, 4  ;;  %v9035_v46 = vld [vmem:[#allocation2 + $0xb0] sm:$0x1]  ;;  %v3140_v29 = vld [vmem:[#allocation2 + $0xb4] sm:$0xf] }
 0x1b9   : > { %v3440_v25 = vrot.slane %v3438_v14, 5  ;;  %v3448_v32 = vshrl.u32 %v9011_v27, 16  ;;  %v3446_v62 = vrot.slane %v3444_v38, 5  ;;  %v3454_v35 = vshll.u32 %v9022_v21, 16 }
 0x1ba   : > { %7387 = vmatprep.mubr.msk.bf16.mxu1 %vm1777_vm8, %v6731_v2  ;;  %v3428_v19 = vrot.slane %v3427_v11, 4  ;;  %v6617_v20 = vcombine.low %v8743_v49, %v8748_v60  ;;  %v3423_v43 = vsel %vm8397_vm7, %v3418_v23, %v3422_v59  ;;  %v3459_v48 = vshrl.u32 %v3137_v56, 16 }
 0x1bb   : > { %v3441_v42 = vor.u32 %v3440_v25, %v3437_v5  ;;  %v3450_v55 = vrot.slane %v3448_v32, 4  ;;  %v3456_v9 = vrot.slane %v3454_v35, 5  ;;  %v3462_v47 = vshll.u32 %v3137_v56, 16  ;;  %v9043_v5 = vld [vmem:[#allocation2 + $0xb8] sm:$0xf] }
 0x1bc   : > { %v3433_v61 = vsel %vm8397_vm7, %v3428_v19, %v3432_v45  ;;  %v3468_v34 = vshll.u32 %v9027_v3, 16  ;;  %v3461_v49 = vrot.slane %v3459_v48, 4  ;;  %v3472_v38 = vshrl.u32 %v9027_v3, 16 }
 0x1bd   : > { %v6732_v14 = vcombine.low %v3423_v43, %v3433_v61  ;;  %v3442_v2 = vrot.slane %v3441_v42, 4  ;;  %v3451_v11 = vor.u32 %v3450_v55, %v3446_v62  ;;  %7286 = vmatmul.mubr.msk.bf16.gmra.mrb[52].mxu0 %vm1777_vm8, %v6617_v20  ;;  %v3464_v60 = vrot.slane %v3462_v47, 5  ;;  %v9050_v43 = vld [vmem:[#allocation2 + $0xbc] sm:$0x1]  ;;  %v3143_v47 = vld [vmem:[#allocation2 + $0xc0] sm:$0xf] }
 0x1be   : > { %v3470_v59 = vrot.slane %v3468_v34, 5  ;;  %v3478_v23 = vshll.u32 %v9035_v46, 16  ;;  %v6618_v25 = vcombine.low %v8758_v24, %v8763_v10  ;;  %v3483_v32 = vshrl.u32 %v3140_v29, 16 }
 0x1bf   : > { %7388 = vmatmul.mubr.msk.bf16.gmra.mrb[20].mxu1 %vm1777_vm8, %v6732_v14  ;;  %v3447_v45 = vsel %vm8397_vm7, %v3442_v2, %v3446_v62  ;;  %v3452_v56 = vrot.slane %v3451_v11, 4  ;;  %v3465_v19 = vor.u32 %v3464_v60, %v3461_v49  ;;  %v3474_v35 = vrot.slane %v3472_v38, 4  ;;  %v9057_v2 = vld [vmem:[#allocation2 + $0xc4] sm:$0xf] }
 0x1c0   : > { %v3480_v20 = vrot.slane %v3478_v23, 5  ;;  %v3486_v42 = vshll.u32 %v3140_v29, 16  ;;  %7289 = vmatprep.mubr.msk.bf16.mxu0 %vm1777_vm8, %v6618_v25  ;;  %v3485_v48 = vrot.slane %v3483_v32, 4  ;;  %v3492_v61 = vshll.u32 %v9043_v5, 16  ;;  %v9065_v32 = vld [vmem:[#allocation2 + $0xc8] sm:$0x1] }
 0x1c1   : > { %v3457_v55 = vsel %vm8397_vm7, %v3452_v56, %v3456_v9  ;;  %v3496_v62 = vshrl.u32 %v9043_v5, 16  ;;  %v3466_v24 = vrot.slane %v3465_v19, 4  ;;  %v3475_v10 = vor.u32 %v3474_v35, %v3470_v59 }
 0x1c2   : > { %v6733_v34 = vcombine.low %v3447_v45, %v3457_v55  ;;  %v3488_v14 = vrot.slane %v3486_v42, 5  ;;  %v3494_v11 = vrot.slane %v3492_v61, 5  ;;  %v3502_v29 = vshll.u32 %v9050_v43, 16 }
 0x1c3   : > { %v3498_v49 = vrot.slane %v3496_v62, 4  ;;  %v6619_v9 = vcombine.low %v8772_v30, %v8776_v37  ;;  %v3471_v60 = vsel %vm8397_vm7, %v3466_v24, %v3470_v59  ;;  %v3476_v38 = vrot.slane %v3475_v10, 4 }
 0x1c4   : > { %7391 = vmatprep.mubr.msk.bf16.mxu1 %vm1777_vm8, %v6733_v34  ;;  %v3489_v23 = vor.u32 %v3488_v14, %v3485_v48  ;;  %v3507_v45 = vshrl.u32 %v3143_v47, 16  ;;  %v3504_v25 = vrot.slane %v3502_v29, 5  ;;  %v3510_v19 = vshll.u32 %v3143_v47, 16 }
 0x1c5   : > { %v3499_v56 = vor.u32 %v3498_v49, %v3494_v11  ;;  %v3516_v35 = vshll.u32 %v9057_v2, 16  ;;  %v3481_v42 = vsel %vm8397_vm7, %v3476_v38, %v3480_v20  ;;  %7290 = vmatmul.mubr.msk.bf16.gmra.mrb[56].mxu0 %vm1777_vm8, %v6619_v9  ;;  %v3520_v37 = vshrl.u32 %v9057_v2, 16  ;;  %v3824_v49 = vld [vmem:[#allocation2 + $0xc] sm:$0xe] }
 0x1c6   : > { %v3490_v55 = vrot.slane %v3489_v23, 4  ;;  %v3509_v30 = vrot.slane %v3507_v45, 4  ;;  %v6734_v59 = vcombine.low %v3471_v60, %v3481_v42  ;;  %v3512_v48 = vrot.slane %v3510_v19, 5 }
 0x1c7   : > { %v3500_v61 = vrot.slane %v3499_v56, 4  ;;  %v3518_v62 = vrot.slane %v3516_v35, 5  ;;  %v3522_v24 = vrot.slane %v3520_v37, 4  ;;  %v3526_v47 = vshll.u32 %v9065_v32, 16 }
 0x1c8   : > { %v3495_v34 = vsel %vm8397_vm7, %v3490_v55, %v3494_v11  ;;  %v6620_v10 = vcombine.low %v8778_v41, %v8788_v63  ;;  %7392 = vmatmul.mubr.msk.bf16.gmra.mrb[24].mxu1 %vm1777_vm8, %v6734_v59  ;;  %v3513_v14 = vor.u32 %v3512_v48, %v3509_v30  ;;  %vm2332_vm2 = vcmask 1046532   ;;  %v3825_v11 = vld [vmem:[#allocation2 + $0x18] sm:$0xe]  ;;  %v2283_v30 = vld [vmem:[#allocation2] sm:$0xe] }
 0x1c9   : > { %v3505_v20 = vsel %vm8397_vm7, %v3500_v61, %v3504_v25  ;;  %v3523_v9 = vor.u32 %v3522_v24, %v3518_v62  ;;  %v3528_v38 = vrot.slane %v3526_v47, 5  ;;  %vm9081_vm3 = vmor %vm2331_vm15, %vm2332_vm2  ;;  %v3890_v41 = vrot.slane %v8799_v36, 5  ;;  %v2284_v47 = vld [vmem:[#allocation2 + $0xc] sm:$0xe] }
 0x1ca   : > { %v6735_v29 = vcombine.low %v3495_v34, %v3505_v20  ;;  %7293 = vmatprep.mubr.msk.bf16.mxu0 %vm1777_vm8, %v6620_v10  ;;  %v3514_v60 = vrot.slane %v3513_v14, 4  ;;  %v6753_v45 = vrot.slane %v3824_v49, 9  ;;  %v6621_v56 = vcombine.low %v8808_v57, %v8810_v8  ;;  %v3826_v8 = vld [vmem:[#allocation2 + $0x24] sm:$0xe] }
 0x1cb   : > { %v3524_v63 = vrot.slane %v3523_v9, 4  ;;  %v3897_v25 = vrot.slane %v8820_v13, 5  ;;  %v3892_v19 = vrot.slane %v3890_v41, 4  ;;  %v3893_v35 = vrot.slane %v8801_v31, 5 }
 0x1cc   : > { %7395 = vmatprep.mubr.msk.bf16.mxu1 %vm1777_vm8, %v6735_v29  ;;  %v6754_v42 = vrot.slane %v3825_v11, 9  ;;  %v3900_v55 = vrot.slane %v8825_v22, 5  ;;  %v3519_v37 = vsel %vm8397_vm7, %v3514_v60, %v3518_v62  ;;  %v3891_v59 = vsel %vm9081_vm3, %v6753_v45, %v3890_v41  ;;  %v8080_v29 = vld [vmem:[#allocation2 + $0x8] sm:$0x1]  ;;  %v3827_v11 = vld [vmem:[#allocation2 + $0x30] sm:$0xe] }
 0x1cd   : > { %v3529_v36 = vsel %vm8397_vm7, %v3524_v63, %v3528_v38  ;;  %7294 = vmatmul.mubr.msk.bf16.gmra.mrb[60].mxu0 %vm1777_vm8, %v6621_v56  ;;  %v3899_v57 = vrot.slane %v3897_v25, 4  ;;  %v3894_v31 = vsel %vm9081_vm3, %v3892_v19, %v3893_v35  ;;  %v4458_v22 = vsel %vm1826_vm4, %v8883_v15, 0  ;;  %v8081_v56 = vld [vmem:[#allocation2 + $0x14] sm:$0x1]  ;;  %v2285_v19 = vld [vmem:[#allocation2 + $0x18] sm:$0xe] }
 0x1ce   : > { %v6736_v13 = vcombine.low %v3519_v37, %v3529_v36  ;;  %v3904_v61 = vrot.slane %v8831_v51, 5  ;;  %v6770_v48 = vcombine.low %v3891_v59, %v3894_v31  ;;  %v2545_v34 = vsel %vm1826_vm4, %v8864_v58, 0 }
 0x1cf   : > { %v3901_v62 = vsel %vm9081_vm3, %v3899_v57, %v3900_v55  ;;  %v6638_v24 = vrot.slane %v2283_v30, 9  ;;  %v3898_v10 = vsel %vm9081_vm3, %v6754_v42, %v3897_v25  ;;  %v6755_v20 = vrot.slane %v3826_v8, 9  ;;  %7298 = vmatpush3.bf16.msra.mxu0 %v2545_v34  ;;  %v2286_v34 = vld [vmem:[#allocation2 + $0x24] sm:$0xe] }
 0x1d0   : > { %7396 = vmatmul.mubr.msk.bf16.gmra.mrb[28].mxu1 %vm1777_vm8, %v6736_v13  ;;  %v3906_v14 = vrot.slane %v3904_v61, 4  ;;  %v2336_v15 = vrot.slane %v8871_v7, 5  ;;  %v6771_v51 = vcombine.low %v3898_v10, %v3901_v62  ;;  %v3907_v49 = vrot.slane %v8838_v54, 5  ;;  %v8082_v13 = vld [vmem:[#allocation2 + $0x20] sm:$0x1] }
 0x1d1   : > { %7401 = vmatprep.mubr.msk.bf16.mxu1 %vm1777_vm8, %v6770_v48  ;;  %v2339_v9 = vrot.slane %v8080_v29, 5  ;;  %v2343_v58 = vrot.slane %v8874_v6, 5  ;;  %v3905_v60 = vsel %vm9081_vm3, %v6755_v20, %v3904_v61  ;;  %v6639_v63 = vrot.slane %v2284_v47, 9  ;;  %v3828_v61 = vld [vmem:[#allocation2 + $0x3c] sm:$0xe] }
 0x1d2   : > { %v2337_v38 = vsel %vm9081_vm3, %v6638_v24, %v2336_v15  ;;  %v2338_v41 = vrot.slane %v2336_v15, 4  ;;  %v3908_v7 = vsel %vm9081_vm3, %v3906_v14, %v3907_v49  ;;  %v2346_v25 = vrot.slane %v8081_v56, 5  ;;  %v9137_v24 = vld [vmem:[%s10240_s3 + $0x1c] sm:$0xf]  ;;  %v3829_v29 = vld [vmem:[#allocation2 + $0x48] sm:$0xe] }
 0x1d3   : > { %v2345_v45 = vrot.slane %v2343_v58, 4  ;;  %v3911_v54 = vrot.slane %v8853_v28, 5  ;;  %v2344_v35 = vsel %vm9081_vm3, %v6639_v63, %v2343_v58  ;;  %v6756_v42 = vrot.slane %v3827_v11, 9  ;;  %v8083_v11 = vld [vmem:[#allocation2 + $0x2c] sm:$0x1] }
 0x1d4   : > { %v2340_v6 = vsel %vm9081_vm3, %v2338_v41, %v2339_v9  ;;  %v2350_v55 = vrot.slane %v8889_v16, 5  ;;  %v3914_v59 = vrot.slane %v8855_v52, 5  ;;  %v6640_v8 = vrot.slane %v2285_v19, 9  ;;  %v2287_v41 = vld [vmem:[#allocation2 + $0x30] sm:$0xe]  ;;  %v10287_v19 = vld [vmem:[#allocation7_spill] sm:$0xff] }
 0x1d5   : > { %v6655_v30 = vcombine.low %v2337_v38, %v2340_v6  ;;  %v2347_v37 = vsel %vm9081_vm3, %v2345_v45, %v2346_v25  ;;  %v3913_v36 = vrot.slane %v3911_v54, 4  ;;  %v2353_v31 = vrot.slane %v8082_v13, 5  ;;  %v2288_v13 = vld [vmem:[#allocation2 + $0x3c] sm:$0xe] }
 0x1d6   : > { %v6656_v57 = vcombine.low %v2344_v35, %v2347_v37  ;;  %v2352_v28 = vrot.slane %v2350_v55, 4  ;;  %v6772_v48 = vcombine.low %v3905_v60, %v3908_v7  ;;  %v3912_v62 = vsel %vm9081_vm3, %v6756_v42, %v3911_v54  ;;  %v10286_v7 = vld [vmem:[#allocation9_spill] sm:$0xff] }
 0x1d7   : > { %7299 = vmatprep.mubr.msk.bf16.mxu0 %vm1777_vm8, %v6655_v30  ;;  %v3918_v16 = vrot.slane %v8892_v33, 5  ;;  %v3915_v52 = vsel %vm9081_vm3, %v3913_v36, %v3914_v59  ;;  %v2351_v47 = vsel %vm9081_vm3, %v6640_v8, %v2350_v55  ;;  %v2357_v33 = vrot.slane %v8909_v26, 5  ;;  %v8084_v55 = vld [vmem:[#allocation2 + $0x38] sm:$0x1]  ;;  %v3830_v37 = vld [vmem:[#allocation2 + $0x54] sm:$0xe] }
 0x1d8   : > { %7402 = vmatmul.mubr.msk.bf16.vlgmr.msra.gmra.mrb[0].mxu1 %vm1777_vm8, %v6771_v51  ;;  %7300 = vmatmul.mubr.msk.bf16.vlgmr.msra.gmra.mrb[32].mxu0 %vm1777_vm8, %v6656_v57  ;;  %v2354_v10 = vsel %vm9081_vm3, %v2352_v28, %v2353_v31  ;;  %v6757_v14 = vrot.slane %v3828_v61, 9  ;;  %v10285_v51 = vld [vmem:[#allocation6_spill] sm:$0xff]  ;;  %v6641_v9 = vrot.slane %v2286_v34, 9  ;;  %v2360_v60 = vrot.slane %v8083_v11, 5  ;;  %v10288_v8 = vld [vmem:[#allocation8_spill] sm:$0xff] }
 0x1d9   : > { %7434 = vmatpush3.bf16.msra.mxu1 %v4458_v22  ;;  %7405 = vmatprep.mubr.msk.bf16.mxu1 %vm1777_vm8, %v6772_v48  ;;  %v6657_v20 = vcombine.low %v2351_v47, %v2354_v10  ;;  %v3920_v15 = vrot.slane %v3918_v16, 4  ;;  %v3921_v49 = vrot.slane %v10285_v51, 5  ;;  %v2359_v58 = vrot.slane %v2357_v33, 4  ;;  %v10289_v10 = vld [vmem:[#allocation10_spill] sm:$0xff]  ;;  %v8086_v51 = vld [vmem:[#allocation2 + $0x44] sm:$0x1] }
 0x1da   : > { %v3925_v38 = vrot.slane %v8905_v12, 5  ;;  %7963 = vmatprep.subr.msk.bf16.mxu1 %vm1826_vm4, %v9137_v24  ;;  %v6773_v26 = vcombine.low %v3912_v62, %v3915_v52  ;;  %v3919_v22 = vsel %vm9081_vm3, %v6757_v14, %v3918_v16  ;;  %v2364_v45 = vrot.slane %v10286_v7, 5  ;;  %v8085_v62 = vld [vmem:[#allocation2 + $0x40] sm:$0xf] }
 0x1db   : > { %7303 = vmatprep.mubr.msk.bf16.mxu0 %vm1777_vm8, %v6657_v20  ;;  %v3922_v63 = vsel %vm9081_vm3, %v3920_v15, %v3921_v49  ;;  %v2358_v56 = vsel %vm9081_vm3, %v6641_v9, %v2357_v33  ;;  %v2361_v12 = vsel %vm9081_vm3, %v2359_v58, %v2360_v60  ;;  %v6758_v25 = vrot.slane %v3829_v29, 9  ;;  %v3831_v20 = vld [vmem:[#allocation2 + $0x60] sm:$0xe]  ;;  %v2289_v9 = vld [vmem:[#allocation2 + $0x48] sm:$0xe] }
 0x1dc   : > { %v3927_v54 = vrot.slane %v3925_v38, 4  ;;  %v3928_v6 = vrot.slane %v10287_v19, 5  ;;  %v6642_v35 = vrot.slane %v2287_v41, 9  ;;  %v2366_v42 = vrot.slane %v2364_v45, 4 }
 0x1dd   : > { %v2367_v30 = vrot.slane %v8084_v55, 5  ;;  %v6774_v36 = vcombine.low %v3919_v22, %v3922_v63  ;;  %v6658_v59 = vcombine.low %v2358_v56, %v2361_v12  ;;  %v3926_v57 = vsel %vm9081_vm3, %v6758_v25, %v3925_v38  ;;  %v8087_v38 = vld [vmem:[#allocation2 + $0x4c] sm:$0xf]  ;;  %v8088_v12 = vld [vmem:[#allocation2 + $0x50] sm:$0x1] }
 0x1de   : > { %v3932_v28 = vrot.slane %v10288_v8, 5  ;;  %v3929_v31 = vsel %vm9081_vm3, %v3927_v54, %v3928_v6  ;;  %v2365_v61 = vsel %vm9081_vm3, %v6642_v35, %v2364_v45  ;;  %v2371_v16 = vrot.slane %v8085_v62, 5  ;;  %v3832_v54 = vld [vmem:[#allocation2 + $0x6c] sm:$0xe]  ;;  %v2290_v55 = vld [vmem:[#allocation2 + $0x54] sm:$0xe] }
 0x1df   : > { %v2368_v48 = vsel %vm9081_vm3, %v2366_v42, %v2367_v30  ;;  %v6759_v52 = vrot.slane %v3830_v37, 9  ;;  %v3935_v33 = vrot.slane %v10289_v10, 5  ;;  %v6643_v14 = vrot.slane %v2288_v13, 9  ;;  %v8090_v62 = vld [vmem:[#allocation2 + $0x5c] sm:$0x1] }
 0x1e0   : > { %7406 = vmatmul.mubr.msk.bf16.gmra.mrb[4].mxu1 %vm1777_vm8, %v6773_v26  ;;  %7304 = vmatmul.mubr.msk.bf16.gmra.mrb[36].mxu0 %vm1777_vm8, %v6658_v59  ;;  %v6659_v34 = vcombine.low %v2365_v61, %v2368_v48  ;;  %v3934_v47 = vrot.slane %v3932_v28, 4  ;;  %v2373_v15 = vrot.slane %v2371_v16, 4  ;;  %v2374_v49 = vrot.slane %v8086_v51, 5 }
 0x1e1   : > { %7409 = vmatprep.mubr.msk.bf16.mxu1 %vm1777_vm8, %v6774_v36  ;;  %v3939_v29 = vrot.slane %v8937_v4, 5  ;;  %v6775_v58 = vcombine.low %v3926_v57, %v3929_v31  ;;  %v3933_v11 = vsel %vm9081_vm3, %v6759_v52, %v3932_v28  ;;  %v2378_v41 = vrot.slane %v8087_v38, 5  ;;  %v8089_v36 = vld [vmem:[#allocation2 + $0x58] sm:$0xf]  ;;  %v10290_v31 = vld [vmem:[#allocation11_spill] sm:$0xff] }
 0x1e2   : > { %7307 = vmatprep.mubr.msk.bf16.mxu0 %vm1777_vm8, %v6659_v34  ;;  %v3936_v60 = vsel %vm9081_vm3, %v3934_v47, %v3935_v33  ;;  %v2372_v26 = vsel %vm9081_vm3, %v6643_v14, %v2371_v16  ;;  %v2375_v22 = vsel %vm9081_vm3, %v2373_v15, %v2374_v49  ;;  %v6760_v63 = vrot.slane %v3831_v20, 9  ;;  %v3833_v57 = vld [vmem:[#allocation2 + $0x78] sm:$0xe]  ;;  %v2291_v33 = vld [vmem:[#allocation2 + $0x60] sm:$0xe] }
 0x1e3   : > { %v3941_v4 = vrot.slane %v3939_v29, 4  ;;  %v3942_v7 = vrot.slane %v8945_v0, 5  ;;  %v6644_v45 = vrot.slane %v2289_v9, 9  ;;  %v2380_v56 = vrot.slane %v2378_v41, 4  ;;  %v8091_v20 = vld [vmem:[#allocation2 + $0x64] sm:$0xf] }
 0x1e4   : > { %v2381_v25 = vrot.slane %v8088_v12, 5  ;;  %v6776_v19 = vcombine.low %v3933_v11, %v3936_v60  ;;  %v6660_v6 = vcombine.low %v2372_v26, %v2375_v22  ;;  %v3940_v35 = vsel %vm9081_vm3, %v6760_v63, %v3939_v29  ;;  %v8092_v11 = vld [vmem:[#allocation2 + $0x68] sm:$0x1]  ;;  %v3834_v38 = vld [vmem:[#allocation2 + $0x84] sm:$0xe] }
 0x1e5   : > { %v3946_v42 = vrot.slane %v8951_v40, 5  ;;  %v3943_v30 = vsel %vm9081_vm3, %v3941_v4, %v3942_v7  ;;  %v2379_v37 = vsel %vm9081_vm3, %v6644_v45, %v2378_v41  ;;  %v2385_v59 = vrot.slane %v8089_v36, 5  ;;  %v8093_v45 = vld [vmem:[#allocation2 + $0x70] sm:$0xf]  ;;  %v8094_v36 = vld [vmem:[#allocation2 + $0x74] sm:$0x1] }
 0x1e6   : > { %v2382_v0 = vsel %vm9081_vm3, %v2380_v56, %v2381_v25  ;;  %v6761_v28 = vrot.slane %v3832_v54, 9  ;;  %v3949_v61 = vrot.slane %v10290_v31, 5  ;;  %v6645_v40 = vrot.slane %v2290_v55, 9 }
 0x1e7   : > { %v6661_v8 = vcombine.low %v2379_v37, %v2382_v0  ;;  %v3948_v13 = vrot.slane %v3946_v42, 4  ;;  %v2387_v48 = vrot.slane %v2385_v59, 4  ;;  %v2388_v16 = vrot.slane %v8090_v62, 5 }
 0x1e8   : > { %7410 = vmatmul.mubr.msk.bf16.gmra.mrb[8].mxu1 %vm1777_vm8, %v6775_v58  ;;  %7308 = vmatmul.mubr.msk.bf16.gmra.mrb[40].mxu0 %vm1777_vm8, %v6660_v6  ;;  %v3953_v34 = vrot.slane %v8967_v1, 5  ;;  %v3947_v52 = vsel %vm9081_vm3, %v6761_v28, %v3946_v42  ;;  %v6762_v10 = vrot.slane %v3833_v57, 9  ;;  %v2392_v14 = vrot.slane %v8091_v20, 5  ;;  %v3835_v6 = vld [vmem:[#allocation2 + $0x90] sm:$0xe] }
 0x1e9   : > { %7413 = vmatprep.mubr.msk.bf16.mxu1 %vm1777_vm8, %v6776_v19  ;;  %7311 = vmatprep.mubr.msk.bf16.mxu0 %vm1777_vm8, %v6661_v8  ;;  %v3950_v47 = vsel %vm9081_vm3, %v3948_v13, %v3949_v61  ;;  %v2389_v51 = vsel %vm9081_vm3, %v2387_v48, %v2388_v16  ;;  %v3956_v1 = vrot.slane %v8975_v18, 5  ;;  %v6777_v29 = vcombine.low %v3940_v35, %v3943_v30  ;;  %v2292_v42 = vld [vmem:[#allocation2 + $0x6c] sm:$0xe]  ;;  %v2293_v30 = vld [vmem:[#allocation2 + $0x78] sm:$0xe] }
 0x1ea   : > { %v6778_v15 = vcombine.low %v3947_v52, %v3950_v47  ;;  %v3955_v49 = vrot.slane %v3953_v34, 4  ;;  %v2386_v9 = vsel %vm9081_vm3, %v6645_v40, %v2385_v59  ;;  %v2394_v58 = vrot.slane %v2392_v14, 4  ;;  %v8096_v48 = vld [vmem:[#allocation2 + $0x80] sm:$0x1]  ;;  %v3836_v16 = vld [vmem:[#allocation2 + $0x9c] sm:$0xe] }
 0x1eb   : > { %v2395_v60 = vrot.slane %v8092_v11, 5  ;;  %v9214_v41 = vsel %vm9081_vm3, %v6762_v10, %v3953_v34  ;;  %v6646_v22 = vrot.slane %v2291_v33, 9  ;;  %v3960_v63 = vrot.slane %v8982_v17, 5  ;;  %v2294_v11 = vld [vmem:[#allocation2 + $0x84] sm:$0xe] }
 0x1ec   : > { %v9218_v26 = vsel %vm9081_vm3, %v3955_v49, %v3956_v1  ;;  %v6662_v18 = vcombine.low %v2386_v9, %v2389_v51  ;;  %v2399_v56 = vrot.slane %v8093_v45, 5  ;;  %v6763_v25 = vrot.slane %v3834_v38, 9  ;;  %v3837_v9 = vld [vmem:[#allocation2 + $0xa8] sm:$0xe] }
 0x1ed   : > { %v6779_v4 = vcombine.low %v9214_v41, %v9218_v26  ;;  %v2396_v7 = vsel %vm9081_vm3, %v2394_v58, %v2395_v60  ;;  %v2393_v12 = vsel %vm9081_vm3, %v6646_v22, %v2392_v14  ;;  %v3962_v54 = vrot.slane %v3960_v63, 4  ;;  %v8097_v14 = vld [vmem:[#allocation2 + $0x88] sm:$0xf]  ;;  %v2295_v41 = vld [vmem:[#allocation2 + $0x90] sm:$0xe] }
 0x1ee   : > { %v3963_v19 = vrot.slane %v8990_v50, 5  ;;  %v6663_v35 = vcombine.low %v2393_v12, %v2396_v7  ;;  %v2401_v17 = vrot.slane %v2399_v56, 4  ;;  %v3967_v55 = vrot.slane %v8997_v44, 5  ;;  %v8095_v50 = vld [vmem:[#allocation2 + $0x7c] sm:$0xf] }
 0x1ef   : > { %v3961_v37 = vsel %vm9081_vm3, %v6763_v25, %v3960_v63  ;;  %v2402_v59 = vrot.slane %v8094_v36, 5  ;;  %v2406_v57 = vrot.slane %v8095_v50, 5  ;;  %v6764_v8 = vrot.slane %v3835_v6, 9  ;;  %v8098_v63 = vld [vmem:[#allocation2 + $0x8c] sm:$0x1] }
 0x1f0   : > { %7414 = vmatmul.mubr.msk.bf16.gmra.mrb[12].mxu1 %vm1777_vm8, %v6777_v29  ;;  %7312 = vmatmul.mubr.msk.bf16.gmra.mrb[44].mxu0 %vm1777_vm8, %v6662_v18  ;;  %v3964_v0 = vsel %vm9081_vm3, %v3962_v54, %v3963_v19  ;;  %v3969_v28 = vrot.slane %v3967_v55, 4  ;;  %v3970_v13 = vrot.slane %v9005_v53, 5  ;;  %v6647_v31 = vrot.slane %v2292_v42, 9  ;;  %v8099_v7 = vld [vmem:[#allocation2 + $0x94] sm:$0xf] }
 0x1f1   : > { %7417 = vmatprep.mubr.msk.bf16.mxu1 %vm1777_vm8, %v6778_v15  ;;  %7315 = vmatprep.mubr.msk.bf16.mxu0 %vm1777_vm8, %v6663_v35  ;;  %v6780_v44 = vcombine.low %v3961_v37, %v3964_v0  ;;  %v6648_v61 = vrot.slane %v2293_v30, 9  ;;  %v2408_v40 = vrot.slane %v2406_v57, 4  ;;  %v2409_v62 = vrot.slane %v8096_v48, 5  ;;  %v8100_v6 = vld [vmem:[#allocation2 + $0x98] sm:$0x1] }
 0x1f2   : > { %v2403_v34 = vsel %vm9081_vm3, %v2401_v17, %v2402_v59  ;;  %v9242_v52 = vsel %vm9081_vm3, %v6764_v8, %v3967_v55  ;;  %v9246_v47 = vsel %vm9081_vm3, %v3969_v28, %v3970_v13  ;;  %v3974_v10 = vrot.slane %v9011_v27, 5  ;;  %v3838_v42 = vld [vmem:[#allocation2 + $0xb4] sm:$0xe]  ;;  %v8101_v36 = vld [vmem:[#allocation2 + $0xa0] sm:$0xf] }
 0x1f3   : > { %v2400_v53 = vsel %vm9081_vm3, %v6647_v31, %v2399_v56  ;;  %v6781_v33 = vcombine.low %v9242_v52, %v9246_v47  ;;  %v2410_v20 = vsel %vm9081_vm3, %v2408_v40, %v2409_v62  ;;  %v2413_v15 = vrot.slane %v8097_v14, 5  ;;  %v3839_v28 = vld [vmem:[#allocation2 + $0xc0] sm:$0xe]  ;;  %v8102_v62 = vld [vmem:[#allocation2 + $0xac] sm:$0xf] }
 0x1f4   : > { %v2407_v51 = vsel %vm9081_vm3, %v6648_v61, %v2406_v57  ;;  %v6765_v49 = vrot.slane %v3836_v16, 9  ;;  %v3976_v1 = vrot.slane %v3974_v10, 4  ;;  %v3977_v29 = vrot.slane %v9022_v21, 5 }
 0x1f5   : > { %v6664_v27 = vcombine.low %v2400_v53, %v2403_v34  ;;  %v6665_v58 = vcombine.low %v2407_v51, %v2410_v20  ;;  %v2415_v60 = vrot.slane %v2413_v15, 4  ;;  %v3981_v38 = vrot.slane %v9027_v3, 5  ;;  %v8103_v53 = vld [vmem:[#allocation2 + $0xa4] sm:$0x1]  ;;  %v2297_v51 = vld [vmem:[#allocation2 + $0xa8] sm:$0xe] }
 0x1f6   : > { %v3975_v26 = vsel %vm9081_vm3, %v6765_v49, %v3974_v10  ;;  %v3978_v22 = vsel %vm9081_vm3, %v3976_v1, %v3977_v29  ;;  %v2416_v18 = vrot.slane %v8098_v63, 5  ;;  %v2420_v45 = vrot.slane %v8099_v7, 5  ;;  %v8104_v49 = vld [vmem:[#allocation2 + $0xb0] sm:$0x1]  ;;  %v2298_v63 = vld [vmem:[#allocation2 + $0xb4] sm:$0xe] }
 0x1f7   : > { %v6782_v21 = vcombine.low %v3975_v26, %v3978_v22  ;;  %v6766_v56 = vrot.slane %v3837_v9, 9  ;;  %v3983_v12 = vrot.slane %v3981_v38, 4  ;;  %v3984_v3 = vrot.slane %v9035_v46, 5  ;;  %v8105_v9 = vld [vmem:[#allocation2 + $0xb8] sm:$0xf] }
 0x1f8   : > { %7418 = vmatmul.mubr.msk.bf16.gmra.mrb[16].mxu1 %vm1777_vm8, %v6779_v4  ;;  %7316 = vmatmul.mubr.msk.bf16.gmra.mrb[48].mxu0 %vm1777_vm8, %v6664_v27  ;;  %v6649_v25 = vrot.slane %v2294_v11, 9  ;;  %v6650_v54 = vrot.slane %v2295_v41, 9  ;;  %v2422_v19 = vrot.slane %v2420_v45, 4  ;;  %v2423_v35 = vrot.slane %v8100_v6, 5  ;;  %v6884_v6 = vld [vmem:[%s10240_s3 + $0x20] sm:$0xf] }
 0x1f9   : > { %7421 = vmatprep.mubr.msk.bf16.mxu1 %vm1777_vm8, %v6780_v44  ;;  %7319 = vmatprep.mubr.msk.bf16.mxu0 %vm1777_vm8, %v6665_v58  ;;  %v2417_v4 = vsel %vm9081_vm3, %v2415_v60, %v2416_v18  ;;  %v3982_v17 = vsel %vm9081_vm3, %v6766_v56, %v3981_v38  ;;  %v3985_v55 = vsel %vm9081_vm3, %v3983_v12, %v3984_v3  ;;  %v3988_v46 = vrot.slane %v9043_v5, 5  ;;  %v8106_v18 = vld [vmem:[#allocation2 + $0xbc] sm:$0x1] }
 0x1fa   : > { %v2414_v30 = vsel %vm9081_vm3, %v6649_v25, %v2413_v15  ;;  %v6783_v37 = vcombine.low %v3982_v17, %v3985_v55  ;;  %v2424_v0 = vsel %vm9081_vm3, %v2422_v19, %v2423_v35  ;;  %v2427_v59 = vrot.slane %v8101_v36, 5  ;;  %v8050_v3 = vld [vmem:[#allocation2 + $0x18] sm:$0xff]   ;;  %v8051_v25 = vld [vmem:[#allocation2 + $0x24] sm:$0xff]   ;;  %v8052_v19 = vld [vmem:[#allocation2 + $0x30] sm:$0xff]  }
 0x1fb   : > { %v2421_v50 = vsel %vm9081_vm3, %v6650_v54, %v2420_v45  ;;  %v6767_v57 = vrot.slane %v3838_v42, 9  ;;  %v3990_v44 = vrot.slane %v3988_v46, 4  ;;  %v3991_v8 = vrot.slane %v9050_v43, 5  ;;  %v2296_v43 = vld [vmem:[#allocation2 + $0x9c] sm:$0xe] }
 0x1fc   : > { %v6666_v13 = vcombine.low %v2414_v30, %v2417_v4  ;;  %v6667_v31 = vcombine.low %v2421_v50, %v2424_v0  ;;  %v3995_v5 = vrot.slane %v9057_v2, 5  ;;  %v2429_v48 = vrot.slane %v2427_v59, 4  ;;  %v9323_v35 = vld [vmem:[#allocation2 + $0x1c] sm:$0xf]  ;;  %v8054_v4 = vld [vmem:[#allocation2 + $0x48] sm:$0xff]  }
 0x1fd   : > { %v3989_v61 = vsel %vm9081_vm3, %v6767_v57, %v3988_v46  ;;  %v3992_v40 = vsel %vm9081_vm3, %v3990_v44, %v3991_v8  ;;  %v2434_v16 = vrot.slane %v8102_v62, 5  ;;  %v6768_v52 = vrot.slane %v3839_v28, 9  ;;  %v8053_v42 = vld [vmem:[#allocation2 + $0x3c] sm:$0xff]   ;;  %v4653_v17 = vld [vmem:[#allocation2 + $0x18] sm:$0xf] }
 0x1fe   : > { %v6784_v34 = vcombine.low %v3989_v61, %v3992_v40  ;;  %v3997_v47 = vrot.slane %v3995_v5, 4  ;;  %v3998_v10 = vrot.slane %v9065_v32, 5  ;;  %v2430_v20 = vrot.slane %v8103_v53, 5  ;;  %v4656_v46 = vld [vmem:[#allocation2 + $0x24] sm:$0xf] }
 0x1ff   : > { %v2436_v2 = vrot.slane %v2434_v16, 4  ;;  %v3996_v14 = vsel %vm9081_vm3, %v6768_v52, %v3995_v5  ;;  %v6651_v1 = vrot.slane %v2296_v43, 9  ;;  %v2441_v27 = vrot.slane %v8105_v9, 5  ;;  %v9329_v30 = vld [vmem:[#allocation2 + $0x28] sm:$0xf] }
 0x200   : > { %7422 = vmatmul.mubr.msk.bf16.gmra.mrb[20].mxu1 %vm1777_vm8, %v6781_v33  ;;  %7320 = vmatmul.mubr.msk.bf16.gmra.mrb[52].mxu0 %vm1777_vm8, %v6666_v13  ;;  %v3999_v15 = vsel %vm9081_vm3, %v3997_v47, %v3998_v10  ;;  %v2437_v33 = vrot.slane %v8104_v49, 5  ;;  %v2431_v29 = vsel %vm9081_vm3, %v2429_v48, %v2430_v20  ;;  %v6652_v58 = vrot.slane %v2297_v51, 9  ;;  %v4659_v28 = vld [vmem:[#allocation2 + $0x30] sm:$0xf]  ;;  %v8055_v13 = vld [vmem:[#allocation2 + $0x54] sm:$0xff]  }
 0x201   : > { %7425 = vmatprep.mubr.msk.bf16.mxu1 %vm1777_vm8, %v6782_v21  ;;  %7323 = vmatprep.mubr.msk.bf16.mxu0 %vm1777_vm8, %v6667_v31  ;;  %v6785_v32 = vcombine.low %v3996_v14, %v3999_v15  ;;  %v2428_v60 = vsel %vm9081_vm3, %v6651_v1, %v2427_v59  ;;  %v2443_v22 = vrot.slane %v2441_v27, 4  ;;  %v2444_v7 = vrot.slane %v8106_v18, 5  ;;  %v8056_v31 = vld [vmem:[#allocation2 + $0x60] sm:$0xff]   ;;  %v9342_v10 = vld [vmem:[#allocation2 + $0x34] sm:$0xf] }
 0x202   : > { %v2438_v11 = vsel %vm9081_vm3, %v2436_v2, %v2437_v33  ;;  %v6668_v38 = vcombine.low %v2428_v60, %v2431_v29  ;;  %v2435_v41 = vsel %vm9081_vm3, %v6652_v58, %v2434_v16  ;;  %v6653_v45 = vrot.slane %v2298_v63, 9  ;;  %v9335_v5 = vld [vmem:[#allocation2 + $0x20] sm:$0x1]  ;;  %v4662_v53 = vld [vmem:[#allocation2 + $0x3c] sm:$0xf]  ;;  %v8057_v60 = vld [vmem:[#allocation2 + $0x6c] sm:$0xff]  }
 0x203   : > { %v6669_v26 = vcombine.low %v2435_v41, %v2438_v11  ;;  %v2445_v21 = vsel %vm9081_vm3, %v2443_v22, %v2444_v7  ;;  %v5184_v54 = vsel %vm1826_vm4, %v9137_v24, 0  ;;  %v4711_v24 = vshll.u32 %v9323_v35, 16  ;;  %v9345_v15 = vld [vmem:[#allocation2 + $0x40] sm:$0xf]  ;;  %v9351_v29 = vld [vmem:[#allocation2 + $0x38] sm:$0x1] }
 0x204   : > { %v2442_v56 = vsel %vm9081_vm3, %v6653_v45, %v2441_v27  ;;  %v4715_v55 = vshrl.u32 %v9323_v35, 16  ;;  %v4705_v0 = vshll.u32 %v4653_v17, 16  ;;  %v4726_v36 = vshrl.u32 %v4656_v46, 16 }
 0x205   : > { %v6670_v12 = vcombine.low %v2442_v56, %v2445_v21  ;;  %v4729_v59 = vshll.u32 %v4656_v46, 16  ;;  %v9331_v50 = vrot.slane %v4711_v24, 5  ;;  %v4735_v44 = vshll.u32 %v9329_v30, 16  ;;  %v9360_v21 = vld [vmem:[#allocation2 + $0x4c] sm:$0xf] }
 0x206   : > { %v4717_v57 = vrot.slane %v4715_v55, 4  ;;  %v4739_v8 = vshrl.u32 %v9329_v30, 16  ;;  %v4707_v40 = vrot.slane %v4705_v0, 5  ;;  %v4728_v48 = vrot.slane %v4726_v36, 4 }
 0x207   : > { %v4731_v62 = vrot.slane %v4729_v59, 5  ;;  %v4750_v47 = vshrl.u32 %v4659_v28, 16  ;;  %v4753_v43 = vshll.u32 %v4659_v28, 16  ;;  %v4721_v2 = vshll.u32 %v9335_v5, 16  ;;  %v4668_v28 = vld [vmem:[#allocation2 + $0x54] sm:$0xf] }
 0x208   : > { %7426 = vmatmul.mubr.msk.bf16.gmra.mrb[24].mxu1 %vm1777_vm8, %v6783_v37  ;;  %7324 = vmatmul.mubr.msk.bf16.gmra.mrb[56].mxu0 %vm1777_vm8, %v6668_v38  ;;  %v4702_v37 = vshrl.u32 %v4653_v17, 16  ;;  %v4718_v16 = vor.u32 %v4717_v57, %v9331_v50  ;;  %v4741_v52 = vrot.slane %v4739_v8, 4  ;;  %v4759_v1 = vshll.u32 %v9342_v10, 16  ;;  %v8058_v38 = vld [vmem:[#allocation2 + $0x78] sm:$0xff]  }
 0x209   : > { %7429 = vmatprep.mubr.msk.bf16.mxu1 %vm1777_vm8, %v6784_v34  ;;  %7327 = vmatprep.mubr.msk.bf16.mxu0 %vm1777_vm8, %v6669_v26  ;;  %v9339_v34 = vrot.slane %v4735_v44, 5  ;;  %v4732_v14 = vor.u32 %v4731_v62, %v4728_v48  ;;  %v4752_v33 = vrot.slane %v4750_v47, 4  ;;  %v4755_v9 = vrot.slane %v4753_v43, 5  ;;  %v9369_v17 = vld [vmem:[#allocation2 + $0x58] sm:$0xf] }
 0x20a   : > { %v4704_v61 = vrot.slane %v4702_v37, 4  ;;  %v4719_v51 = vrot.slane %v4718_v16, 4  ;;  %v4763_v27 = vshrl.u32 %v9342_v10, 16  ;;  %v4774_v58 = vshrl.u32 %v4662_v53, 16  ;;  %v4671_v62 = vld [vmem:[#allocation2 + $0x60] sm:$0xf] }
 0x20b   : > { %v4742_v49 = vor.u32 %v4741_v52, %v9339_v34  ;;  %v4777_v11 = vshll.u32 %v4662_v53, 16  ;;  %v4723_v41 = vrot.slane %v4721_v2, 5  ;;  %v4783_v26 = vshll.u32 %v9345_v15, 16  ;;  %v8059_v16 = vld [vmem:[#allocation2 + $0x84] sm:$0xff]   ;;  %v8060_v52 = vld [vmem:[#allocation2 + $0x90] sm:$0xff]  }
 0x20c   : > { %v4708_v20 = vor.u32 %v4707_v40, %v4704_v61  ;;  %v4787_v22 = vshrl.u32 %v9345_v15, 16  ;;  %v4733_v18 = vrot.slane %v4732_v14, 4  ;;  %v9358_v45 = vsel %vm1826_vm4, %v6884_v6, 0  ;;  %v9395_v53 = vld [vmem:[#allocation2 + $0x64] sm:$0xf] }
 0x20d   : > { %v4724_v56 = vsel %vm8397_vm7, %v4719_v51, %v4723_v41  ;;  %v9371_v24 = vrot.slane %v4783_v26, 5  ;;  %v4807_v46 = vshll.u32 %v9360_v21, 16  ;;  %v4811_v37 = vshrl.u32 %v9360_v21, 16  ;;  %v9411_v41 = vld [vmem:[#allocation2 + $0x5c] sm:$0x1] }
 0x20e   : > { %v4709_v63 = vrot.slane %v4708_v20, 4  ;;  %v4789_v55 = vrot.slane %v4787_v22, 4  ;;  %v4738_v8 = vsel %vm8397_vm7, %v4733_v18, %v9339_v34  ;;  %v9397_v20 = vld [vmem:[#allocation2 + $0x44] sm:$0x1]  ;;  %v4855_v26 = vshll.u32 %v9395_v53, 16 }
 0x20f   : > { %v9393_v43 = vrot.slane %v4807_v46, 5  ;;  %v4813_v2 = vrot.slane %v4811_v37, 4  ;;  %v4859_v22 = vshrl.u32 %v9395_v53, 16 }
 0x210   : > { %7430 = vmatmul.mubr.msk.bf16.gmra.mrb[28].mxu1 %vm1777_vm8, %v6785_v32  ;;  %7328 = vmatmul.mubr.msk.bf16.gmra.mrb[60].mxu0 %vm1777_vm8, %v6670_v12  ;;  %v9347_v32 = vld [vmem:[#allocation2 + $0x2c] sm:$0x1]  ;;  %v4743_v12 = vrot.slane %v4742_v49, 4  ;;  %v4714_v0 = vsel %vm8397_vm7, %v4709_v63, %v9331_v50  ;;  %v4790_v34 = vor.u32 %v4789_v55, %v9371_v24  ;;  %v4822_v49 = vshrl.u32 %v4668_v28, 16 }
 0x211   : > { %7435 = vmatprep.mubr.msk.bf16.mxu1 %vm1777_vm8, %v8050_v3  ;;  %v4745_v7 = vshll.u32 %v9347_v32, 16  ;;  %v9365_v3 = vrot.slane %v4759_v1, 5  ;;  %v9378_v44 = vcombine.low %v4714_v0, %v4724_v56  ;;  %v9400_v1 = vld [vmem:[#allocation2 + $0x50] sm:$0x1]  ;;  %v4814_v56 = vor.u32 %v4813_v2, %v9393_v43 }
 0x212   : > { %v9421_v0 = vrot.slane %v4855_v26, 5  ;;  %v5455_v39 = vrot.slane %v9347_v32, 5 }
 0x213   : > { %v4747_v36 = vrot.slane %v4745_v7, 5  ;;  %v4793_v7 = vshll.u32 %v9397_v20, 16 }
 0x215   : > { %v4748_v61 = vsel %vm8397_vm7, %v4743_v12, %v4747_v36  ;;  %v4674_v12 = vld [vmem:[#allocation2 + $0x6c] sm:$0xf]  ;;  %v4861_v36 = vrot.slane %v4859_v22, 4 }
 0x218   : > { %7436 = vmatmul.mubr.msk.bf16.vlgmr.msra.gmra.mrb[0].mxu1 %vm1777_vm8, %v8051_v25  ;;  %v4769_v25 = vshll.u32 %v9351_v29, 16 }
 0x219   : > { %7468 = vmatpush3.bf16.msra.mxu1 %v5184_v54  ;;  %7439 = vmatprep.mubr.msk.bf16.mxu1 %vm1777_vm8, %v8052_v19  ;;  %v4665_v54 = vld [vmem:[#allocation2 + $0x48] sm:$0xf]  ;;  %v4756_v19 = vor.u32 %v4755_v9, %v4752_v33  ;;  %v4825_v33 = vshll.u32 %v4668_v28, 16  ;;  %v4815_v28 = vrot.slane %v4814_v56, 4 }
 0x21a   : > { %7964 = vmatprep.subr.msk.bf16.mxu1 %vm1826_vm4, %v6884_v6  ;;  %v4779_v6 = vrot.slane %v4777_v11, 5  ;;  %v4798_v59 = vshrl.u32 %v4665_v54, 16  ;;  %v4801_v57 = vshll.u32 %v4665_v54, 16  ;;  %v9390_v48 = vrot.slane %v4769_v25, 5 }
 0x21b   : > { %v9387_v40 = vrot.slane %v4756_v19, 4  ;;  %v4849_v11 = vshll.u32 %v4671_v62, 16  ;;  %v4791_v25 = vrot.slane %v4790_v34, 4  ;;  %v4817_v54 = vshll.u32 %v9400_v1, 16  ;;  %v9432_v34 = vld [vmem:[#allocation2 + $0x68] sm:$0x1] }
 0x21c   : > { %v4800_v14 = vrot.slane %v4798_v59, 4  ;;  %v4803_v51 = vrot.slane %v4801_v57, 5  ;;  %v4824_v19 = vrot.slane %v4822_v49, 4  ;;  %v4870_v59 = vshrl.u32 %v4674_v12, 16 }
 0x21d   : > { %v4851_v37 = vrot.slane %v4849_v11, 5  ;;  %v4873_v57 = vshll.u32 %v4674_v12, 16  ;;  %v4865_v12 = vshll.u32 %v9432_v34, 16 }
 0x21f   : > { %v4875_v11 = vrot.slane %v4873_v57, 5  ;;  %v9460_v57 = vld [vmem:[#allocation2 + $0x84] sm:$0xf] }
 0x220   : > { %7440 = vmatmul.mubr.msk.bf16.gmra.mrb[4].mxu1 %vm1777_vm8, %v8053_v42  ;;  %v4765_v42 = vrot.slane %v4763_v27, 4 }
 0x221   : > { %7443 = vmatprep.mubr.msk.bf16.mxu1 %vm1777_vm8, %v8054_v4  ;;  %v4776_v4 = vrot.slane %v4774_v58, 4  ;;  %v4846_v58 = vshrl.u32 %v4671_v62, 16 }
 0x222   : > { %v4766_v50 = vor.u32 %v4765_v42, %v9365_v3  ;;  %v4827_v42 = vrot.slane %v4825_v33, 5  ;;  %v9435_v33 = vld [vmem:[#allocation2 + $0x7c] sm:$0xf] }
 0x223   : > { %v4780_v47 = vor.u32 %v4779_v6, %v4776_v4  ;;  %v9418_v4 = vld [vmem:[#allocation2 + $0x70] sm:$0xf]  ;;  %v4804_v6 = vor.u32 %v4803_v51, %v4800_v14  ;;  %v4848_v46 = vrot.slane %v4846_v58, 4  ;;  %v4819_v14 = vrot.slane %v4817_v54, 5 }
 0x224   : > { %v4767_v63 = vrot.slane %v4766_v50, 4  ;;  %v8062_v50 = vld [vmem:[#allocation2 + $0xa8] sm:$0xff]   ;;  %v4872_v58 = vrot.slane %v4870_v59, 4  ;;  %v4903_v54 = vshll.u32 %v9435_v33, 16 }
 0x225   : > { %v4781_v18 = vrot.slane %v4780_v47, 4  ;;  %v4828_v47 = vor.u32 %v4827_v42, %v4824_v19  ;;  %v4805_v2 = vrot.slane %v4804_v6, 4  ;;  %v4852_v49 = vor.u32 %v4851_v37, %v4848_v46 }
 0x226   : > { %v4772_v62 = vsel %vm8397_vm7, %v4767_v63, %v9390_v48  ;;  %v4820_v26 = vsel %vm8397_vm7, %v4815_v28, %v4819_v14  ;;  %v4876_v37 = vor.u32 %v4875_v11, %v4872_v58  ;;  %v5381_v14 = vld [vmem:[#allocation2 + $0x30] sm:$0xe]  ;;  %v9508_v58 = vld [vmem:[#allocation2 + $0x94] sm:$0xf] }
 0x227   : > { %v4829_v56 = vrot.slane %v4828_v47, 4  ;;  %v4810_v19 = vsel %vm8397_vm7, %v4805_v2, %v9393_v43  ;;  %v9455_v6 = vrot.slane %v4852_v49, 4  ;;  %v9479_v47 = vld [vmem:[#allocation2 + $0x80] sm:$0x1]  ;;  %v9481_v2 = vrot.slane %v4903_v54, 5 }
 0x228   : > { %7444 = vmatmul.mubr.msk.bf16.gmra.mrb[8].mxu1 %vm1777_vm8, %v8055_v13  ;;  %v4831_v13 = vshll.u32 %v9369_v17, 16  ;;  %v9502_v49 = vrot.slane %v4876_v37, 4  ;;  %v9595_v37 = vld [vmem:[#allocation2 + $0xac] sm:$0xf]  ;;  %v9641_v54 = vld [vmem:[#allocation2 + $0xc4] sm:$0xf] }
 0x229   : > { %7447 = vmatprep.mubr.msk.bf16.mxu1 %vm1777_vm8, %v8056_v31  ;;  %v4835_v31 = vshrl.u32 %v9369_v17, 16 }
 0x22a   : > { %v9402_v9 = vrot.slane %v4831_v13, 5  ;;  %v4841_v13 = vshll.u32 %v9411_v41, 16 }
 0x22b   : > { %v4837_v27 = vrot.slane %v4835_v31, 4  ;;  %v4879_v31 = vshll.u32 %v9418_v4, 16 }
 0x22c   : > { %v4843_v22 = vrot.slane %v4841_v13, 5  ;;  %v9471_v13 = vcombine.low %v4810_v19, %v4820_v26  ;;  %v6870_v19 = vrot.slane %v5381_v14, 9  ;;  %v5473_v26 = vrot.slane %v9360_v21, 5 }
 0x22d   : > { %v4838_v55 = vor.u32 %v4837_v27, %v9402_v9  ;;  %v4862_v27 = vor.u32 %v4861_v36, %v9421_v0  ;;  %v9445_v63 = vrot.slane %v4879_v31, 5 }
 0x22e   : > { %v5475_v21 = vrot.slane %v5473_v26, 4 }
 0x22f   : > { %v4839_v51 = vrot.slane %v4838_v55, 4  ;;  %v9458_v46 = vrot.slane %v4862_v27, 4 }
 0x230   : > { %7448 = vmatmul.mubr.msk.bf16.gmra.mrb[12].mxu1 %vm1777_vm8, %v8057_v60  ;;  %v9405_v60 = vcombine.low %v4738_v8, %v4748_v61  ;;  %v8061_v8 = vld [vmem:[#allocation2 + $0x9c] sm:$0xff]   ;;  %v4883_v61 = vshrl.u32 %v9418_v4, 16 }
 0x231   : > { %7451 = vmatprep.mubr.msk.bf16.mxu1 %vm1777_vm8, %v8058_v38  ;;  %v4762_v38 = vsel %vm8397_vm7, %v9387_v40, %v9365_v3  ;;  %v4844_v42 = vsel %vm8397_vm7, %v4839_v51, %v4843_v22 }
 0x232   : > { %v9467_v43 = vcombine.low %v4762_v38, %v4772_v62 }
 0x238   : > { %7452 = vmatmul.mubr.msk.bf16.gmra.mrb[16].mxu1 %vm1777_vm8, %v8059_v16  ;;  %v4786_v16 = vsel %vm8397_vm7, %v4781_v18, %v9371_v24  ;;  %v9441_v24 = vld [vmem:[#allocation2 + $0x74] sm:$0x1]  ;;  %v4885_v18 = vrot.slane %v4883_v61, 4  ;;  %v8064_v61 = vld [vmem:[#allocation2 + $0xc0] sm:$0xff]  }
 0x239   : > { %7455 = vmatprep.mubr.msk.bf16.mxu1 %vm1777_vm8, %v8060_v52  ;;  %v4795_v52 = vrot.slane %v4793_v7, 5  ;;  %v4677_v7 = vld [vmem:[#allocation2 + $0x78] sm:$0xf]  ;;  %v4889_v55 = vshll.u32 %v9441_v24, 16 }
 0x23a   : > { %v4894_v36 = vshrl.u32 %v4677_v7, 16  ;;  %v4897_v59 = vshll.u32 %v4677_v7, 16  ;;  %v4886_v31 = vor.u32 %v4885_v18, %v9445_v63  ;;  %v5459_v18 = vrot.slane %v9342_v10, 5  ;;  %v5382_v7 = vld [vmem:[#allocation2 + $0x3c] sm:$0xe] }
 0x23b   : > { %v4796_v48 = vsel %vm8397_vm7, %v4791_v25, %v4795_v52  ;;  %v4907_v25 = vshrl.u32 %v9435_v33, 16  ;;  %v9477_v52 = vrot.slane %v4865_v12, 5  ;;  %v9492_v62 = vrot.slane %v4889_v55, 5 }
 0x23c   : > { %v9469_v28 = vcombine.low %v4786_v16, %v4796_v48  ;;  %v4918_v16 = vshrl.u32 %v9460_v57, 16  ;;  %v9504_v48 = vrot.slane %v4894_v36, 4  ;;  %v9506_v27 = vrot.slane %v4897_v59, 5 }
 0x23d   : > { %v9483_v3 = vrot.slane %v4907_v25, 4  ;;  %v9510_v11 = vrot.slane %v4886_v31, 4  ;;  %v5461_v36 = vrot.slane %v5459_v18, 4  ;;  %v5462_v59 = vrot.slane %v9351_v29, 5  ;;  %v5385_v29 = vld [vmem:[#allocation2 + $0x60] sm:$0xe] }
 0x23e   : > { %v9519_v55 = vrot.slane %v4918_v16, 4  ;;  %v9525_v10 = vsel %vm9081_vm3, %v6870_v19, %v5459_v18  ;;  %v6871_v31 = vrot.slane %v5382_v7, 9  ;;  %v5476_v12 = vrot.slane %v9400_v1, 5 }
 0x23f   : > { %v9531_v14 = vsel %vm9081_vm3, %v5461_v36, %v5462_v59  ;;  %v5480_v7 = vrot.slane %v9369_v17, 5  ;;  %v5483_v1 = vrot.slane %v9411_v41, 5  ;;  %v6874_v36 = vrot.slane %v5385_v29, 9  ;;  %v5388_v29 = vld [vmem:[#allocation2 + $0x84] sm:$0xe] }
 0x240   : > { %7456 = vmatmul.mubr.msk.bf16.gmra.mrb[20].mxu1 %vm1777_vm8, %v8061_v8  ;;  %v8063_v8 = vld [vmem:[#allocation2 + $0xb4] sm:$0xff]   ;;  %v5487_v59 = vrot.slane %v9395_v53, 5 }
 0x241   : > { %7459 = vmatprep.mubr.msk.bf16.mxu1 %vm1777_vm8, %v8062_v50  ;;  %v4834_v50 = vsel %vm8397_vm7, %v4829_v56, %v9402_v9  ;;  %v9494_v9 = vld [vmem:[#allocation2 + $0x88] sm:$0xf]  ;;  %v8065_v56 = vld [vmem:[#allocation2 + $0xcc] sm:$0xff]  }
 0x242   : > { %v9486_v40 = vcombine.low %v4834_v50, %v4844_v42  ;;  %v5383_v42 = vld [vmem:[#allocation2 + $0x48] sm:$0xe]  ;;  %v5469_v50 = vrot.slane %v9397_v20, 5 }
 0x243   : > { %v6872_v16 = vrot.slane %v5383_v42, 9  ;;  %v5386_v42 = vld [vmem:[#allocation2 + $0x6c] sm:$0xe] }
 0x245   : > { %v9545_v20 = vsel %vm9081_vm3, %v6872_v16, %v5473_v26  ;;  %v9559_v26 = vsel %vm9081_vm3, %v5475_v21, %v5476_v12  ;;  %v6875_v16 = vrot.slane %v5386_v42, 9  ;;  %v5501_v42 = vrot.slane %v9435_v33, 5 }
 0x246   : > { %v6877_v12 = vrot.slane %v5388_v29, 9  ;;  %v9608_v29 = vld [vmem:[#allocation2 + $0xa4] sm:$0x1]  ;;  %v10315_v32 = vcombine.low %v9545_v20, %v9559_v26 }
 0x248   : > { %7460 = vmatmul.mubr.msk.bf16.gmra.mrb[24].mxu1 %vm1777_vm8, %v8063_v8  ;;  %v5384_v8 = vld [vmem:[#allocation2 + $0x54] sm:$0xe] }
 0x249   : > { %7463 = vmatprep.mubr.msk.bf16.mxu1 %vm1777_vm8, %v8064_v61  ;;  %v5466_v61 = vrot.slane %v9345_v15, 5  ;;  %v6873_v19 = vrot.slane %v5384_v8, 9  ;;  %v9588_v8 = vld [vmem:[#allocation2 + $0x98] sm:$0x1] }
 0x24b   : > { %v5468_v18 = vrot.slane %v5466_v61, 4  ;;  %v9541_v15 = vsel %vm9081_vm3, %v6871_v31, %v5466_v61  ;;  %v9563_v41 = vsel %vm9081_vm3, %v6873_v19, %v5480_v7  ;;  %v5387_v31 = vld [vmem:[#allocation2 + $0x78] sm:$0xe]  ;;  %v9578_v19 = vsel %vm9081_vm3, %v6874_v36, %v5487_v59  ;;  %v5389_v61 = vld [vmem:[#allocation2 + $0x90] sm:$0xe] }
 0x24c   : > { %v5390_v36 = vld [vmem:[#allocation2 + $0x9c] sm:$0xe] }
 0x24d   : > { %v9552_v17 = vsel %vm9081_vm3, %v5468_v18, %v5469_v50  ;;  %v5489_v50 = vrot.slane %v5487_v59, 4  ;;  %v9572_v18 = vld [vmem:[#allocation2 + $0x8c] sm:$0x1]  ;;  %v6879_v25 = vrot.slane %v5390_v36, 9 }
 0x250   : > { %7464 = vmatmul.mubr.msk.bf16.gmra.mrb[28].mxu1 %vm1777_vm8, %v8065_v56  ;;  %v5482_v56 = vrot.slane %v5480_v7, 4  ;;  %v5497_v7 = vrot.slane %v9441_v24, 5  ;;  %v9593_v24 = vld [vmem:[#allocation2 + $0xa0] sm:$0xf] }
 0x251   : > { %7469 = vmatprep.mubr.msk.bf16.mxu1 %vm1777_vm8, %v9378_v44  ;;  %v5490_v44 = vrot.slane %v9432_v34, 5  ;;  %v5494_v34 = vrot.slane %v9418_v4, 5  ;;  %v5508_v4 = vrot.slane %v9494_v9, 5 }
 0x252   : > { %v9570_v53 = vsel %vm9081_vm3, %v5482_v56, %v5483_v1  ;;  %v6876_v1 = vrot.slane %v5387_v31, 9  ;;  %v5504_v56 = vrot.slane %v9479_v47, 5  ;;  %v5503_v31 = vrot.slane %v5501_v42, 4 }
 0x253   : > { %v9584_v21 = vsel %vm9081_vm3, %v5489_v50, %v5490_v44  ;;  %v5496_v59 = vrot.slane %v5494_v34, 4  ;;  %v9599_v44 = vsel %vm9081_vm3, %v6875_v16, %v5494_v34  ;;  %v5511_v50 = vrot.slane %v9572_v18, 5 }
 0x254   : > { %10291 = vst [vmem:[#allocation6_spill] sm:$0xff] %v9584_v21  ;;  %10292 = vst [vmem:[#allocation9_spill] sm:$0xff] %v9599_v44  ;;  %v9603_v33 = vsel %vm9081_vm3, %v6876_v1, %v5501_v42  ;;  %v5510_v51 = vrot.slane %v5508_v4, 4  ;;  %v6878_v16 = vrot.slane %v5389_v61, 9  ;;  %v5515_v34 = vrot.slane %v9508_v58, 5 }
 0x255   : > { %10293 = vst [vmem:[#allocation7_spill] sm:$0xff] %v9603_v33  ;;  %v9612_v38 = vsel %vm9081_vm3, %v5496_v59, %v5497_v7  ;;  %v9618_v1 = vld [vmem:[#allocation2 + $0xb0] sm:$0x1]  ;;  %v9624_v42 = vsel %vm9081_vm3, %v5503_v31, %v5504_v56  ;;  %v9628_v7 = vsel %vm9081_vm3, %v6877_v12, %v5508_v4  ;;  %v5518_v61 = vrot.slane %v9588_v8, 5  ;;  %v5391_v59 = vld [vmem:[#allocation2 + $0xa8] sm:$0xe] }
 0x256   : > { %10294 = vst [vmem:[#allocation8_spill] sm:$0xff] %v9612_v38  ;;  %10295 = vst [vmem:[#allocation10_spill] sm:$0xff] %v9624_v42  ;;  %v9637_v22 = vsel %vm9081_vm3, %v5510_v51, %v5511_v50  ;;  %v5392_v56 = vld [vmem:[#allocation2 + $0xb4] sm:$0xe]  ;;  %v9639_v31 = vld [vmem:[#allocation2 + $0xbc] sm:$0x1]  ;;  %v9647_v4 = vsel %vm9081_vm3, %v6878_v16, %v5515_v34  ;;  %v10316_v23 = vcombine.low %v9563_v41, %v9570_v53 }
 0x257   : > { %10296 = vst [vmem:[#allocation11_spill] sm:$0xff] %v9628_v7  ;;  %10297 = vst [vmem:[#allocation12_spill] sm:$0xff] %v9637_v22  ;;  %v5525_v42 = vrot.slane %v9608_v29, 5  ;;  %v6880_v36 = vrot.slane %v5391_v59, 9  ;;  %v5529_v50 = vrot.slane %v9595_v37, 5  ;;  %v5532_v33 = vrot.slane %v9618_v1, 5 }
 0x258   : > { %7470 = vmatmul.mubr.msk.bf16.vlgmr.msra.gmra.mrb[0].mxu1 %vm1777_vm8, %v9405_v60  ;;  %v5517_v60 = vrot.slane %v5515_v34, 4  ;;  %10298 = vst [vmem:[#allocation13_spill] sm:$0xff] %v9647_v4  ;;  %v5393_v38 = vld [vmem:[#allocation2 + $0xc0] sm:$0xe]  ;;  %v6881_v16 = vrot.slane %v5392_v56, 9  ;;  %v5539_v21 = vrot.slane %v9639_v31, 5 }
 0x259   : > { %7502 = vmatpush3.bf16.msra.mxu1 %v9358_v45  ;;  %7473 = vmatprep.mubr.msk.bf16.mxu1 %vm1777_vm8, %v9467_v43  ;;  %v9631_v45 = vld [vmem:[#allocation2 + $0xb8] sm:$0xf]  ;;  %v5522_v43 = vrot.slane %v9593_v24, 5  ;;  %v5394_v7 = vld [vmem:[#allocation2 + $0xcc] sm:$0xe]  ;;  %v5531_v59 = vrot.slane %v5529_v50, 4 }
 0x25a   : > { %v9653_v51 = vsel %vm9081_vm3, %v5517_v60, %v5518_v61  ;;  %v5536_v34 = vrot.slane %v9631_v45, 5  ;;  %v9660_v44 = vld [vmem:[#allocation2 + $0xc8] sm:$0x1]  ;;  %v9668_v61 = vsel %vm9081_vm3, %v6880_v36, %v5529_v50  ;;  %v5543_v4 = vrot.slane %v9641_v54, 5 }
 0x25b   : > { %10299 = vst [vmem:[#allocation14_spill] sm:$0xff] %v9653_v51  ;;  %v5524_v22 = vrot.slane %v5522_v43, 4  ;;  %v9664_v60 = vsel %vm9081_vm3, %v6879_v25, %v5522_v43  ;;  %10300 = vst [vmem:[#allocation15_spill] sm:$0xff] %v9668_v61  ;;  %v6882_v51 = vrot.slane %v5393_v38, 9  ;;  %v9682_v43 = vsel %vm9081_vm3, %v5531_v59, %v5532_v33  ;;  %v9690_v38 = vld [vmem:[#allocation2 + $0xd0] sm:$0xf] }
 0x25c   : > { %v5538_v56 = vrot.slane %v5536_v34, 4  ;;  %10302 = vst [vmem:[#allocation17_spill] sm:$0xff] %v9682_v43  ;;  %v9686_v36 = vsel %vm9081_vm3, %v6881_v16, %v5536_v34  ;;  %v5545_v33 = vrot.slane %v5543_v4, 4  ;;  %v5546_v59 = vrot.slane %v9660_v44, 5  ;;  %v4683_v16 = vld [vmem:[#allocation2 + $0x90] sm:$0xf] }
 0x25d   : > { %v9673_v12 = vsel %vm9081_vm3, %v5524_v22, %v5525_v42  ;;  %10303 = vst [vmem:[#allocation18_spill] sm:$0xff] %v9686_v36  ;;  %v6883_v22 = vrot.slane %v5394_v7, 9  ;;  %v9692_v42 = vld [vmem:[#allocation2 + $0xd4] sm:$0x1]  ;;  %v4955_v7 = vshrl.u32 %v9508_v58, 16  ;;  %v5550_v34 = vrot.slane %v9690_v38, 5 }
 0x25e   : > { %10301 = vst [vmem:[#allocation16_spill] sm:$0xff] %v9673_v12  ;;  %v9698_v50 = vsel %vm9081_vm3, %v5538_v56, %v5539_v21  ;;  %v5553_v25 = vrot.slane %v9692_v42, 5  ;;  %v10305_v12 = vshll.u32 %v9494_v9, 16  ;;  %v10306_v21 = vshrl.u32 %v9494_v9, 16  ;;  %v10322_v20 = vld [vmem:[#allocation7_spill] sm:$0xff]  ;;  %v10323_v26 = vld [vmem:[#allocation10_spill] sm:$0xff] }
 0x25f   : > { %10304 = vst [vmem:[#allocation19_spill] sm:$0xff] %v9698_v50  ;;  %v9714_v43 = vsel %vm9081_vm3, %v6882_v51, %v5543_v4  ;;  %v9718_v61 = vsel %vm9081_vm3, %v5545_v33, %v5546_v59  ;;  %v5552_v9 = vrot.slane %v5550_v34, 4  ;;  %v10308_v4 = vsel %vm8397_vm7, %v9458_v46, %v9477_v52  ;;  %v4686_v52 = vld [vmem:[#allocation2 + $0x9c] sm:$0xf] }
 0x260   : > { %7474 = vmatmul.mubr.msk.bf16.gmra.mrb[4].mxu1 %vm1777_vm8, %v9469_v28  ;;  %v9708_v28 = vrot.slane %v10305_v12, 5  ;;  %v4933_v56 = vrot.slane %v10306_v21, 4  ;;  %v6899_v36 = vcombine.low %v9714_v43, %v9718_v61  ;;  %v9726_v12 = vsel %vm9081_vm3, %v6883_v22, %v5550_v34 }
 0x261   : > { %7477 = vmatprep.mubr.msk.bf16.mxu1 %vm1777_vm8, %v9471_v13  ;;  %v10307_v13 = vshll.u32 %v9460_v57, 16  ;;  %v10309_v51 = vsel %vm8397_vm7, %v9455_v6, %v9421_v0  ;;  %v4900_v33 = vor.u32 %v9506_v27, %v9504_v48  ;;  %v4942_v59 = vshrl.u32 %v4683_v16, 16  ;;  %v5936_v6 = vld [vmem:[%s10242_s5] sm:$0xf] }
 0x262   : > { %v6842_v57 = vcombine.low %v10309_v51, %v10308_v4  ;;  %v4892_v22 = vsel %vm8397_vm7, %v9510_v11, %v9492_v62  ;;  %v10310_v34 = vshll.u32 %v9508_v58, 16  ;;  %v4957_v46 = vrot.slane %v4955_v7, 4  ;;  %7965 = vmatprep.subr.msk.bf16.mxu0 %vm1826_vm4, %v5936_v6 }
 0x263   : > { %v4923_v50 = vrot.slane %v10307_v13, 5  ;;  %v4945_v13 = vshll.u32 %v4683_v16, 16  ;;  %v9750_v0 = vsel %vm9081_vm3, %v5552_v9, %v5553_v25  ;;  %v10311_v48 = vor.u32 %v9483_v3, %v9481_v2 }
 0x264   : > { %v9746_v21 = vrot.slane %v10310_v34, 5  ;;  %v4934_v62 = vor.u32 %v4933_v56, %v9708_v28  ;;  %v6900_v58 = vcombine.low %v9726_v12, %v9750_v0  ;;  %v5993_v11 = vsel %vm1826_vm4, %v5936_v6, 0 }
 0x265   : > { %v4911_v27 = vrot.slane %v10311_v48, 4  ;;  %v4882_v25 = vsel %vm8397_vm7, %v9502_v49, %v9445_v63  ;;  %v10312_v3 = vshll.u32 %v9479_v47, 16  ;;  %v4924_v7 = vor.u32 %v4923_v50, %v9519_v55  ;;  %7536 = vmatpush3.bf16.msra.mxu0 %v5993_v11 }
 0x266   : > { %v4937_v56 = vshll.u32 %v9572_v18, 16  ;;  %v4944_v9 = vrot.slane %v4942_v59, 4  ;;  %v4947_v4 = vrot.slane %v4945_v13, 5  ;;  %v4966_v51 = vshrl.u32 %v4686_v52, 16  ;;  %v4689_v18 = vld [vmem:[#allocation2 + $0xa8] sm:$0xf] }
 0x267   : > { %v4915_v16 = vrot.slane %v10312_v3, 5  ;;  %v4969_v34 = vshll.u32 %v4686_v52, 16  ;;  %v4901_v6 = vrot.slane %v4900_v33, 4  ;;  %v4958_v48 = vor.u32 %v4957_v46, %v9746_v21 }
 0x268   : > { %7478 = vmatmul.mubr.msk.bf16.gmra.mrb[8].mxu1 %vm1777_vm8, %v9486_v40  ;;  %v6843_v40 = vcombine.low %v4882_v25, %v4892_v22  ;;  %v4935_v47 = vrot.slane %v4934_v62, 4  ;;  %v4975_v49 = vshll.u32 %v9593_v24, 16  ;;  %v4979_v55 = vshrl.u32 %v9593_v24, 16 }
 0x269   : > { %7481 = vmatprep.mubr.msk.bf16.mxu1 %vm1777_vm8, %v6842_v57  ;;  %v4916_v63 = vsel %vm8397_vm7, %v4911_v27, %v4915_v16  ;;  %v4939_v50 = vrot.slane %v4937_v56, 5  ;;  %v4961_v57 = vshll.u32 %v9588_v8, 16  ;;  %v4999_v59 = vshll.u32 %v9595_v37, 16 }
 0x26a   : > { %v5003_v13 = vshrl.u32 %v9595_v37, 16  ;;  %v4925_v22 = vrot.slane %v4924_v7, 4  ;;  %v4948_v33 = vor.u32 %v4947_v4, %v4944_v9  ;;  %v4968_v52 = vrot.slane %v4966_v51, 4  ;;  %v4692_v9 = vld [vmem:[#allocation2 + $0xb4] sm:$0xf] }
 0x26b   : > { %v4971_v46 = vrot.slane %v4969_v34, 5  ;;  %v4906_v27 = vsel %vm8397_vm7, %v4901_v6, %v9481_v2  ;;  %v4959_v62 = vrot.slane %v4958_v48, 4  ;;  %v4990_v11 = vshrl.u32 %v4689_v18, 16 }
 0x26c   : > { %v4993_v25 = vshll.u32 %v4689_v18, 16  ;;  %v6844_v24 = vcombine.low %v4906_v27, %v4916_v63  ;;  %v4940_v3 = vsel %vm8397_vm7, %v4935_v47, %v4939_v50  ;;  %v9787_v8 = vrot.slane %v4975_v49, 5  ;;  %v4695_v50 = vld [vmem:[#allocation2 + $0xc0] sm:$0xf] }
 0x26d   : > { %v4981_v16 = vrot.slane %v4979_v55, 4  ;;  %v4963_v37 = vrot.slane %v4961_v57, 5  ;;  %v9790_v7 = vrot.slane %v4999_v59, 5  ;;  %v5005_v56 = vrot.slane %v5003_v13, 4 }
 0x26e   : > { %v4930_v2 = vsel %vm8397_vm7, %v4925_v22, %v9708_v28  ;;  %v4949_v4 = vrot.slane %v4948_v33, 4  ;;  %v4972_v51 = vor.u32 %v4971_v46, %v4968_v52  ;;  %v4985_v34 = vshll.u32 %v9608_v29, 16 }
 0x26f   : > { %v6845_v6 = vcombine.low %v4930_v2, %v4940_v3  ;;  %v4964_v48 = vsel %vm8397_vm7, %v4959_v62, %v4963_v37  ;;  %v4995_v63 = vrot.slane %v4993_v25, 5  ;;  %v4982_v47 = vor.u32 %v4981_v16, %v9787_v8 }
 0x270   : > { %7482 = vmatmul.mubr.msk.bf16.gmra.mrb[12].mxu1 %vm1777_vm8, %v6843_v40  ;;  %v4992_v40 = vrot.slane %v4990_v11, 4  ;;  %v5014_v49 = vshrl.u32 %v4692_v9, 16  ;;  %v5023_v55 = vshll.u32 %v9631_v45, 16  ;;  %v5027_v18 = vshrl.u32 %v9631_v45, 16  ;;  %v4698_v11 = vld [vmem:[#allocation2 + $0xcc] sm:$0xf] }
 0x271   : > { %7485 = vmatprep.mubr.msk.bf16.mxu1 %vm1777_vm8, %v6844_v24  ;;  %v5006_v28 = vor.u32 %v5005_v56, %v9790_v7  ;;  %v5017_v57 = vshll.u32 %v4692_v9, 16  ;;  %v5047_v59 = vshll.u32 %v9641_v54, 16  ;;  %v5051_v29 = vshrl.u32 %v9641_v54, 16 }
 0x272   : > { %v4954_v13 = vsel %vm8397_vm7, %v4949_v4, %v9746_v21  ;;  %v4973_v22 = vrot.slane %v4972_v51, 4  ;;  %v4987_v33 = vrot.slane %v4985_v34, 5  ;;  %v5009_v52 = vshll.u32 %v9618_v1, 16 }
 0x273   : > { %v6846_v46 = vcombine.low %v4954_v13, %v4964_v48  ;;  %v4996_v27 = vor.u32 %v4995_v63, %v4992_v40  ;;  %v5038_v62 = vshrl.u32 %v4695_v50, 16  ;;  %v5041_v45 = vshll.u32 %v4695_v50, 16 }
 0x274   : > { %v4983_v25 = vrot.slane %v4982_v47, 4  ;;  %v5016_v24 = vrot.slane %v5014_v49, 4  ;;  %v5025_v3 = vrot.slane %v5023_v55, 5  ;;  %v5029_v16 = vrot.slane %v5027_v18, 4 }
 0x275   : > { %v5007_v54 = vrot.slane %v5006_v28, 4  ;;  %v5019_v37 = vrot.slane %v5017_v57, 5  ;;  %v5049_v56 = vrot.slane %v5047_v59, 5  ;;  %v5053_v9 = vrot.slane %v5051_v29, 4 }
 0x276   : > { %v5062_v21 = vshrl.u32 %v4698_v11, 16  ;;  %v5065_v2 = vshll.u32 %v4698_v11, 16  ;;  %v5071_v1 = vshll.u32 %v9690_v38, 16  ;;  %v5075_v4 = vshrl.u32 %v9690_v38, 16 }
 0x277   : > { %v4997_v51 = vrot.slane %v4996_v27, 4  ;;  %v5011_v34 = vrot.slane %v5009_v52, 5  ;;  %v5040_v48 = vrot.slane %v5038_v62, 4  ;;  %v5043_v40 = vrot.slane %v5041_v45, 5 }
 0x278   : > { %7486 = vmatmul.mubr.msk.bf16.gmra.mrb[16].mxu1 %vm1777_vm8, %v6845_v6  ;;  %v4978_v6 = vsel %vm8397_vm7, %v4973_v22, %v9787_v8  ;;  %v4988_v63 = vsel %vm8397_vm7, %v4983_v25, %v4987_v33  ;;  %v5030_v47 = vor.u32 %v5029_v16, %v5025_v3  ;;  %v5020_v55 = vor.u32 %v5019_v37, %v5016_v24 }
 0x279   : > { %7489 = vmatprep.mubr.msk.bf16.mxu1 %vm1777_vm8, %v6846_v46  ;;  %v5012_v49 = vsel %vm8397_vm7, %v5007_v54, %v5011_v34  ;;  %v5033_v18 = vshll.u32 %v9639_v31, 16  ;;  %v5054_v50 = vor.u32 %v5053_v9, %v5049_v56  ;;  %v5064_v38 = vrot.slane %v5062_v21, 4 }
 0x27a   : > { %v5067_v28 = vrot.slane %v5065_v2, 5  ;;  %v5073_v57 = vrot.slane %v5071_v1, 5  ;;  %v5077_v59 = vrot.slane %v5075_v4, 4  ;;  %v6847_v29 = vcombine.low %v4978_v6, %v4988_v63 }
 0x27b   : > { %v5002_v8 = vsel %vm8397_vm7, %v4997_v51, %v9790_v7  ;;  %v5044_v13 = vor.u32 %v5043_v40, %v5040_v48  ;;  %v5057_v22 = vshll.u32 %v9660_v44, 16  ;;  %v5031_v52 = vrot.slane %v5030_v47, 4 }
 0x27c   : > { %v6848_v33 = vcombine.low %v5002_v8, %v5012_v49  ;;  %v5035_v46 = vrot.slane %v5033_v18, 5  ;;  %v5055_v27 = vrot.slane %v5054_v50, 4  ;;  %v5021_v31 = vrot.slane %v5020_v55, 4  ;;  %v5380_v55 = vld [vmem:[#allocation2 + $0x24] sm:$0xe]  ;;  %v10320_v8 = vld [vmem:[#allocation8_spill] sm:$0xff] }
 0x27d   : > { %v5068_v62 = vor.u32 %v5067_v28, %v5064_v38  ;;  %v5078_v45 = vor.u32 %v5077_v59, %v5073_v57  ;;  %v5081_v11 = vshll.u32 %v9692_v42, 16  ;;  %v5045_v25 = vrot.slane %v5044_v13, 4 }
 0x27e   : > { %v5059_v24 = vrot.slane %v5057_v22, 5  ;;  %v5036_v7 = vsel %vm8397_vm7, %v5031_v52, %v5035_v46  ;;  %v5445_v16 = vrot.slane %v9323_v35, 5  ;;  %v5026_v54 = vsel %vm8397_vm7, %v5021_v31, %v5025_v3  ;;  %v5379_v3 = vld [vmem:[#allocation2 + $0x18] sm:$0xe]  ;;  %v10325_v52 = vld [vmem:[#allocation11_spill] sm:$0xff]  ;;  %v10326_v46 = vld [vmem:[#allocation12_spill] sm:$0xff] }
 0x27f   : > { %v5069_v37 = vrot.slane %v5068_v62, 4  ;;  %v5079_v9 = vrot.slane %v5078_v45, 4  ;;  %v5083_v21 = vrot.slane %v5081_v11, 5  ;;  %v6849_v2 = vcombine.low %v5026_v54, %v5036_v7  ;;  %v10328_v31 = vld [vmem:[#allocation13_spill] sm:$0xff]  ;;  %v10329_v62 = vld [vmem:[#allocation14_spill] sm:$0xff]  ;;  %v10333_v54 = vld [vmem:[#allocation15_spill] sm:$0xff] }
 0x280   : > { %7490 = vmatmul.mubr.msk.bf16.gmra.mrb[20].mxu1 %vm1777_vm8, %v6847_v29  ;;  %v5060_v44 = vsel %vm8397_vm7, %v5055_v27, %v5059_v24  ;;  %v5050_v42 = vsel %vm8397_vm7, %v5045_v25, %v5049_v56  ;;  %v5447_v4 = vrot.slane %v5445_v16, 4  ;;  %v5448_v34 = vrot.slane %v9335_v5, 5  ;;  %v10319_v29 = vld [vmem:[#allocation9_spill] sm:$0xff] }
 0x281   : > { %7493 = vmatprep.mubr.msk.bf16.mxu1 %vm1777_vm8, %v6848_v33  ;;  %v6850_v1 = vcombine.low %v5050_v42, %v5060_v44  ;;  %v5074_v51 = vsel %vm8397_vm7, %v5069_v37, %v5073_v57  ;;  %v5084_v35 = vsel %vm8397_vm7, %v5079_v9, %v5083_v21  ;;  %v5452_v48 = vrot.slane %v9329_v30, 5  ;;  %v10317_v57 = vld [vmem:[#allocation6_spill] sm:$0xff]  ;;  %v10331_v44 = vld [vmem:[#allocation16_spill] sm:$0xff]  ;;  %v10334_v37 = vld [vmem:[#allocation17_spill] sm:$0xff] }
 0x282   : > { %v6851_v40 = vcombine.low %v5074_v51, %v5084_v35  ;;  %v6868_v6 = vrot.slane %v5379_v3, 9  ;;  %v5449_v56 = vsel %vm9081_vm3, %v5447_v4, %v5448_v34  ;;  %v6869_v5 = vrot.slane %v5380_v55, 9  ;;  %v10336_v4 = vld [vmem:[#allocation18_spill] sm:$0xff]  ;;  %v10337_v51 = vld [vmem:[#allocation19_spill] sm:$0xff] }
 0x283   : > { %v5454_v49 = vrot.slane %v5452_v48, 4  ;;  %v10313_v38 = vcombine.low %v9525_v10, %v9531_v14  ;;  %v10314_v28 = vcombine.low %v9541_v15, %v9552_v17  ;;  %v10318_v10 = vcombine.low %v9578_v19, %v10317_v57  ;;  %v6156_v55 = vld [vmem:[%s10244_s7] sm:$0x3] }
 0x284   : > { %v5446_v63 = vsel %vm9081_vm3, %v6868_v6, %v5445_v16  ;;  %v5453_v18 = vsel %vm9081_vm3, %v6869_v5, %v5452_v48  ;;  %v10321_v13 = vcombine.low %v10319_v29, %v10320_v8  ;;  %v10324_v22 = vcombine.low %v10322_v20, %v10323_v26  ;;  %7966 = vmatprep.subr.msk.bf16.mxu0 %vm501_vm0, %v6156_v55  ;;  %v9970_v5 = vld [vmem:[%s10241_s4] ss:$0 sm:$0xff] }
 0x285   : > { %v6885_v47 = vcombine.low %v5446_v63, %v5449_v56  ;;  %v5456_v30 = vsel %vm9081_vm3, %v5454_v49, %v5455_v39  ;;  %v10327_v27 = vcombine.low %v10325_v52, %v10326_v46  ;;  %v10330_v45 = vcombine.low %v10328_v31, %v10329_v62 }
 0x286   : > { %v6886_v50 = vcombine.low %v5453_v18, %v5456_v30  ;;  %v10332_v16 = vcombine.low %v9664_v60, %v10331_v44  ;;  %v10335_v9 = vcombine.low %v10333_v54, %v10334_v37  ;;  %v10338_v35 = vcombine.low %v10336_v4, %v10337_v51 }
 0x288   : > { %7494 = vmatmul.mubr.msk.bf16.gmra.mrb[24].mxu1 %vm1777_vm8, %v6849_v2 }
 0x289   : > { %7497 = vmatprep.mubr.msk.bf16.mxu1 %vm1777_vm8, %v6850_v1 }
 0x290   : > { %7498 = vmatmul.mubr.msk.bf16.gmra.mrb[28].mxu1 %vm1777_vm8, %v6851_v40 }
 0x291   : > { %7503 = vmatprep.mubr.msk.bf16.mxu1 %vm1777_vm8, %v6885_v47 }
 0x298   : > { %7504 = vmatmul.mubr.msk.bf16.vlgmr.msra.gmra.mrb[0].mxu1 %vm1777_vm8, %v6886_v50 }
 0x299   : > { %7507 = vmatprep.mubr.msk.bf16.mxu1 %vm1777_vm8, %v10313_v38 }
 0x2a0   : > { %7508 = vmatmul.mubr.msk.bf16.gmra.mrb[4].mxu1 %vm1777_vm8, %v10314_v28 }
 0x2a1   : > { %7511 = vmatprep.mubr.msk.bf16.mxu1 %vm1777_vm8, %v10315_v32 }
 0x2a8   : > { %7512 = vmatmul.mubr.msk.bf16.gmra.mrb[8].mxu1 %vm1777_vm8, %v10316_v23 }
 0x2a9   : > { %7515 = vmatprep.mubr.msk.bf16.mxu1 %vm1777_vm8, %v10318_v10 }
 0x2ab   : > { %v7301_v14 = vpop.f32.mrb[32].mxu0 }
 0x2ac   : > { %v2581_v59 = vpop.f32.mrb[33].mxu0 }
 0x2ad   : > { %v7302_v15 = vpop.f32.mrb[34].mxu0 }
 0x2ae   : > { %v2584_v17 = vpop.f32.mrb[35].mxu0 }
 0x2b0   : > { %7516 = vmatmul.mubr.msk.bf16.gmra.mrb[12].mxu1 %vm1777_vm8, %v10321_v13 }
 0x2b1   : > { %7519 = vmatprep.mubr.msk.bf16.mxu1 %vm1777_vm8, %v10324_v22 }
 0x2b3   : > { %v7305_v41 = vpop.f32.mrb[36].mxu0 }
 0x2b4   : > { %v2597_v53 = vpop.f32.mrb[37].mxu0 }
 0x2b5   : > { %v7306_v33 = vpop.f32.mrb[38].mxu0 }
 0x2b6   : > { %v9885_v19 = vpop.f32.mrb[39].mxu0 }
 0x2b8   : > { %7520 = vmatmul.mubr.msk.bf16.gmra.mrb[16].mxu1 %vm1777_vm8, %v10327_v27 }
 0x2b9   : > { %7523 = vmatprep.mubr.msk.bf16.mxu1 %vm1777_vm8, %v10330_v45 }
 0x2bb   : > { %v9895_v11 = vpop.f32.mrb[40].mxu0 }
 0x2bc   : > { %v9897_v25 = vpop.f32.mrb[41].mxu0 }
 0x2bd   : > { %v9899_v24 = vpop.f32.mrb[42].mxu0 }
 0x2be   : > { %v9901_v7 = vpop.f32.mrb[43].mxu0 }
 0x2c0   : > { %7524 = vmatmul.mubr.msk.bf16.gmra.mrb[20].mxu1 %vm1777_vm8, %v10332_v16 }
 0x2c1   : > { %7527 = vmatprep.mubr.msk.bf16.mxu1 %vm1777_vm8, %v10335_v9 }
 0x2c3   : > { %v9911_v21 = vpop.f32.mrb[44].mxu0 }
 0x2c4   : > { %v9913_v2 = vpop.f32.mrb[45].mxu0 }
 0x2c5   : > { %v9915_v42 = vpop.f32.mrb[46].mxu0 }
 0x2c6   : > { %v9917_v1 = vpop.f32.mrb[47].mxu0 }
 0x2c8   : > { %7528 = vmatmul.mubr.msk.bf16.gmra.mrb[24].mxu1 %vm1777_vm8, %v10338_v35 }
 0x2c9   : > { %7531 = vmatprep.mubr.msk.bf16.mxu1 %vm1777_vm8, %v6899_v36 }
 0x2cb   : > { %v9927_v60 = vpop.f32.mrb[48].mxu0 }
 0x2cc   : > { %v9929_v3 = vpop.f32.mrb[49].mxu0 }
 0x2cd   : > { %v9931_v34 = vpop.f32.mrb[50].mxu0 }
 0x2ce   : > { %v9933_v48 = vpop.f32.mrb[51].mxu0 }
 0x2d0   : > { %7532 = vmatmul.mubr.msk.bf16.gmra.mrb[28].mxu1 %vm1777_vm8, %v6900_v58 }
 0x2d3   : > { %v9939_v40 = vpop.f32.mrb[52].mxu0 }
 0x2d4   : > { %v9941_v6 = vpop.f32.mrb[53].mxu0 }
 0x2d5   : > { %v9943_v61 = vpop.f32.mrb[54].mxu0 }
 0x2d6   : > { %v9945_v43 = vpop.f32.mrb[55].mxu0 }
 0x2db   : > { %v9947_v36 = vpop.f32.mrb[56].mxu0 }
 0x2dc   : > { %v9949_v56 = vpop.f32.mrb[57].mxu0 }
 0x2dd   : > { %v9951_v63 = vpop.f32.mrb[58].mxu0 }
 0x2de   : > { %v9953_v47 = vpop.f32.mrb[59].mxu0 }
 0x2e3   : > { %v9955_v49 = vpop.f32.mrb[60].mxu0 }
 0x2e4   : > { %v9957_v12 = vpop.f32.mrb[61].mxu0 }
 0x2e5   : > { %v9959_v0 = vpop.f32.mrb[62].mxu0 }
 0x2e6   : > { %v9961_v58 = vpop.f32.mrb[63].mxu0 }
 0x36b   : > { %v7505_v39 = vpop.f32.mrb[0].mxu1 }
 0x36c   : > { %v7603_v30 = vadd.f32 %v7505_v39, %v7301_v14  ;;  %v5690_v18 = vpop.f32.mrb[1].mxu1 }
 0x36d   : > { %v7604_v50 = vadd.f32 %v5690_v18, %v2581_v59  ;;  %v7506_v38 = vpop.f32.mrb[2].mxu1 }
 0x36e   : > { %v5858_v28 = vadd.f32 %v7603_v30, %v9970_v5  ;;  %v7605_v32 = vadd.f32 %v7506_v38, %v7302_v15  ;;  %v5693_v23 = vpop.f32.mrb[3].mxu1 }
 0x36f   : > { %v5856_v57 = vadd.f32 %v7604_v50, %v9970_v5  ;;  %v7606_v10 = vadd.f32 %v5693_v23, %v2584_v17  ;;  %v6165_v17 = vsel %vm501_vm0, %v6156_v55, 0  ;;  %vm6392_vm0 = vcmask 130048  }
 0x370   : > { %v5859_v29 = vadd.f32 %v7605_v32, %v9970_v5  ;;  %v5890_v13 = vmax.f32 %v5858_v28, 0.0 }
 0x371   : > { %v5857_v8 = vadd.f32 %v7606_v10, %v9970_v5  ;;  %v5888_v26 = vmax.f32 %v5856_v57, 0.0 }
 0x372   : > { %v5891_v20 = vmax.f32 %v5859_v29, 0.0 }
 0x373   : > { %v5889_v22 = vmax.f32 %v5857_v8, 0.0  ;;  %v7509_v52 = vpop.f32.mrb[4].mxu1 }
 0x374   : > { %v5921_v14 = vpack.c.bf16 %v5891_v20, %v5890_v13  ;;  %v7607_v46 = vadd.f32 %v7509_v52, %v7305_v41  ;;  %v5706_v59 = vpop.f32.mrb[5].mxu1 }
 0x375   : > { %v5920_v27 = vpack.c.bf16 %v5889_v22, %v5888_v26  ;;  %v7608_v31 = vadd.f32 %v5706_v59, %v2597_v53  ;;  %v7510_v62 = vpop.f32.mrb[6].mxu1 }
 0x376   : > { %v5862_v15 = vadd.f32 %v7607_v46, %v9970_v5  ;;  %v7609_v45 = vadd.f32 %v7510_v62, %v7306_v33  ;;  %v5709_v44 = vpop.f32.mrb[7].mxu1 }
 0x377   : > { %v5860_v16 = vadd.f32 %v7608_v31, %v9970_v5  ;;  %v7610_v54 = vadd.f32 %v5709_v44, %v9885_v19  ;;  %7537 = vmatprep.mubr.msk.bf16.mxu0 %vm1777_vm8, %v5920_v27 }
 0x378   : > { %v5863_v37 = vadd.f32 %v7609_v45, %v9970_v5  ;;  %7538 = vmatmul.mubr.msk.bf16.vlgmr.msra.gmra.mrb[64].mxu0 %vm1777_vm8, %v5921_v14  ;;  %v5894_v53 = vmax.f32 %v5862_v15, 0.0 }
 0x379   : > { %v5861_v41 = vadd.f32 %v7610_v54, %v9970_v5  ;;  %7570 = vmatpush3.bf16.msra.mxu0 %v6165_v17  ;;  %v5892_v4 = vmax.f32 %v5860_v16, 0.0 }
 0x37a   : > { %v5895_v9 = vmax.f32 %v5863_v37, 0.0 }
 0x37b   : > { %v5893_v33 = vmax.f32 %v5861_v41, 0.0  ;;  %v7513_v51 = vpop.f32.mrb[8].mxu1 }
 0x37c   : > { %v5923_v35 = vpack.c.bf16 %v5895_v9, %v5894_v53  ;;  %v7611_v55 = vadd.f32 %v7513_v51, %v9895_v11  ;;  %v5722_v39 = vpop.f32.mrb[9].mxu1 }
 0x37d   : > { %v5922_v30 = vpack.c.bf16 %v5893_v33, %v5892_v4  ;;  %v7612_v19 = vadd.f32 %v5722_v39, %v9897_v25  ;;  %v7514_v18 = vpop.f32.mrb[10].mxu1 }
 0x37e   : > { %v5866_v50 = vadd.f32 %v7611_v55, %v9970_v5  ;;  %v7613_v38 = vadd.f32 %v7514_v18, %v9899_v24  ;;  %v5725_v28 = vpop.f32.mrb[11].mxu1 }
 0x37f   : > { %v5864_v32 = vadd.f32 %v7612_v19, %v9970_v5  ;;  %v7614_v23 = vadd.f32 %v5725_v28, %v9901_v7  ;;  %7541 = vmatprep.mubr.msk.bf16.mxu0 %vm1777_vm8, %v5922_v30 }
 0x380   : > { %v5867_v57 = vadd.f32 %v7613_v38, %v9970_v5  ;;  %7542 = vmatmul.mubr.msk.bf16.gmra.mrb[68].mxu0 %vm1777_vm8, %v5923_v35  ;;  %v5898_v10 = vmax.f32 %v5866_v50, 0.0 }
 0x381   : > { %v5865_v11 = vadd.f32 %v7614_v23, %v9970_v5  ;;  %v5896_v29 = vmax.f32 %v5864_v32, 0.0 }
 0x382   : > { %v5899_v25 = vmax.f32 %v5867_v57, 0.0 }
 0x383   : > { %v5897_v8 = vmax.f32 %v5865_v11, 0.0  ;;  %v7517_v13 = vpop.f32.mrb[12].mxu1 }
 0x384   : > { %v5925_v20 = vpack.c.bf16 %v5899_v25, %v5898_v10  ;;  %v7615_v24 = vadd.f32 %v7517_v13, %v9911_v21  ;;  %v5738_v26 = vpop.f32.mrb[13].mxu1 }
 0x385   : > { %v5924_v22 = vpack.c.bf16 %v5897_v8, %v5896_v29  ;;  %v7616_v7 = vadd.f32 %v5738_v26, %v9913_v2  ;;  %v7518_v52 = vpop.f32.mrb[14].mxu1 }
 0x386   : > { %v5870_v14 = vadd.f32 %v7615_v24, %v9970_v5  ;;  %v7617_v46 = vadd.f32 %v7518_v52, %v9915_v42  ;;  %v5741_v59 = vpop.f32.mrb[15].mxu1 }
 0x387   : > { %v5868_v27 = vadd.f32 %v7616_v7, %v9970_v5  ;;  %v7618_v31 = vadd.f32 %v5741_v59, %v9917_v1  ;;  %7545 = vmatprep.mubr.msk.bf16.mxu0 %vm1777_vm8, %v5924_v22 }
 0x388   : > { %v5871_v62 = vadd.f32 %v7617_v46, %v9970_v5  ;;  %7546 = vmatmul.mubr.msk.bf16.gmra.mrb[72].mxu0 %vm1777_vm8, %v5925_v20  ;;  %v5902_v15 = vmax.f32 %v5870_v14, 0.0 }
 0x389   : > { %v5869_v21 = vadd.f32 %v7618_v31, %v9970_v5  ;;  %v5900_v45 = vmax.f32 %v5868_v27, 0.0 }
 0x38a   : > { %v5903_v2 = vmax.f32 %v5871_v62, 0.0 }
 0x38b   : > { %v5901_v44 = vmax.f32 %v5869_v21, 0.0  ;;  %v7521_v17 = vpop.f32.mrb[16].mxu1 }
 0x38c   : > { %v5927_v16 = vpack.c.bf16 %v5903_v2, %v5902_v15  ;;  %v7619_v42 = vadd.f32 %v7521_v17, %v9927_v60  ;;  %v5754_v54 = vpop.f32.mrb[17].mxu1 }
 0x38d   : > { %v5926_v37 = vpack.c.bf16 %v5901_v44, %v5900_v45  ;;  %v7620_v1 = vadd.f32 %v5754_v54, %v9929_v3  ;;  %v7522_v41 = vpop.f32.mrb[18].mxu1 }
 0x38e   : > { %v5874_v53 = vadd.f32 %v7619_v42, %v9970_v5  ;;  %v7621_v9 = vadd.f32 %v7522_v41, %v9931_v34  ;;  %v5757_v4 = vpop.f32.mrb[19].mxu1 }
 0x38f   : > { %v5872_v33 = vadd.f32 %v7620_v1, %v9970_v5  ;;  %v7622_v51 = vadd.f32 %v5757_v4, %v9933_v48  ;;  %7549 = vmatprep.mubr.msk.bf16.mxu0 %vm1777_vm8, %v5926_v37 }
 0x390   : > { %v5875_v35 = vadd.f32 %v7621_v9, %v9970_v5  ;;  %7550 = vmatmul.mubr.msk.bf16.gmra.mrb[76].mxu0 %vm1777_vm8, %v5927_v16  ;;  %v5906_v55 = vmax.f32 %v5874_v53, 0.0 }
 0x391   : > { %v5873_v60 = vadd.f32 %v7622_v51, %v9970_v5  ;;  %v5904_v39 = vmax.f32 %v5872_v33, 0.0 }
 0x392   : > { %v5907_v3 = vmax.f32 %v5875_v35, 0.0  ;;  %v8108_v35 = vld [vmem:[%s8299_s27 + $0x8] sm:$0xff]  }
 0x393   : > { %v5905_v30 = vmax.f32 %v5873_v60, 0.0  ;;  %v7525_v19 = vpop.f32.mrb[20].mxu1  ;;  %v8110_v60 = vld [vmem:[%s8299_s27 + $0x18] sm:$0xff]  }
 0x394   : > { %v5929_v18 = vpack.c.bf16 %v5907_v3, %v5906_v55  ;;  %v7623_v34 = vadd.f32 %v7525_v19, %v9939_v40  ;;  %v5770_v50 = vpop.f32.mrb[21].mxu1  ;;  %v8111_v55 = vld [vmem:[%s8299_s27 + $0x20] sm:$0xff]   ;;  %v8112_v3 = vld [vmem:[%s8299_s27 + $0x28] sm:$0xff]  }
 0x395   : > { %v5928_v38 = vpack.c.bf16 %v5905_v30, %v5904_v39  ;;  %v7624_v48 = vadd.f32 %v5770_v50, %v9941_v6  ;;  %v7526_v28 = vpop.f32.mrb[22].mxu1  ;;  %v8113_v39 = vld [vmem:[%s8299_s27 + $0x30] sm:$0xff]   ;;  %v8114_v30 = vld [vmem:[%s8299_s27 + $0x38] sm:$0xff]   ;;  %v8115_v19 = vld [vmem:[%s8299_s27 + $0x40] sm:$0xff]  }
 0x396   : > { %v5878_v32 = vadd.f32 %v7623_v34, %v9970_v5  ;;  %v7625_v23 = vadd.f32 %v7526_v28, %v9943_v61  ;;  %v5773_v57 = vpop.f32.mrb[23].mxu1  ;;  %v8117_v34 = vld [vmem:[%s8299_s27 + $0x50] sm:$0xff]   ;;  %v8118_v50 = vld [vmem:[%s8299_s27 + $0x58] sm:$0xff]  }
 0x397   : > { %v5876_v11 = vadd.f32 %v7624_v48, %v9970_v5  ;;  %v7626_v10 = vadd.f32 %v5773_v57, %v9945_v43  ;;  %7553 = vmatprep.mubr.msk.bf16.mxu0 %vm1777_vm8, %v5928_v38  ;;  %v8119_v38 = vld [vmem:[%s8299_s27 + $0x60] sm:$0xff]   ;;  %v8120_v48 = vld [vmem:[%s8299_s27 + $0x68] sm:$0xff]   ;;  %v8121_v28 = vld [vmem:[%s8299_s27 + $0x70] sm:$0xff]  }
 0x398   : > { %v5879_v25 = vadd.f32 %v7625_v23, %v9970_v5  ;;  %7554 = vmatmul.mubr.msk.bf16.gmra.mrb[80].mxu0 %vm1777_vm8, %v5929_v18  ;;  %v5910_v29 = vmax.f32 %v5878_v32, 0.0  ;;  %v8116_v18 = vld [vmem:[%s8299_s27 + $0x48] sm:$0xff]   ;;  %v8122_v32 = vld [vmem:[%s8299_s27 + $0x78] sm:$0xff]   ;;  %v6918_v23 = vld [vmem:[%s10243_s6] ss:$0 sm:$0xff] }
 0x399   : > { %v5877_v40 = vadd.f32 %v7626_v10, %v9970_v5  ;;  %v5908_v8 = vmax.f32 %v5876_v11, 0.0  ;;  %v6935_v57 = vld [vmem:[%s10245_s8] ss:$0 sm:$0xff] }
 0x39a   : > { %v5911_v6 = vmax.f32 %v5879_v25, 0.0  ;;  %v10085_v11 = vadd.f32 %v6935_v57, %v6918_v23 }
 0x39b   : > { %v5909_v13 = vmax.f32 %v5877_v40, 0.0  ;;  %v7529_v20 = vpop.f32.mrb[24].mxu1 }
 0x39c   : > { %v5931_v24 = vpack.c.bf16 %v5911_v6, %v5910_v29  ;;  %v7627_v61 = vadd.f32 %v7529_v20, %v9947_v36  ;;  %v5786_v26 = vpop.f32.mrb[25].mxu1 }
 0x39d   : > { %v5930_v22 = vpack.c.bf16 %v5909_v13, %v5908_v8  ;;  %v7628_v43 = vadd.f32 %v5786_v26, %v9949_v56  ;;  %v7530_v7 = vpop.f32.mrb[26].mxu1 }
 0x39e   : > { %v5882_v52 = vadd.f32 %v7627_v61, %v9970_v5  ;;  %v7629_v14 = vadd.f32 %v7530_v7, %v9951_v63  ;;  %v5789_v46 = vpop.f32.mrb[27].mxu1 }
 0x39f   : > { %v5880_v59 = vadd.f32 %v7628_v43, %v9970_v5  ;;  %v7630_v27 = vadd.f32 %v5789_v46, %v9953_v47  ;;  %7557 = vmatprep.mubr.msk.bf16.mxu0 %vm1777_vm8, %v5930_v22 }
 0x3a0   : > { %v5883_v31 = vadd.f32 %v7629_v14, %v9970_v5  ;;  %7558 = vmatmul.mubr.msk.bf16.gmra.mrb[84].mxu0 %vm1777_vm8, %v5931_v24  ;;  %v5914_v62 = vmax.f32 %v5882_v52, 0.0 }
 0x3a1   : > { %v5881_v36 = vadd.f32 %v7630_v27, %v9970_v5  ;;  %v5912_v21 = vmax.f32 %v5880_v59, 0.0 }
 0x3a2   : > { %v5915_v56 = vmax.f32 %v5883_v31, 0.0 }
 0x3a3   : > { %v5913_v15 = vmax.f32 %v5881_v36, 0.0  ;;  %v7533_v2 = vpop.f32.mrb[28].mxu1 }
 0x3a4   : > { %v5933_v45 = vpack.c.bf16 %v5915_v56, %v5914_v62  ;;  %v7631_v63 = vadd.f32 %v7533_v2, %v9955_v49  ;;  %v5802_v44 = vpop.f32.mrb[29].mxu1 }
 0x3a5   : > { %v5932_v17 = vpack.c.bf16 %v5913_v15, %v5912_v21  ;;  %v7632_v47 = vadd.f32 %v5802_v44, %v9957_v12  ;;  %v7534_v16 = vpop.f32.mrb[30].mxu1 }
 0x3a6   : > { %v5886_v42 = vadd.f32 %v7631_v63, %v9970_v5  ;;  %v7633_v54 = vadd.f32 %v7534_v16, %v9959_v0  ;;  %v5805_v37 = vpop.f32.mrb[31].mxu1 }
 0x3a7   : > { %v5884_v1 = vadd.f32 %v7632_v47, %v9970_v5  ;;  %v7634_v41 = vadd.f32 %v5805_v37, %v9961_v58  ;;  %7561 = vmatprep.mubr.msk.bf16.mxu0 %vm1777_vm8, %v5932_v17  ;;  %v8107_v58 = vld [vmem:[%s8299_s27] sm:$0xff]  }
 0x3a8   : > { %v5887_v49 = vadd.f32 %v7633_v54, %v9970_v5  ;;  %7562 = vmatmul.mubr.msk.bf16.gmra.mrb[88].mxu0 %vm1777_vm8, %v5933_v45  ;;  %v5918_v53 = vmax.f32 %v5886_v42, 0.0 }
 0x3a9   : > { %v5885_v12 = vadd.f32 %v7634_v41, %v9970_v5  ;;  %v5916_v9 = vmax.f32 %v5884_v1, 0.0  ;;  %v8109_v5 = vld [vmem:[%s8299_s27 + $0x10] sm:$0xff]   ;;  %s10091_s27 = scalar_lea.vmem [#allocation3], %s6505_s17 }
 0x3aa   : > { %v5919_v0 = vmax.f32 %v5887_v49, 0.0  ;;  %s6439_s22 = sshll.u32 %s10091_s27, 4  ;;  %s10186_s22 = int_to_ptr.vmem [resolvable:$true] %s6439_s22 }
 0x3ab   : > { %v5917_v4 = vmax.f32 %v5885_v12, 0.0  ;;  %s8123_s26 = scalar_lea.vmem %s10186_s22, 4096  ;;  %p8130_p0 = scmp.lt.s32.totalorder %s10186_s22, %s8128_s29 }
 0x3ac   : > { %v5935_v33 = vpack.c.bf16 %v5919_v0, %v5918_v53  ;;  %p8124_p11 = scmp.ne.s32.totalorder %s10186_s22, %s8123_s26  ;;  %p8131_p1 = scmp.lt.s32.totalorder %s8129_s14, %s8123_s26 }
 0x3ad   : > { %v5934_v51 = vpack.c.bf16 %v5917_v4, %v5916_v9 }
 0x3ae   : > { %p8125_p12 = pnand %p8124_p11, %p8279_p5  ;;  %p8132_p2 = por %p8131_p1, %p8130_p0 }
 0x3af   : > { %7565 = vmatprep.mubr.msk.bf16.mxu0 %vm1777_vm8, %v5934_v51 }
 0x3b0   : > { %7566 = vmatmul.mubr.msk.bf16.gmra.mrb[92].mxu0 %vm1777_vm8, %v5935_v33  ;;  %p8126_p13 = pneg %p8125_p12 }
 0x3b1   : > { %7571 = vmatprep.mubr.msk.bf16.mxu0 %vm452_vm1, %v8107_v58 }
 0x3b2   : > { %p8133_p3 = pnand %p8132_p2, %p8126_p13 }
 0x3b8   : > { %7572 = vmatmul.mubr.msk.bf16.vlgmr.msra.gmra.mrb[64].mxu0 %vm452_vm1, %v8108_v35 }
 0x3b9   : > { %7575 = vmatprep.mubr.msk.bf16.mxu0 %vm452_vm1, %v8109_v5 }
 0x3c0   : > { %7576 = vmatmul.mubr.msk.bf16.gmra.mrb[68].mxu0 %vm452_vm1, %v8110_v60 }
 0x3c1   : > { %7579 = vmatprep.mubr.msk.bf16.mxu0 %vm452_vm1, %v8111_v55 }
 0x3c8   : > { %7580 = vmatmul.mubr.msk.bf16.gmra.mrb[72].mxu0 %vm452_vm1, %v8112_v3 }
 0x3c9   : > { %7583 = vmatprep.mubr.msk.bf16.mxu0 %vm452_vm1, %v8113_v39 }
 0x3d0   : > { %7584 = vmatmul.mubr.msk.bf16.gmra.mrb[76].mxu0 %vm452_vm1, %v8114_v30 }
 0x3d1   : > { %7587 = vmatprep.mubr.msk.bf16.mxu0 %vm452_vm1, %v8115_v19 }
 0x3d8   : > { %7588 = vmatmul.mubr.msk.bf16.gmra.mrb[80].mxu0 %vm452_vm1, %v8116_v18 }
 0x3d9   : > { %7591 = vmatprep.mubr.msk.bf16.mxu0 %vm452_vm1, %v8117_v34 }
 0x3e0   : > { %7592 = vmatmul.mubr.msk.bf16.gmra.mrb[84].mxu0 %vm452_vm1, %v8118_v50 }
 0x3e1   : > { %7595 = vmatprep.mubr.msk.bf16.mxu0 %vm452_vm1, %v8119_v38 }
 0x3e8   : > { %7596 = vmatmul.mubr.msk.bf16.gmra.mrb[88].mxu0 %vm452_vm1, %v8120_v48 }
 0x3e9   : > { %7599 = vmatprep.mubr.msk.bf16.mxu0 %vm452_vm1, %v8121_v28 }
 0x3f0   : > { %7600 = vmatmul.mubr.msk.bf16.gmra.mrb[92].mxu0 %vm452_vm1, %v8122_v32 }
 0x48b   : > { %v7573_v10 = vpop.f32.mrb[64].mxu0 }
 0x48c   : > { %v7635_v25 = vadd.f32 %v7573_v10, %v6918_v23  ;;  %v6201_v40 = vpop.f32.mrb[65].mxu0 }
 0x48d   : > { %v7637_v29 = vadd.f32 %v6918_v23, %v6201_v40  ;;  %v7574_v6 = vpop.f32.mrb[66].mxu0 }
 0x48e   : > { %v7636_v8 = vadd.f32 %v7635_v25, %v6935_v57  ;;  %v7640_v13 = vadd.f32 %v10085_v11, %v7574_v6  ;;  %v6204_v20 = vpop.f32.mrb[67].mxu0 }
 0x48f   : > { %v7638_v24 = vadd.f32 %v7637_v29, %v6935_v57  ;;  %v7642_v61 = vadd.f32 %v10085_v11, %v6204_v20 }
 0x490   : > { %v6362_v26 = vmax.f32 %v7636_v8, 0.0  ;;  %v6363_v22 = vmax.f32 %v7640_v13, 0.0 }
 0x491   : > { %v6360_v43 = vmax.f32 %v7638_v24, 0.0  ;;  %v6361_v7 = vmax.f32 %v7642_v61, 0.0 }
 0x492   : > { %6395 = vst.msk [vmem:[%s10091_s27 + $0x10] sm:$0xff] %vm6392_vm0, %v6362_v26  ;;  %6396 = vst.msk [vmem:[%s10091_s27 + $0x18] sm:$0xff] %vm6392_vm0, %v6363_v22 }
 0x493   : > { %6393 = vst.msk [vmem:[%s10091_s27] sm:$0xff] %vm6392_vm0, %v6360_v43  ;;  %6394 = vst.msk [vmem:[%s10091_s27 + $0x8] sm:$0xff] %vm6392_vm0, %v6361_v7  ;;  %v7577_v52 = vpop.f32.mrb[68].mxu0 }
 0x494   : > { %v7644_v14 = vadd.f32 %v10085_v11, %v7577_v52  ;;  %v6217_v46 = vpop.f32.mrb[69].mxu0 }
 0x495   : > { %v7646_v59 = vadd.f32 %v10085_v11, %v6217_v46  ;;  %v7578_v27 = vpop.f32.mrb[70].mxu0 }
 0x496   : > { %v6366_v31 = vmax.f32 %v7644_v14, 0.0  ;;  %v7648_v36 = vadd.f32 %v10085_v11, %v7578_v27  ;;  %v6220_v62 = vpop.f32.mrb[71].mxu0 }
 0x497   : > { %v6364_v56 = vmax.f32 %v7646_v59, 0.0  ;;  %v7650_v21 = vadd.f32 %v10085_v11, %v6220_v62 }
 0x498   : > { %6399 = vst.msk [vmem:[%s10091_s27 + $0x30] sm:$0xff] %vm6392_vm0, %v6366_v31  ;;  %v6367_v15 = vmax.f32 %v7648_v36, 0.0 }
 0x499   : > { %6397 = vst.msk [vmem:[%s10091_s27 + $0x20] sm:$0xff] %vm6392_vm0, %v6364_v56  ;;  %v6365_v2 = vmax.f32 %v7650_v21, 0.0 }
 0x49a   : > { %6400 = vst.msk [vmem:[%s10091_s27 + $0x38] sm:$0xff] %vm6392_vm0, %v6367_v15 }
 0x49b   : > { %6398 = vst.msk [vmem:[%s10091_s27 + $0x28] sm:$0xff] %vm6392_vm0, %v6365_v2  ;;  %v7581_v45 = vpop.f32.mrb[72].mxu0 }
 0x49c   : > { %v7652_v63 = vadd.f32 %v10085_v11, %v7581_v45  ;;  %v6233_v44 = vpop.f32.mrb[73].mxu0 }
 0x49d   : > { %v7654_v17 = vadd.f32 %v10085_v11, %v6233_v44  ;;  %v7582_v47 = vpop.f32.mrb[74].mxu0 }
 0x49e   : > { %v6370_v16 = vmax.f32 %v7652_v63, 0.0  ;;  %v7656_v42 = vadd.f32 %v10085_v11, %v7582_v47  ;;  %v6236_v54 = vpop.f32.mrb[75].mxu0 }
 0x49f   : > { %v6368_v37 = vmax.f32 %v7654_v17, 0.0  ;;  %v7658_v1 = vadd.f32 %v10085_v11, %v6236_v54 }
 0x4a0   : > { %6403 = vst.msk [vmem:[%s10091_s27 + $0x50] sm:$0xff] %vm6392_vm0, %v6370_v16  ;;  %v6371_v41 = vmax.f32 %v7656_v42, 0.0 }
 0x4a1   : > { %6401 = vst.msk [vmem:[%s10091_s27 + $0x40] sm:$0xff] %vm6392_vm0, %v6368_v37  ;;  %v6369_v49 = vmax.f32 %v7658_v1, 0.0 }
 0x4a2   : > { %6404 = vst.msk [vmem:[%s10091_s27 + $0x58] sm:$0xff] %vm6392_vm0, %v6371_v41 }
 0x4a3   : > { %6402 = vst.msk [vmem:[%s10091_s27 + $0x48] sm:$0xff] %vm6392_vm0, %v6369_v49  ;;  %v7585_v12 = vpop.f32.mrb[76].mxu0 }
 0x4a4   : > { %v7660_v53 = vadd.f32 %v10085_v11, %v7585_v12  ;;  %v6249_v0 = vpop.f32.mrb[77].mxu0 }
 0x4a5   : > { %v7662_v9 = vadd.f32 %v10085_v11, %v6249_v0  ;;  %v7586_v4 = vpop.f32.mrb[78].mxu0 }
 0x4a6   : > { %v6374_v33 = vmax.f32 %v7660_v53, 0.0  ;;  %v7664_v51 = vadd.f32 %v10085_v11, %v7586_v4  ;;  %v6252_v58 = vpop.f32.mrb[79].mxu0 }
 0x4a7   : > { %v6372_v35 = vmax.f32 %v7662_v9, 0.0  ;;  %v7666_v5 = vadd.f32 %v10085_v11, %v6252_v58 }
 0x4a8   : > { %6407 = vst.msk [vmem:[%s10091_s27 + $0x70] sm:$0xff] %vm6392_vm0, %v6374_v33  ;;  %v6375_v60 = vmax.f32 %v7664_v51, 0.0 }
 0x4a9   : > { %6405 = vst.msk [vmem:[%s10091_s27 + $0x60] sm:$0xff] %vm6392_vm0, %v6372_v35  ;;  %v6373_v55 = vmax.f32 %v7666_v5, 0.0 }
 0x4aa   : > { %6408 = vst.msk [vmem:[%s10091_s27 + $0x78] sm:$0xff] %vm6392_vm0, %v6375_v60 }
 0x4ab   : > { %6406 = vst.msk [vmem:[%s10091_s27 + $0x68] sm:$0xff] %vm6392_vm0, %v6373_v55  ;;  %v7589_v3 = vpop.f32.mrb[80].mxu0 }
 0x4ac   : > { %v7668_v39 = vadd.f32 %v10085_v11, %v7589_v3  ;;  %v6265_v30 = vpop.f32.mrb[81].mxu0 }
 0x4ad   : > { %v7670_v19 = vadd.f32 %v10085_v11, %v6265_v30  ;;  %v7590_v18 = vpop.f32.mrb[82].mxu0 }
 0x4ae   : > { %v6378_v34 = vmax.f32 %v7668_v39, 0.0  ;;  %v7672_v50 = vadd.f32 %v10085_v11, %v7590_v18  ;;  %v6268_v38 = vpop.f32.mrb[83].mxu0 }
 0x4af   : > { %v6376_v48 = vmax.f32 %v7670_v19, 0.0  ;;  %v7674_v28 = vadd.f32 %v10085_v11, %v6268_v38 }
 0x4b0   : > { %6411 = vst.msk [vmem:[%s10091_s27 + $0x90] sm:$0xff] %vm6392_vm0, %v6378_v34  ;;  %v6379_v32 = vmax.f32 %v7672_v50, 0.0 }
 0x4b1   : > { %6409 = vst.msk [vmem:[%s10091_s27 + $0x80] sm:$0xff] %vm6392_vm0, %v6376_v48  ;;  %v6377_v23 = vmax.f32 %v7674_v28, 0.0 }
 0x4b2   : > { %6412 = vst.msk [vmem:[%s10091_s27 + $0x98] sm:$0xff] %vm6392_vm0, %v6379_v32 }
 0x4b3   : > { %6410 = vst.msk [vmem:[%s10091_s27 + $0x88] sm:$0xff] %vm6392_vm0, %v6377_v23  ;;  %v7593_v57 = vpop.f32.mrb[84].mxu0 }
 0x4b4   : > { %v7676_v10 = vadd.f32 %v10085_v11, %v7593_v57  ;;  %v6281_v25 = vpop.f32.mrb[85].mxu0 }
 0x4b5   : > { %v7678_v40 = vadd.f32 %v10085_v11, %v6281_v25  ;;  %v7594_v29 = vpop.f32.mrb[86].mxu0 }
 0x4b6   : > { %v6382_v6 = vmax.f32 %v7676_v10, 0.0  ;;  %v7680_v8 = vadd.f32 %v10085_v11, %v7594_v29  ;;  %v6284_v13 = vpop.f32.mrb[87].mxu0 }
 0x4b7   : > { %v6380_v20 = vmax.f32 %v7678_v40, 0.0  ;;  %v7682_v24 = vadd.f32 %v10085_v11, %v6284_v13 }
 0x4b8   : > { %6415 = vst.msk [vmem:[%s10091_s27 + $0xb0] sm:$0xff] %vm6392_vm0, %v6382_v6  ;;  %v6383_v61 = vmax.f32 %v7680_v8, 0.0 }
 0x4b9   : > { %6413 = vst.msk [vmem:[%s10091_s27 + $0xa0] sm:$0xff] %vm6392_vm0, %v6380_v20  ;;  %v6381_v26 = vmax.f32 %v7682_v24, 0.0 }
 0x4ba   : > { %6416 = vst.msk [vmem:[%s10091_s27 + $0xb8] sm:$0xff] %vm6392_vm0, %v6383_v61 }
 0x4bb   : > { %6414 = vst.msk [vmem:[%s10091_s27 + $0xa8] sm:$0xff] %vm6392_vm0, %v6381_v26  ;;  %v7597_v22 = vpop.f32.mrb[88].mxu0 }
 0x4bc   : > { %v7684_v43 = vadd.f32 %v10085_v11, %v7597_v22  ;;  %v6297_v7 = vpop.f32.mrb[89].mxu0 }
 0x4bd   : > { %v7686_v52 = vadd.f32 %v10085_v11, %v6297_v7  ;;  %v7598_v14 = vpop.f32.mrb[90].mxu0 }
 0x4be   : > { %v6386_v46 = vmax.f32 %v7684_v43, 0.0  ;;  %v7688_v59 = vadd.f32 %v10085_v11, %v7598_v14  ;;  %v6300_v27 = vpop.f32.mrb[91].mxu0 }
 0x4bf   : > { %v6384_v31 = vmax.f32 %v7686_v52, 0.0  ;;  %v7690_v36 = vadd.f32 %v10085_v11, %v6300_v27 }
 0x4c0   : > { %6419 = vst.msk [vmem:[%s10091_s27 + $0xd0] sm:$0xff] %vm6392_vm0, %v6386_v46  ;;  %v6387_v62 = vmax.f32 %v7688_v59, 0.0 }
 0x4c1   : > { %6417 = vst.msk [vmem:[%s10091_s27 + $0xc0] sm:$0xff] %vm6392_vm0, %v6384_v31  ;;  %v6385_v56 = vmax.f32 %v7690_v36, 0.0 }
 0x4c2   : > { %6420 = vst.msk [vmem:[%s10091_s27 + $0xd8] sm:$0xff] %vm6392_vm0, %v6387_v62 }
 0x4c3   : > { %6418 = vst.msk [vmem:[%s10091_s27 + $0xc8] sm:$0xff] %vm6392_vm0, %v6385_v56  ;;  %v7601_v21 = vpop.f32.mrb[92].mxu0 }
 0x4c4   : > { %v7692_v15 = vadd.f32 %v10085_v11, %v7601_v21  ;;  %v6313_v2 = vpop.f32.mrb[93].mxu0 }
 0x4c5   : > { %v7694_v45 = vadd.f32 %v10085_v11, %v6313_v2  ;;  %v7602_v63 = vpop.f32.mrb[94].mxu0 }
 0x4c6   : > { %v6390_v44 = vmax.f32 %v7692_v15, 0.0  ;;  %v7696_v17 = vadd.f32 %v10085_v11, %v7602_v63  ;;  %v6316_v47 = vpop.f32.mrb[95].mxu0 }
 0x4c7   : > { %v6388_v16 = vmax.f32 %v7694_v45, 0.0  ;;  %v7698_v42 = vadd.f32 %v10085_v11, %v6316_v47 }
 0x4c8   : > { %6423 = vst.msk [vmem:[%s10091_s27 + $0xf0] sm:$0xff] %vm6392_vm0, %v6390_v44  ;;  %v6391_v54 = vmax.f32 %v7696_v17, 0.0 }
 0x4c9   : > { %6421 = vst.msk [vmem:[%s10091_s27 + $0xe0] sm:$0xff] %vm6392_vm0, %v6388_v16  ;;  %v6389_v37 = vmax.f32 %v7698_v42, 0.0 }
 0x4ca   : > { %6424 = vst.msk [vmem:[%s10091_s27 + $0xf8] sm:$0xff] %vm6392_vm0, %v6391_v54 }
 0x4cb   : > { %6422 = vst.msk [vmem:[%s10091_s27 + $0xe8] sm:$0xff] %vm6392_vm0, %v6389_v37 }
 0x4cc   : > { %8136 = shalt.err (!%p8133_p3)
}
 0x4cd   : > { %s8137_s16 = scalar_lea.hbm %s10184_s25, 4096  ;;  %s8141_s21 = scalar_lea.hbm %s10246_s9, 8192 }
 0x4ce   : > { %p8138_p4 = scmp.ne.s32.totalorder %s10184_s25, %s8137_s16  ;;  %p8142_p9 = scmp.lt.u32.totalorder %s10184_s25, %s10246_s9 }
 0x4cf   : > { %p8143_p10 = scmp.lt.u32.totalorder %s8141_s21, %s8137_s16  ;;  %p8145_p12 = scmp.lt.u32.totalorder %s8137_s16, %s10184_s25 }
 0x4d0   : > { %p8139_p7 = pnand %p8138_p4, %p8279_p5 }
 0x4d1   : > { %p8144_p11 = por %p8143_p10, %p8142_p9 }
 0x4d2   : > { %p8140_p8 = pneg %p8139_p7 }
 0x4d3   : > { %p8146_p13 = por %p8145_p12, %p8144_p11 }
 0x4d5   : > { %p8147_p0 = pnand %p8146_p13, %p8140_p8 }
 0x4d7   : > { %8150 = shalt.err (!%p8147_p0)
}
 0x4d8   : > { %s8189_s26 = smov 128   ;;  %s8190_s28 = smov 8  }
 0x4d9   : > { %7967 = dma.vmem_to_hbm [thread:$0]  (%p8279_p5), %s10186_s22, 4096, %s10184_s25, %s10196_s13, %s8189_s26, %s8189_s26, %s8190_s28  }
 0x4da PF: > { %p7973_p1 = scmp.ge.s32.totalorder %s8185_s12, 2  ;;  %s6454_s29 = sand.u32 1, %s8173_s30  }
 0x4db   : > { %s6455_s14 = scalar_lea.sflag [#allocation4], %s6454_s29 }
 0x4dc   : > { %p7970_p2 = pnand %p7973_p1, %p8283_p6 }
 0x4de   : > { %8168 = dma.done.wait (!%p7970_p2), %s6455_s14, 4096  }
 0x4df   : > { %8170 = vsyncadd (!%p7970_p2), %s6455_s14, 4294963200  ;;  %p19_p3 = scmp.ge.s32.totalorder %s8266_s15, 4   ;;  %s10339_s30 = smov %s8177_s10 }
 0x4e0   : > { %s10340_s10 = smov %s8181_s11  ;;  %s10341_s11 = smov %s8277_s18 }
 0x4e1   : > { %s10342_s12 = smov %s8266_s15  ;;  %21 = sbr.rel (!%p19_p3) target bundleno = 3 (0x3), region = 101 }
 0x4e8   :  { %6460 = vsyncpa [#allocation4], 1 }
 0x4e9   :  { %6462 = vsyncpa [#allocation4 + $0x1], 1 }

</bundles_post_ra>
